<compile_context>
chip_gen: v7x
topology: tpu7x:2x2x1
jax: 0.10.0
libtpu: 0.0.40
codegen_flags: <defaults>
</compile_context>

<pallas_src>
import functools

import jax
import jax.numpy as jnp
from jax.experimental import pallas as pl
from jax.experimental.pallas import tpu as pltpu


def _bilstm_kernel(
    x_ref,        # (T, B, D)        mxu dtype, time-major
    wih_all_ref,  # (D, 8*Hp)        mxu dtype: [i f o g fwd | i f o g bwd], each Hp
    b_all_ref,    # (1, 8*Hp)        f32: (b_ih + b_hh), gate-permuted, both dirs
    whh_ref,      # fused: (2Hp, 8Hp) block-diag ; else (2, Hp, 4Hp)  (rec dtype)
    wlin_f_ref,   # (Hp, Op)         mxu dtype  (W_lin[:, :H]^T, padded)
    wlin_b_ref,   # (Hp, Op)         mxu dtype  (W_lin[:, H:]^T, padded)
    blin_ref,     # (1, Op)          f32
    out_ref,      # (T, B, Op)       f32
    # scratch
    xproj,        # (T, B, 8*Hp)     f32 (precise) / bf16 (fast)
    hid_f,        # (T, B, Hp)       mxu dtype (pre-packed epilogue LHS)
    hid_b,        # (T, B, Hp)       mxu dtype
    *,
    hidden: int,
    fused_rec: bool,
    unroll_T: int,
):
    T, B, D = x_ref.shape
    Hp = hidden
    G4 = 4 * Hp

    # ---- (1) one large lane-dense input projection for BOTH directions, biases
    #      folded in; broadcast happens exactly once, outside the serial loop.
    x_flat = x_ref[...].reshape(T * B, D)
    xp = jnp.dot(x_flat, wih_all_ref[...], preferred_element_type=jnp.float32)
    xproj[...] = (xp + b_all_ref[...]).reshape(T, B, 2 * G4).astype(xproj.dtype)

    rec_dtype = whh_ref.dtype
    whh = whh_ref[...]  # hoisted, already transposed / block-diagonal

    def gate_math(pre, c):
        # gate order after wrapper permutation: [i, f, o, g]
        # -> one sigmoid over a contiguous 3Hp slice + one tanh over Hp (2 EUP pushes)
        sig = jax.nn.sigmoid(pre[:, : 3 * Hp])
        i = sig[:, 0 * Hp:1 * Hp]
        f = sig[:, 1 * Hp:2 * Hp]
        o = sig[:, 2 * Hp:3 * Hp]
        g = jnp.tanh(pre[:, 3 * Hp:4 * Hp])
        c_new = f * c + i * g
        h_new = o * jnp.tanh(c_new)
        return h_new, c_new

    def step(t, carry):
        h_f, c_f, h_b, c_b = carry
        tb = T - 1 - t

        if fused_rec:
            # single MXU push per step for both directions (block-diag RHS)
            h_cat = jnp.concatenate(
                [h_f.astype(rec_dtype), h_b.astype(rec_dtype)], axis=-1)
            rec = jnp.dot(h_cat, whh, preferred_element_type=jnp.float32)
            rec_f = rec[:, :G4]
            rec_b = rec[:, G4:]
        else:
            rec_f = jnp.dot(h_f.astype(rec_dtype), whh[0],
                            preferred_element_type=jnp.float32)
            rec_b = jnp.dot(h_b.astype(rec_dtype), whh[1],
                            preferred_element_type=jnp.float32)

        # forward chain at time t
        pre_f = xproj[t][:, :G4].astype(jnp.float32) + rec_f
        h_f, c_f = gate_math(pre_f, c_f)
        hid_f[t] = h_f.astype(hid_f.dtype)

        # backward chain at time T-1-t (independent dependency chain)
        pre_b = xproj[tb][:, G4:].astype(jnp.float32) + rec_b
        h_b, c_b = gate_math(pre_b, c_b)
        hid_b[tb] = h_b.astype(hid_b.dtype)

        return h_f, c_f, h_b, c_b

    # zero initial h/c (PyTorch default); carried in registers, not VMEM.
    z = jnp.zeros((B, Hp), jnp.float32)
    carry = (z, z, z, z)
    if T <= 32:
        # full unroll at trace time: static indices, full scheduler visibility
        for t in range(T):
            carry = step(t, carry)
    else:
        carry = jax.lax.fori_loop(0, T, step, carry, unroll=unroll_T)

    # ---- (3) epilogue Linear(2H -> O), concat-free, lane-dense Op output.
    hf = hid_f[...].reshape(T * B, Hp)
    hb = hid_b[...].reshape(T * B, Hp)
    out = (jnp.dot(hf, wlin_f_ref[...], preferred_element_type=jnp.float32)
           + jnp.dot(hb, wlin_b_ref[...], preferred_element_type=jnp.float32)
           + blin_ref[...])
    out_ref[...] = out.reshape(T, B, out_ref.shape[2])


def _pad_to(n, m):
    return ((n + m - 1) // m) * m


def _prep_gate_matrix(w, H, H_pad, dtype):
    """w: (4H, K), rows grouped [i; f; g; o] -> (K, 4*H_pad), gate order [i, f, o, g]."""
    perm = (0, 1, 3, 2)
    blocks = [jnp.pad(w[k * H:(k + 1) * H], ((0, H_pad - H), (0, 0))) for k in perm]
    return jnp.concatenate(blocks, axis=0).T.astype(dtype)  # (K, 4*H_pad)


def _prep_gate_bias(b, H, H_pad):
    """b: (1, 4H) -> (1, 4*H_pad), gate order [i, f, o, g]."""
    perm = (0, 1, 3, 2)
    blocks = [jnp.pad(b[:, k * H:(k + 1) * H], ((0, 0), (0, H_pad - H))) for k in perm]
    return jnp.concatenate(blocks, axis=1).astype(jnp.float32)


def bidirectional_lstm(x, params, *, precise=False):
    """x: (B, T, input_size) float32 -> (B, T, output_size) float32.

    precise=True keeps every matmul/scratch in float32.  precise=False (default)
    uses bf16 MXU operands for all matmuls (including the recurrence) and bf16
    xproj/hid scratch; the carries, c, and gate math stay float32.
    """
    B, T, D = x.shape
    H = params["w_hh_f"].shape[1]
    O = params["w_lin"].shape[0]

    mxu_dtype = jnp.float32 if precise else jnp.bfloat16
    store_dtype = jnp.float32 if precise else jnp.bfloat16

    H_pad = _pad_to(H, 128)
    O_pad = _pad_to(O, 128)
    b_mult = 8 if precise else 16            # bf16 packs 16 rows per sublane tile
    B_pad = _pad_to(B, b_mult)
    fused_rec = H_pad <= 128                 # K = 2*H_pad <= 256 -> single MXU pass

    # ---- input: pad batch, go time-major
    x32 = x.astype(jnp.float32)
    if B_pad != B:
        x32 = jnp.pad(x32, ((0, B_pad - B), (0, 0), (0, 0)))
    x_tm = jnp.transpose(x32, (1, 0, 2)).astype(mxu_dtype)          # (T, B_pad, D)

    # ---- weights: pre-transposed, gate-permuted to [i,f,o,g], lane-padded
    wih_f = _prep_gate_matrix(params["w_ih_f"], H, H_pad, mxu_dtype)   # (D, 4Hp)
    wih_b = _prep_gate_matrix(params["w_ih_b"], H, H_pad, mxu_dtype)   # (D, 4Hp)
    w_ih_all = jnp.concatenate([wih_f, wih_b], axis=1)                 # (D, 8Hp)

    b_all = jnp.concatenate(
        [_prep_gate_bias(params["b_f"], H, H_pad),
         _prep_gate_bias(params["b_b"], H, H_pad)], axis=1)            # (1, 8Hp)

    whh_f_t = jnp.pad(
        _prep_gate_matrix(params["w_hh_f"], H, H_pad, jnp.float32),
        ((0, H_pad - H), (0, 0)))                                      # (Hp, 4Hp)
    whh_b_t = jnp.pad(
        _prep_gate_matrix(params["w_hh_b"], H, H_pad, jnp.float32),
        ((0, H_pad - H), (0, 0)))                                      # (Hp, 4Hp)
    if fused_rec:
        whh_in = jnp.zeros((2 * H_pad, 8 * H_pad), jnp.float32)
        whh_in = whh_in.at[:H_pad, :4 * H_pad].set(whh_f_t)
        whh_in = whh_in.at[H_pad:, 4 * H_pad:].set(whh_b_t)
        whh_in = whh_in.astype(mxu_dtype)                              # (2Hp, 8Hp)
    else:
        whh_in = jnp.stack([whh_f_t, whh_b_t], axis=0).astype(mxu_dtype)  # (2, Hp, 4Hp)

    wlin_f = jnp.pad(params["w_lin"][:, :H].T,
                     ((0, H_pad - H), (0, O_pad - O))).astype(mxu_dtype)   # (Hp, Op)
    wlin_b = jnp.pad(params["w_lin"][:, H:].T,
                     ((0, H_pad - H), (0, O_pad - O))).astype(mxu_dtype)   # (Hp, Op)
    b_lin = jnp.pad(params["b_lin"],
                    ((0, 0), (0, O_pad - O))).astype(jnp.float32)          # (1, Op)

    inputs = (x_tm, w_ih_all, b_all, whh_in, wlin_f, wlin_b, b_lin)

    # carries get large -> shorter unroll keeps live ranges off the vld/vst slots
    unroll_T = 4 if B_pad * H_pad <= 8192 else 2

    # ---- VMEM budgeting (derive cap from hardware, leave headroom)
    nbytes = lambda a: int(a.size) * a.dtype.itemsize
    itemsz = jnp.dtype(store_dtype).itemsize
    lin_itemsz = jnp.dtype(mxu_dtype).itemsize
    scratch_bytes = (T * B_pad * 8 * H_pad * itemsz
                     + 2 * T * B_pad * H_pad * lin_itemsz)
    transient = 4 * T * B_pad * 8 * H_pad + 4 * T * B_pad * O_pad  # proj + epilogue f32
    resident = (sum(nbytes(a) for a in inputs) + 4 * T * B_pad * O_pad
                + scratch_bytes + transient)
    try:
        info = pltpu.get_tpu_info()
        vmem_cap = int(getattr(info, "vmem_capacity_bytes", 64 * 1024 * 1024))
    except Exception:
        vmem_cap = 64 * 1024 * 1024
    vmem_limit = min(max(32 * 1024 * 1024, int(1.25 * resident) + (2 << 20)),
                     int(0.9 * vmem_cap))

    rec_flops = (2 * T * B_pad * (2 * H_pad) * (8 * H_pad) if fused_rec
                 else 2 * 2 * T * B_pad * H_pad * (4 * H_pad))
    cost = pl.CostEstimate(
        flops=(2 * T * B_pad * D * 8 * H_pad      # input projection (both dirs)
               + rec_flops                         # recurrent matmuls
               + 2 * 2 * T * B_pad * H_pad * O_pad),  # output linear
        transcendentals=2 * T * B_pad * 5 * H_pad,
        bytes_accessed=sum(nbytes(a) for a in inputs) + 4 * T * B_pad * O_pad,
    )

    kernel = functools.partial(_bilstm_kernel, hidden=H_pad, fused_rec=fused_rec,
                               unroll_T=unroll_T)

    vmem = pl.BlockSpec(memory_space=pltpu.MemorySpace.VMEM)
    out_tm = pl.pallas_call(
        kernel,
        out_shape=jax.ShapeDtypeStruct((T, B_pad, O_pad), jnp.float32),
        in_specs=[vmem] * len(inputs),
        out_specs=vmem,
        scratch_shapes=[
            pltpu.VMEM((T, B_pad, 8 * H_pad), store_dtype),  # xproj (both directions)
            pltpu.VMEM((T, B_pad, H_pad), mxu_dtype),        # hid_f (epilogue LHS)
            pltpu.VMEM((T, B_pad, H_pad), mxu_dtype),        # hid_b
        ],
        compiler_params=pltpu.CompilerParams(vmem_limit_bytes=vmem_limit),
        cost_estimate=cost,
    )(*inputs)

    # back to (B, T, O); drop batch / lane padding
    return jnp.transpose(out_tm, (1, 0, 2))[:B, :, :O]


def init_params(key, input_size, hidden_size, output_size):
    """Deterministic init matching the PyTorch module's parameter shapes."""
    H = hidden_size
    k_lstm = 1.0 / jnp.sqrt(H)
    k_lin = 1.0 / jnp.sqrt(2 * H)
    keys = jax.random.split(key, 12)

    def u(k, shape, scale):
        return jax.random.uniform(k, shape, jnp.float32, -scale, scale)

    params = {
        # forward direction
        "w_ih_f": u(keys[0], (4 * H, input_size), k_lstm),
        "w_hh_f": u(keys[1], (4 * H, H), k_lstm),
        "b_f": (u(keys[2], (1, 4 * H), k_lstm) + u(keys[3], (1, 4 * H), k_lstm)),  # b_ih+b_hh
        # reverse direction
        "w_ih_b": u(keys[4], (4 * H, input_size), k_lstm),
        "w_hh_b": u(keys[5], (4 * H, H), k_lstm),
        "b_b": (u(keys[6], (1, 4 * H), k_lstm) + u(keys[7], (1, 4 * H), k_lstm)),
        # final linear
        "w_lin": u(keys[8], (output_size, 2 * H), k_lin),
        "b_lin": u(keys[9], (1, output_size), k_lin),
    }
    return params


def bidirectional_lstm_ref(x, params):
    """Pure-JAX reference (lax.scan) with PyTorch LSTM semantics, for validation."""
    B, T, D = x.shape
    H = params["w_hh_f"].shape[1]

    def cell(carry, x_t, wih, whh, b):
        h, c = carry
        gates = x_t @ wih.T + h @ whh.T + b[0]
        i, f, g, o = jnp.split(gates, 4, axis=-1)
        i = jax.nn.sigmoid(i); f = jax.nn.sigmoid(f)
        g = jnp.tanh(g); o = jax.nn.sigmoid(o)
        c = f * c + i * g
        h = o * jnp.tanh(c)
        return (h, c), h

    xt = jnp.transpose(x, (1, 0, 2))  # (T, B, D)
    init = (jnp.zeros((B, H), jnp.float32), jnp.zeros((B, H), jnp.float32))
    _, hf = jax.lax.scan(
        lambda ca, xi: cell(ca, xi, params["w_ih_f"], params["w_hh_f"], params["b_f"]), init, xt)
    _, hb = jax.lax.scan(
        lambda ca, xi: cell(ca, xi, params["w_ih_b"], params["w_hh_b"], params["b_b"]), init, xt[::-1])
    hb = hb[::-1]
    hid = jnp.concatenate([hf, hb], axis=-1)                     # (T, B, 2H)
    out = hid @ params["w_lin"].T + params["b_lin"][0]           # (T, B, O)
    return jnp.transpose(out, (1, 0, 2))


if __name__ == "__main__":
    B, T = 2, 8
    input_size, hidden_size, output_size = 16, 32, 16

    key = jax.random.PRNGKey(0)
    kx, kp = jax.random.split(key)
    x = jax.random.normal(kx, (B, T, input_size), jnp.float32)
    params = init_params(kp, input_size, hidden_size, output_size)

    ref = jax.block_until_ready(bidirectional_lstm_ref(x, params))

    # strict f32 path: must match the lax.scan reference tightly
    out_f32 = jax.block_until_ready(bidirectional_lstm(x, params, precise=True))
    assert out_f32.shape == (B, T, output_size)
    assert jnp.allclose(out_f32, ref, atol=1e-4, rtol=1e-4), "f32 kernel mismatch vs reference"

    # fast path: bf16 MXU operands everywhere (incl. the recurrence) + bf16 scratch;
    # tolerance loosened to match bf16 accumulation through the 8-step recurrence.
    out = jax.block_until_ready(bidirectional_lstm(x, params))
    assert out.shape == (B, T, output_size)
    assert jnp.allclose(out, ref, atol=5e-2, rtol=5e-2), "bf16 kernel mismatch vs reference"

    print("KERNEL_OK")
</pallas_src>

<mosaic_0001>
module attributes {stable_mosaic.version = 11 : i64} {
  func.func @_bilstm_kernel(%arg0: memref<8x8x16xf32, #tpu.memory_space<vmem>>, %arg1: memref<16x1024xf32, #tpu.memory_space<vmem>>, %arg2: memref<1x1024xf32, #tpu.memory_space<vmem>>, %arg3: memref<256x1024xf32, #tpu.memory_space<vmem>>, %arg4: memref<128x128xf32, #tpu.memory_space<vmem>>, %arg5: memref<128x128xf32, #tpu.memory_space<vmem>>, %arg6: memref<1x128xf32, #tpu.memory_space<vmem>>, %arg7: memref<8x8x128xf32, #tpu.memory_space<vmem>>, %arg8: memref<8x8x1024xf32, #tpu.memory_space<vmem>>, %arg9: memref<8x8x128xf32, #tpu.memory_space<vmem>>, %arg10: memref<8x8x128xf32, #tpu.memory_space<vmem>>) attributes {dimension_semantics = [], scalar_prefetch = 0 : i64, scratch_operands = 3 : i64, tpu.core_type = #tpu.core_type<tc>} {
    %c0 = arith.constant 0 : index
    %c0_0 = arith.constant 0 : index
    %c0_1 = arith.constant 0 : index
    %0 = vector.load %arg0[%c0, %c0_0, %c0_1] : memref<8x8x16xf32, #tpu.memory_space<vmem>>, vector<8x8x16xf32>
    %1 = vector.shape_cast %0 : vector<8x8x16xf32> to vector<64x16xf32>
    %c0_2 = arith.constant 0 : index
    %c0_3 = arith.constant 0 : index
    %2 = vector.load %arg1[%c0_2, %c0_3] : memref<16x1024xf32, #tpu.memory_space<vmem>>, vector<16x1024xf32>
    %cst = arith.constant dense<0.000000e+00> : vector<64x1024xf32>
    %3 = tpu.matmul %1, %2, %cst {dimension_numbers = #tpu.dot_dimension_numbers<[1], [0], [0], [1], [0, 0, 1, 1], [], []>} : vector<64x16xf32>, vector<16x1024xf32>, vector<64x1024xf32> -> vector<64x1024xf32>
    %c0_4 = arith.constant 0 : index
    %c0_5 = arith.constant 0 : index
    %4 = vector.load %arg2[%c0_4, %c0_5] : memref<1x1024xf32, #tpu.memory_space<vmem>>, vector<1x1024xf32>
    %5 = vector.broadcast %4 : vector<1x1024xf32> to vector<64x1024xf32>
    %6 = arith.addf %3, %5 : vector<64x1024xf32>
    %7 = vector.shape_cast %6 : vector<64x1024xf32> to vector<8x8x1024xf32>
    %c0_6 = arith.constant 0 : index
    %c0_7 = arith.constant 0 : index
    %c0_8 = arith.constant 0 : index
    %8 = vector.load %arg8[%c0_6, %c0_7, %c0_8] : memref<8x8x1024xf32, #tpu.memory_space<vmem>>, vector<8x8x1024xf32>
    tpu.vector_store %arg8[%c0_6, %c0_7, %c0_8], %7 {strides = array<i32>} : memref<8x8x1024xf32, #tpu.memory_space<vmem>>, vector<8x8x1024xf32>,
    %c0_9 = arith.constant 0 : index
    %c0_10 = arith.constant 0 : index
    %9 = vector.load %arg3[%c0_9, %c0_10] : memref<256x1024xf32, #tpu.memory_space<vmem>>, vector<256x1024xf32>
    %cst_11 = arith.constant 0.000000e+00 : f32
    %10 = vector.broadcast %cst_11 : f32 to vector<8x128xf32>
    %11 = tpu.concatenate %10, %10 in 1 : vector<8x128xf32>, vector<8x128xf32> -> vector<8x256xf32>
    %cst_12 = arith.constant dense<0.000000e+00> : vector<8x1024xf32>
    %12 = tpu.matmul %11, %9, %cst_12 {dimension_numbers = #tpu.dot_dimension_numbers<[1], [0], [0], [1], [0, 0, 1, 1], [], []>} : vector<8x256xf32>, vector<256x1024xf32>, vector<8x1024xf32> -> vector<8x1024xf32>
    %13 = vector.extract_strided_slice %12 {offsets = [0, 0], sizes = [8, 512], strides = [1, 1]} : vector<8x1024xf32> to vector<8x512xf32>
    %14 = vector.extract_strided_slice %12 {offsets = [0, 512], sizes = [8, 512], strides = [1, 1]} : vector<8x1024xf32> to vector<8x512xf32>
    %c0_13 = arith.constant 0 : index
    %c0_14 = arith.constant 0 : index
    %c0_15 = arith.constant 0 : index
    %15 = vector.load %arg8[%c0_13, %c0_14, %c0_15] : memref<8x8x1024xf32, #tpu.memory_space<vmem>>, vector<1x8x1024xf32>
    %16 = vector.shape_cast %15 : vector<1x8x1024xf32> to vector<8x1024xf32>
    %17 = vector.extract_strided_slice %16 {offsets = [0, 0], sizes = [8, 512], strides = [1, 1]} : vector<8x1024xf32> to vector<8x512xf32>
    %18 = arith.addf %17, %13 : vector<8x512xf32>
    %19 = vector.extract_strided_slice %18 {offsets = [0, 0], sizes = [8, 384], strides = [1, 1]} : vector<8x512xf32> to vector<8x384xf32>
    %20 = arith.negf %19 : vector<8x384xf32>
    %21 = math.exp %20 : vector<8x384xf32>
    %cst_16 = arith.constant 1.000000e+00 : f32
    %22 = vector.broadcast %cst_16 : f32 to vector<8x384xf32>
    %23 = arith.addf %22, %21 : vector<8x384xf32>
    %24 = arith.divf %22, %23 : vector<8x384xf32>
    %25 = vector.extract_strided_slice %24 {offsets = [0, 0], sizes = [8, 128], strides = [1, 1]} : vector<8x384xf32> to vector<8x128xf32>
    %26 = vector.extract_strided_slice %24 {offsets = [0, 128], sizes = [8, 128], strides = [1, 1]} : vector<8x384xf32> to vector<8x128xf32>
    %27 = vector.extract_strided_slice %24 {offsets = [0, 256], sizes = [8, 128], strides = [1, 1]} : vector<8x384xf32> to vector<8x128xf32>
    %28 = vector.extract_strided_slice %18 {offsets = [0, 384], sizes = [8, 128], strides = [1, 1]} : vector<8x512xf32> to vector<8x128xf32>
    %29 = math.tanh %28 : vector<8x128xf32>
    %30 = arith.mulf %26, %10 : vector<8x128xf32>
    %31 = arith.mulf %25, %29 : vector<8x128xf32>
    %32 = arith.addf %30, %31 : vector<8x128xf32>
    %33 = math.tanh %32 : vector<8x128xf32>
    %34 = arith.mulf %27, %33 : vector<8x128xf32>
    %c0_17 = arith.constant 0 : index
    %c0_18 = arith.constant 0 : index
    %c0_19 = arith.constant 0 : index
    %35 = vector.load %arg9[%c0_17, %c0_18, %c0_19] : memref<8x8x128xf32, #tpu.memory_space<vmem>>, vector<1x8x128xf32>
    %36 = vector.shape_cast %35 : vector<1x8x128xf32> to vector<8x128xf32>
    %37 = vector.shape_cast %34 : vector<8x128xf32> to vector<1x8x128xf32>
    tpu.vector_store %arg9[%c0_17, %c0_18, %c0_19], %37 {strides = array<i32>} : memref<8x8x128xf32, #tpu.memory_space<vmem>>, vector<1x8x128xf32>,
    %c7 = arith.constant 7 : index
    %c0_20 = arith.constant 0 : index
    %c0_21 = arith.constant 0 : index
    %38 = vector.load %arg8[%c7, %c0_20, %c0_21] : memref<8x8x1024xf32, #tpu.memory_space<vmem>>, vector<1x8x1024xf32>
    %39 = vector.shape_cast %38 : vector<1x8x1024xf32> to vector<8x1024xf32>
    %40 = vector.extract_strided_slice %39 {offsets = [0, 512], sizes = [8, 512], strides = [1, 1]} : vector<8x1024xf32> to vector<8x512xf32>
    %41 = arith.addf %40, %14 : vector<8x512xf32>
    %42 = vector.extract_strided_slice %41 {offsets = [0, 0], sizes = [8, 384], strides = [1, 1]} : vector<8x512xf32> to vector<8x384xf32>
    %43 = arith.negf %42 : vector<8x384xf32>
    %44 = math.exp %43 : vector<8x384xf32>
    %cst_22 = arith.constant 1.000000e+00 : f32
    %45 = vector.broadcast %cst_22 : f32 to vector<8x384xf32>
    %46 = arith.addf %45, %44 : vector<8x384xf32>
    %47 = arith.divf %45, %46 : vector<8x384xf32>
    %48 = vector.extract_strided_slice %47 {offsets = [0, 0], sizes = [8, 128], strides = [1, 1]} : vector<8x384xf32> to vector<8x128xf32>
    %49 = vector.extract_strided_slice %47 {offsets = [0, 128], sizes = [8, 128], strides = [1, 1]} : vector<8x384xf32> to vector<8x128xf32>
    %50 = vector.extract_strided_slice %47 {offsets = [0, 256], sizes = [8, 128], strides = [1, 1]} : vector<8x384xf32> to vector<8x128xf32>
    %51 = vector.extract_strided_slice %41 {offsets = [0, 384], sizes = [8, 128], strides = [1, 1]} : vector<8x512xf32> to vector<8x128xf32>
    %52 = math.tanh %51 : vector<8x128xf32>
    %53 = arith.mulf %49, %10 : vector<8x128xf32>
    %54 = arith.mulf %48, %52 : vector<8x128xf32>
    %55 = arith.addf %53, %54 : vector<8x128xf32>
    %56 = math.tanh %55 : vector<8x128xf32>
    %57 = arith.mulf %50, %56 : vector<8x128xf32>
    %c7_23 = arith.constant 7 : index
    %c0_24 = arith.constant 0 : index
    %c0_25 = arith.constant 0 : index
    %58 = vector.load %arg10[%c7_23, %c0_24, %c0_25] : memref<8x8x128xf32, #tpu.memory_space<vmem>>, vector<1x8x128xf32>
    %59 = vector.shape_cast %58 : vector<1x8x128xf32> to vector<8x128xf32>
    %60 = vector.shape_cast %57 : vector<8x128xf32> to vector<1x8x128xf32>
    tpu.vector_store %arg10[%c7_23, %c0_24, %c0_25], %60 {strides = array<i32>} : memref<8x8x128xf32, #tpu.memory_space<vmem>>, vector<1x8x128xf32>,
    %61 = tpu.concatenate %34, %57 in 1 : vector<8x128xf32>, vector<8x128xf32> -> vector<8x256xf32>
    %cst_26 = arith.constant dense<0.000000e+00> : vector<8x1024xf32>
    %62 = tpu.matmul %61, %9, %cst_26 {dimension_numbers = #tpu.dot_dimension_numbers<[1], [0], [0], [1], [0, 0, 1, 1], [], []>} : vector<8x256xf32>, vector<256x1024xf32>, vector<8x1024xf32> -> vector<8x1024xf32>
    %63 = vector.extract_strided_slice %62 {offsets = [0, 0], sizes = [8, 512], strides = [1, 1]} : vector<8x1024xf32> to vector<8x512xf32>
    %64 = vector.extract_strided_slice %62 {offsets = [0, 512], sizes = [8, 512], strides = [1, 1]} : vector<8x1024xf32> to vector<8x512xf32>
    %c1 = arith.constant 1 : index
    %c0_27 = arith.constant 0 : index
    %c0_28 = arith.constant 0 : index
    %65 = vector.load %arg8[%c1, %c0_27, %c0_28] : memref<8x8x1024xf32, #tpu.memory_space<vmem>>, vector<1x8x1024xf32>
    %66 = vector.shape_cast %65 : vector<1x8x1024xf32> to vector<8x1024xf32>
    %67 = vector.extract_strided_slice %66 {offsets = [0, 0], sizes = [8, 512], strides = [1, 1]} : vector<8x1024xf32> to vector<8x512xf32>
    %68 = arith.addf %67, %63 : vector<8x512xf32>
    %69 = vector.extract_strided_slice %68 {offsets = [0, 0], sizes = [8, 384], strides = [1, 1]} : vector<8x512xf32> to vector<8x384xf32>
    %70 = arith.negf %69 : vector<8x384xf32>
    %71 = math.exp %70 : vector<8x384xf32>
    %cst_29 = arith.constant 1.000000e+00 : f32
    %72 = vector.broadcast %cst_29 : f32 to vector<8x384xf32>
    %73 = arith.addf %72, %71 : vector<8x384xf32>
    %74 = arith.divf %72, %73 : vector<8x384xf32>
    %75 = vector.extract_strided_slice %74 {offsets = [0, 0], sizes = [8, 128], strides = [1, 1]} : vector<8x384xf32> to vector<8x128xf32>
    %76 = vector.extract_strided_slice %74 {offsets = [0, 128], sizes = [8, 128], strides = [1, 1]} : vector<8x384xf32> to vector<8x128xf32>
    %77 = vector.extract_strided_slice %74 {offsets = [0, 256], sizes = [8, 128], strides = [1, 1]} : vector<8x384xf32> to vector<8x128xf32>
    %78 = vector.extract_strided_slice %68 {offsets = [0, 384], sizes = [8, 128], strides = [1, 1]} : vector<8x512xf32> to vector<8x128xf32>
    %79 = math.tanh %78 : vector<8x128xf32>
    %80 = arith.mulf %76, %32 : vector<8x128xf32>
    %81 = arith.mulf %75, %79 : vector<8x128xf32>
    %82 = arith.addf %80, %81 : vector<8x128xf32>
    %83 = math.tanh %82 : vector<8x128xf32>
    %84 = arith.mulf %77, %83 : vector<8x128xf32>
    %c1_30 = arith.constant 1 : index
    %c0_31 = arith.constant 0 : index
    %c0_32 = arith.constant 0 : index
    %85 = vector.load %arg9[%c1_30, %c0_31, %c0_32] : memref<8x8x128xf32, #tpu.memory_space<vmem>>, vector<1x8x128xf32>
    %86 = vector.shape_cast %85 : vector<1x8x128xf32> to vector<8x128xf32>
    %87 = vector.shape_cast %84 : vector<8x128xf32> to vector<1x8x128xf32>
    tpu.vector_store %arg9[%c1_30, %c0_31, %c0_32], %87 {strides = array<i32>} : memref<8x8x128xf32, #tpu.memory_space<vmem>>, vector<1x8x128xf32>,
    %c6 = arith.constant 6 : index
    %c0_33 = arith.constant 0 : index
    %c0_34 = arith.constant 0 : index
    %88 = vector.load %arg8[%c6, %c0_33, %c0_34] : memref<8x8x1024xf32, #tpu.memory_space<vmem>>, vector<1x8x1024xf32>
    %89 = vector.shape_cast %88 : vector<1x8x1024xf32> to vector<8x1024xf32>
    %90 = vector.extract_strided_slice %89 {offsets = [0, 512], sizes = [8, 512], strides = [1, 1]} : vector<8x1024xf32> to vector<8x512xf32>
    %91 = arith.addf %90, %64 : vector<8x512xf32>
    %92 = vector.extract_strided_slice %91 {offsets = [0, 0], sizes = [8, 384], strides = [1, 1]} : vector<8x512xf32> to vector<8x384xf32>
    %93 = arith.negf %92 : vector<8x384xf32>
    %94 = math.exp %93 : vector<8x384xf32>
    %cst_35 = arith.constant 1.000000e+00 : f32
    %95 = vector.broadcast %cst_35 : f32 to vector<8x384xf32>
    %96 = arith.addf %95, %94 : vector<8x384xf32>
    %97 = arith.divf %95, %96 : vector<8x384xf32>
    %98 = vector.extract_strided_slice %97 {offsets = [0, 0], sizes = [8, 128], strides = [1, 1]} : vector<8x384xf32> to vector<8x128xf32>
    %99 = vector.extract_strided_slice %97 {offsets = [0, 128], sizes = [8, 128], strides = [1, 1]} : vector<8x384xf32> to vector<8x128xf32>
    %100 = vector.extract_strided_slice %97 {offsets = [0, 256], sizes = [8, 128], strides = [1, 1]} : vector<8x384xf32> to vector<8x128xf32>
    %101 = vector.extract_strided_slice %91 {offsets = [0, 384], sizes = [8, 128], strides = [1, 1]} : vector<8x512xf32> to vector<8x128xf32>
    %102 = math.tanh %101 : vector<8x128xf32>
    %103 = arith.mulf %99, %55 : vector<8x128xf32>
    %104 = arith.mulf %98, %102 : vector<8x128xf32>
    %105 = arith.addf %103, %104 : vector<8x128xf32>
    %106 = math.tanh %105 : vector<8x128xf32>
    %107 = arith.mulf %100, %106 : vector<8x128xf32>
    %c6_36 = arith.constant 6 : index
    %c0_37 = arith.constant 0 : index
    %c0_38 = arith.constant 0 : index
    %108 = vector.load %arg10[%c6_36, %c0_37, %c0_38] : memref<8x8x128xf32, #tpu.memory_space<vmem>>, vector<1x8x128xf32>
    %109 = vector.shape_cast %108 : vector<1x8x128xf32> to vector<8x128xf32>
    %110 = vector.shape_cast %107 : vector<8x128xf32> to vector<1x8x128xf32>
    tpu.vector_store %arg10[%c6_36, %c0_37, %c0_38], %110 {strides = array<i32>} : memref<8x8x128xf32, #tpu.memory_space<vmem>>, vector<1x8x128xf32>,
    %111 = tpu.concatenate %84, %107 in 1 : vector<8x128xf32>, vector<8x128xf32> -> vector<8x256xf32>
    %cst_39 = arith.constant dense<0.000000e+00> : vector<8x1024xf32>
    %112 = tpu.matmul %111, %9, %cst_39 {dimension_numbers = #tpu.dot_dimension_numbers<[1], [0], [0], [1], [0, 0, 1, 1], [], []>} : vector<8x256xf32>, vector<256x1024xf32>, vector<8x1024xf32> -> vector<8x1024xf32>
    %113 = vector.extract_strided_slice %112 {offsets = [0, 0], sizes = [8, 512], strides = [1, 1]} : vector<8x1024xf32> to vector<8x512xf32>
    %114 = vector.extract_strided_slice %112 {offsets = [0, 512], sizes = [8, 512], strides = [1, 1]} : vector<8x1024xf32> to vector<8x512xf32>
    %c2 = arith.constant 2 : index
    %c0_40 = arith.constant 0 : index
    %c0_41 = arith.constant 0 : index
    %115 = vector.load %arg8[%c2, %c0_40, %c0_41] : memref<8x8x1024xf32, #tpu.memory_space<vmem>>, vector<1x8x1024xf32>
    %116 = vector.shape_cast %115 : vector<1x8x1024xf32> to vector<8x1024xf32>
    %117 = vector.extract_strided_slice %116 {offsets = [0, 0], sizes = [8, 512], strides = [1, 1]} : vector<8x1024xf32> to vector<8x512xf32>
    %118 = arith.addf %117, %113 : vector<8x512xf32>
    %119 = vector.extract_strided_slice %118 {offsets = [0, 0], sizes = [8, 384], strides = [1, 1]} : vector<8x512xf32> to vector<8x384xf32>
    %120 = arith.negf %119 : vector<8x384xf32>
    %121 = math.exp %120 : vector<8x384xf32>
    %cst_42 = arith.constant 1.000000e+00 : f32
    %122 = vector.broadcast %cst_42 : f32 to vector<8x384xf32>
    %123 = arith.addf %122, %121 : vector<8x384xf32>
    %124 = arith.divf %122, %123 : vector<8x384xf32>
    %125 = vector.extract_strided_slice %124 {offsets = [0, 0], sizes = [8, 128], strides = [1, 1]} : vector<8x384xf32> to vector<8x128xf32>
    %126 = vector.extract_strided_slice %124 {offsets = [0, 128], sizes = [8, 128], strides = [1, 1]} : vector<8x384xf32> to vector<8x128xf32>
    %127 = vector.extract_strided_slice %124 {offsets = [0, 256], sizes = [8, 128], strides = [1, 1]} : vector<8x384xf32> to vector<8x128xf32>
    %128 = vector.extract_strided_slice %118 {offsets = [0, 384], sizes = [8, 128], strides = [1, 1]} : vector<8x512xf32> to vector<8x128xf32>
    %129 = math.tanh %128 : vector<8x128xf32>
    %130 = arith.mulf %126, %82 : vector<8x128xf32>
    %131 = arith.mulf %125, %129 : vector<8x128xf32>
    %132 = arith.addf %130, %131 : vector<8x128xf32>
    %133 = math.tanh %132 : vector<8x128xf32>
    %134 = arith.mulf %127, %133 : vector<8x128xf32>
    %c2_43 = arith.constant 2 : index
    %c0_44 = arith.constant 0 : index
    %c0_45 = arith.constant 0 : index
    %135 = vector.load %arg9[%c2_43, %c0_44, %c0_45] : memref<8x8x128xf32, #tpu.memory_space<vmem>>, vector<1x8x128xf32>
    %136 = vector.shape_cast %135 : vector<1x8x128xf32> to vector<8x128xf32>
    %137 = vector.shape_cast %134 : vector<8x128xf32> to vector<1x8x128xf32>
    tpu.vector_store %arg9[%c2_43, %c0_44, %c0_45], %137 {strides = array<i32>} : memref<8x8x128xf32, #tpu.memory_space<vmem>>, vector<1x8x128xf32>,
    %c5 = arith.constant 5 : index
    %c0_46 = arith.constant 0 : index
    %c0_47 = arith.constant 0 : index
    %138 = vector.load %arg8[%c5, %c0_46, %c0_47] : memref<8x8x1024xf32, #tpu.memory_space<vmem>>, vector<1x8x1024xf32>
    %139 = vector.shape_cast %138 : vector<1x8x1024xf32> to vector<8x1024xf32>
    %140 = vector.extract_strided_slice %139 {offsets = [0, 512], sizes = [8, 512], strides = [1, 1]} : vector<8x1024xf32> to vector<8x512xf32>
    %141 = arith.addf %140, %114 : vector<8x512xf32>
    %142 = vector.extract_strided_slice %141 {offsets = [0, 0], sizes = [8, 384], strides = [1, 1]} : vector<8x512xf32> to vector<8x384xf32>
    %143 = arith.negf %142 : vector<8x384xf32>
    %144 = math.exp %143 : vector<8x384xf32>
    %cst_48 = arith.constant 1.000000e+00 : f32
    %145 = vector.broadcast %cst_48 : f32 to vector<8x384xf32>
    %146 = arith.addf %145, %144 : vector<8x384xf32>
    %147 = arith.divf %145, %146 : vector<8x384xf32>
    %148 = vector.extract_strided_slice %147 {offsets = [0, 0], sizes = [8, 128], strides = [1, 1]} : vector<8x384xf32> to vector<8x128xf32>
    %149 = vector.extract_strided_slice %147 {offsets = [0, 128], sizes = [8, 128], strides = [1, 1]} : vector<8x384xf32> to vector<8x128xf32>
    %150 = vector.extract_strided_slice %147 {offsets = [0, 256], sizes = [8, 128], strides = [1, 1]} : vector<8x384xf32> to vector<8x128xf32>
    %151 = vector.extract_strided_slice %141 {offsets = [0, 384], sizes = [8, 128], strides = [1, 1]} : vector<8x512xf32> to vector<8x128xf32>
    %152 = math.tanh %151 : vector<8x128xf32>
    %153 = arith.mulf %149, %105 : vector<8x128xf32>
    %154 = arith.mulf %148, %152 : vector<8x128xf32>
    %155 = arith.addf %153, %154 : vector<8x128xf32>
    %156 = math.tanh %155 : vector<8x128xf32>
    %157 = arith.mulf %150, %156 : vector<8x128xf32>
    %c5_49 = arith.constant 5 : index
    %c0_50 = arith.constant 0 : index
    %c0_51 = arith.constant 0 : index
    %158 = vector.load %arg10[%c5_49, %c0_50, %c0_51] : memref<8x8x128xf32, #tpu.memory_space<vmem>>, vector<1x8x128xf32>
    %159 = vector.shape_cast %158 : vector<1x8x128xf32> to vector<8x128xf32>
    %160 = vector.shape_cast %157 : vector<8x128xf32> to vector<1x8x128xf32>
    tpu.vector_store %arg10[%c5_49, %c0_50, %c0_51], %160 {strides = array<i32>} : memref<8x8x128xf32, #tpu.memory_space<vmem>>, vector<1x8x128xf32>,
    %161 = tpu.concatenate %134, %157 in 1 : vector<8x128xf32>, vector<8x128xf32> -> vector<8x256xf32>
    %cst_52 = arith.constant dense<0.000000e+00> : vector<8x1024xf32>
    %162 = tpu.matmul %161, %9, %cst_52 {dimension_numbers = #tpu.dot_dimension_numbers<[1], [0], [0], [1], [0, 0, 1, 1], [], []>} : vector<8x256xf32>, vector<256x1024xf32>, vector<8x1024xf32> -> vector<8x1024xf32>
    %163 = vector.extract_strided_slice %162 {offsets = [0, 0], sizes = [8, 512], strides = [1, 1]} : vector<8x1024xf32> to vector<8x512xf32>
    %164 = vector.extract_strided_slice %162 {offsets = [0, 512], sizes = [8, 512], strides = [1, 1]} : vector<8x1024xf32> to vector<8x512xf32>
    %c3 = arith.constant 3 : index
    %c0_53 = arith.constant 0 : index
    %c0_54 = arith.constant 0 : index
    %165 = vector.load %arg8[%c3, %c0_53, %c0_54] : memref<8x8x1024xf32, #tpu.memory_space<vmem>>, vector<1x8x1024xf32>
    %166 = vector.shape_cast %165 : vector<1x8x1024xf32> to vector<8x1024xf32>
    %167 = vector.extract_strided_slice %166 {offsets = [0, 0], sizes = [8, 512], strides = [1, 1]} : vector<8x1024xf32> to vector<8x512xf32>
    %168 = arith.addf %167, %163 : vector<8x512xf32>
    %169 = vector.extract_strided_slice %168 {offsets = [0, 0], sizes = [8, 384], strides = [1, 1]} : vector<8x512xf32> to vector<8x384xf32>
    %170 = arith.negf %169 : vector<8x384xf32>
    %171 = math.exp %170 : vector<8x384xf32>
    %cst_55 = arith.constant 1.000000e+00 : f32
    %172 = vector.broadcast %cst_55 : f32 to vector<8x384xf32>
    %173 = arith.addf %172, %171 : vector<8x384xf32>
    %174 = arith.divf %172, %173 : vector<8x384xf32>
    %175 = vector.extract_strided_slice %174 {offsets = [0, 0], sizes = [8, 128], strides = [1, 1]} : vector<8x384xf32> to vector<8x128xf32>
    %176 = vector.extract_strided_slice %174 {offsets = [0, 128], sizes = [8, 128], strides = [1, 1]} : vector<8x384xf32> to vector<8x128xf32>
    %177 = vector.extract_strided_slice %174 {offsets = [0, 256], sizes = [8, 128], strides = [1, 1]} : vector<8x384xf32> to vector<8x128xf32>
    %178 = vector.extract_strided_slice %168 {offsets = [0, 384], sizes = [8, 128], strides = [1, 1]} : vector<8x512xf32> to vector<8x128xf32>
    %179 = math.tanh %178 : vector<8x128xf32>
    %180 = arith.mulf %176, %132 : vector<8x128xf32>
    %181 = arith.mulf %175, %179 : vector<8x128xf32>
    %182 = arith.addf %180, %181 : vector<8x128xf32>
    %183 = math.tanh %182 : vector<8x128xf32>
    %184 = arith.mulf %177, %183 : vector<8x128xf32>
    %c3_56 = arith.constant 3 : index
    %c0_57 = arith.constant 0 : index
    %c0_58 = arith.constant 0 : index
    %185 = vector.load %arg9[%c3_56, %c0_57, %c0_58] : memref<8x8x128xf32, #tpu.memory_space<vmem>>, vector<1x8x128xf32>
    %186 = vector.shape_cast %185 : vector<1x8x128xf32> to vector<8x128xf32>
    %187 = vector.shape_cast %184 : vector<8x128xf32> to vector<1x8x128xf32>
    tpu.vector_store %arg9[%c3_56, %c0_57, %c0_58], %187 {strides = array<i32>} : memref<8x8x128xf32, #tpu.memory_space<vmem>>, vector<1x8x128xf32>,
    %c4 = arith.constant 4 : index
    %c0_59 = arith.constant 0 : index
    %c0_60 = arith.constant 0 : index
    %188 = vector.load %arg8[%c4, %c0_59, %c0_60] : memref<8x8x1024xf32, #tpu.memory_space<vmem>>, vector<1x8x1024xf32>
    %189 = vector.shape_cast %188 : vector<1x8x1024xf32> to vector<8x1024xf32>
    %190 = vector.extract_strided_slice %189 {offsets = [0, 512], sizes = [8, 512], strides = [1, 1]} : vector<8x1024xf32> to vector<8x512xf32>
    %191 = arith.addf %190, %164 : vector<8x512xf32>
    %192 = vector.extract_strided_slice %191 {offsets = [0, 0], sizes = [8, 384], strides = [1, 1]} : vector<8x512xf32> to vector<8x384xf32>
    %193 = arith.negf %192 : vector<8x384xf32>
    %194 = math.exp %193 : vector<8x384xf32>
    %cst_61 = arith.constant 1.000000e+00 : f32
    %195 = vector.broadcast %cst_61 : f32 to vector<8x384xf32>
    %196 = arith.addf %195, %194 : vector<8x384xf32>
    %197 = arith.divf %195, %196 : vector<8x384xf32>
    %198 = vector.extract_strided_slice %197 {offsets = [0, 0], sizes = [8, 128], strides = [1, 1]} : vector<8x384xf32> to vector<8x128xf32>
    %199 = vector.extract_strided_slice %197 {offsets = [0, 128], sizes = [8, 128], strides = [1, 1]} : vector<8x384xf32> to vector<8x128xf32>
    %200 = vector.extract_strided_slice %197 {offsets = [0, 256], sizes = [8, 128], strides = [1, 1]} : vector<8x384xf32> to vector<8x128xf32>
    %201 = vector.extract_strided_slice %191 {offsets = [0, 384], sizes = [8, 128], strides = [1, 1]} : vector<8x512xf32> to vector<8x128xf32>
    %202 = math.tanh %201 : vector<8x128xf32>
    %203 = arith.mulf %199, %155 : vector<8x128xf32>
    %204 = arith.mulf %198, %202 : vector<8x128xf32>
    %205 = arith.addf %203, %204 : vector<8x128xf32>
    %206 = math.tanh %205 : vector<8x128xf32>
    %207 = arith.mulf %200, %206 : vector<8x128xf32>
    %c4_62 = arith.constant 4 : index
    %c0_63 = arith.constant 0 : index
    %c0_64 = arith.constant 0 : index
    %208 = vector.load %arg10[%c4_62, %c0_63, %c0_64] : memref<8x8x128xf32, #tpu.memory_space<vmem>>, vector<1x8x128xf32>
    %209 = vector.shape_cast %208 : vector<1x8x128xf32> to vector<8x128xf32>
    %210 = vector.shape_cast %207 : vector<8x128xf32> to vector<1x8x128xf32>
    tpu.vector_store %arg10[%c4_62, %c0_63, %c0_64], %210 {strides = array<i32>} : memref<8x8x128xf32, #tpu.memory_space<vmem>>, vector<1x8x128xf32>,
    %211 = tpu.concatenate %184, %207 in 1 : vector<8x128xf32>, vector<8x128xf32> -> vector<8x256xf32>
    %cst_65 = arith.constant dense<0.000000e+00> : vector<8x1024xf32>
    %212 = tpu.matmul %211, %9, %cst_65 {dimension_numbers = #tpu.dot_dimension_numbers<[1], [0], [0], [1], [0, 0, 1, 1], [], []>} : vector<8x256xf32>, vector<256x1024xf32>, vector<8x1024xf32> -> vector<8x1024xf32>
    %213 = vector.extract_strided_slice %212 {offsets = [0, 0], sizes = [8, 512], strides = [1, 1]} : vector<8x1024xf32> to vector<8x512xf32>
    %214 = vector.extract_strided_slice %212 {offsets = [0, 512], sizes = [8, 512], strides = [1, 1]} : vector<8x1024xf32> to vector<8x512xf32>
    %c4_66 = arith.constant 4 : index
    %c0_67 = arith.constant 0 : index
    %c0_68 = arith.constant 0 : index
    %215 = vector.load %arg8[%c4_66, %c0_67, %c0_68] : memref<8x8x1024xf32, #tpu.memory_space<vmem>>, vector<1x8x1024xf32>
    %216 = vector.shape_cast %215 : vector<1x8x1024xf32> to vector<8x1024xf32>
    %217 = vector.extract_strided_slice %216 {offsets = [0, 0], sizes = [8, 512], strides = [1, 1]} : vector<8x1024xf32> to vector<8x512xf32>
    %218 = arith.addf %217, %213 : vector<8x512xf32>
    %219 = vector.extract_strided_slice %218 {offsets = [0, 0], sizes = [8, 384], strides = [1, 1]} : vector<8x512xf32> to vector<8x384xf32>
    %220 = arith.negf %219 : vector<8x384xf32>
    %221 = math.exp %220 : vector<8x384xf32>
    %cst_69 = arith.constant 1.000000e+00 : f32
    %222 = vector.broadcast %cst_69 : f32 to vector<8x384xf32>
    %223 = arith.addf %222, %221 : vector<8x384xf32>
    %224 = arith.divf %222, %223 : vector<8x384xf32>
    %225 = vector.extract_strided_slice %224 {offsets = [0, 0], sizes = [8, 128], strides = [1, 1]} : vector<8x384xf32> to vector<8x128xf32>
    %226 = vector.extract_strided_slice %224 {offsets = [0, 128], sizes = [8, 128], strides = [1, 1]} : vector<8x384xf32> to vector<8x128xf32>
    %227 = vector.extract_strided_slice %224 {offsets = [0, 256], sizes = [8, 128], strides = [1, 1]} : vector<8x384xf32> to vector<8x128xf32>
    %228 = vector.extract_strided_slice %218 {offsets = [0, 384], sizes = [8, 128], strides = [1, 1]} : vector<8x512xf32> to vector<8x128xf32>
    %229 = math.tanh %228 : vector<8x128xf32>
    %230 = arith.mulf %226, %182 : vector<8x128xf32>
    %231 = arith.mulf %225, %229 : vector<8x128xf32>
    %232 = arith.addf %230, %231 : vector<8x128xf32>
    %233 = math.tanh %232 : vector<8x128xf32>
    %234 = arith.mulf %227, %233 : vector<8x128xf32>
    %c4_70 = arith.constant 4 : index
    %c0_71 = arith.constant 0 : index
    %c0_72 = arith.constant 0 : index
    %235 = vector.load %arg9[%c4_70, %c0_71, %c0_72] : memref<8x8x128xf32, #tpu.memory_space<vmem>>, vector<1x8x128xf32>
    %236 = vector.shape_cast %235 : vector<1x8x128xf32> to vector<8x128xf32>
    %237 = vector.shape_cast %234 : vector<8x128xf32> to vector<1x8x128xf32>
    tpu.vector_store %arg9[%c4_70, %c0_71, %c0_72], %237 {strides = array<i32>} : memref<8x8x128xf32, #tpu.memory_space<vmem>>, vector<1x8x128xf32>,
    %c3_73 = arith.constant 3 : index
    %c0_74 = arith.constant 0 : index
    %c0_75 = arith.constant 0 : index
    %238 = vector.load %arg8[%c3_73, %c0_74, %c0_75] : memref<8x8x1024xf32, #tpu.memory_space<vmem>>, vector<1x8x1024xf32>
    %239 = vector.shape_cast %238 : vector<1x8x1024xf32> to vector<8x1024xf32>
    %240 = vector.extract_strided_slice %239 {offsets = [0, 512], sizes = [8, 512], strides = [1, 1]} : vector<8x1024xf32> to vector<8x512xf32>
    %241 = arith.addf %240, %214 : vector<8x512xf32>
    %242 = vector.extract_strided_slice %241 {offsets = [0, 0], sizes = [8, 384], strides = [1, 1]} : vector<8x512xf32> to vector<8x384xf32>
    %243 = arith.negf %242 : vector<8x384xf32>
    %244 = math.exp %243 : vector<8x384xf32>
    %cst_76 = arith.constant 1.000000e+00 : f32
    %245 = vector.broadcast %cst_76 : f32 to vector<8x384xf32>
    %246 = arith.addf %245, %244 : vector<8x384xf32>
    %247 = arith.divf %245, %246 : vector<8x384xf32>
    %248 = vector.extract_strided_slice %247 {offsets = [0, 0], sizes = [8, 128], strides = [1, 1]} : vector<8x384xf32> to vector<8x128xf32>
    %249 = vector.extract_strided_slice %247 {offsets = [0, 128], sizes = [8, 128], strides = [1, 1]} : vector<8x384xf32> to vector<8x128xf32>
    %250 = vector.extract_strided_slice %247 {offsets = [0, 256], sizes = [8, 128], strides = [1, 1]} : vector<8x384xf32> to vector<8x128xf32>
    %251 = vector.extract_strided_slice %241 {offsets = [0, 384], sizes = [8, 128], strides = [1, 1]} : vector<8x512xf32> to vector<8x128xf32>
    %252 = math.tanh %251 : vector<8x128xf32>
    %253 = arith.mulf %249, %205 : vector<8x128xf32>
    %254 = arith.mulf %248, %252 : vector<8x128xf32>
    %255 = arith.addf %253, %254 : vector<8x128xf32>
    %256 = math.tanh %255 : vector<8x128xf32>
    %257 = arith.mulf %250, %256 : vector<8x128xf32>
    %c3_77 = arith.constant 3 : index
    %c0_78 = arith.constant 0 : index
    %c0_79 = arith.constant 0 : index
    %258 = vector.load %arg10[%c3_77, %c0_78, %c0_79] : memref<8x8x128xf32, #tpu.memory_space<vmem>>, vector<1x8x128xf32>
    %259 = vector.shape_cast %258 : vector<1x8x128xf32> to vector<8x128xf32>
    %260 = vector.shape_cast %257 : vector<8x128xf32> to vector<1x8x128xf32>
    tpu.vector_store %arg10[%c3_77, %c0_78, %c0_79], %260 {strides = array<i32>} : memref<8x8x128xf32, #tpu.memory_space<vmem>>, vector<1x8x128xf32>,
    %261 = tpu.concatenate %234, %257 in 1 : vector<8x128xf32>, vector<8x128xf32> -> vector<8x256xf32>
    %cst_80 = arith.constant dense<0.000000e+00> : vector<8x1024xf32>
    %262 = tpu.matmul %261, %9, %cst_80 {dimension_numbers = #tpu.dot_dimension_numbers<[1], [0], [0], [1], [0, 0, 1, 1], [], []>} : vector<8x256xf32>, vector<256x1024xf32>, vector<8x1024xf32> -> vector<8x1024xf32>
    %263 = vector.extract_strided_slice %262 {offsets = [0, 0], sizes = [8, 512], strides = [1, 1]} : vector<8x1024xf32> to vector<8x512xf32>
    %264 = vector.extract_strided_slice %262 {offsets = [0, 512], sizes = [8, 512], strides = [1, 1]} : vector<8x1024xf32> to vector<8x512xf32>
    %c5_81 = arith.constant 5 : index
    %c0_82 = arith.constant 0 : index
    %c0_83 = arith.constant 0 : index
    %265 = vector.load %arg8[%c5_81, %c0_82, %c0_83] : memref<8x8x1024xf32, #tpu.memory_space<vmem>>, vector<1x8x1024xf32>
    %266 = vector.shape_cast %265 : vector<1x8x1024xf32> to vector<8x1024xf32>
    %267 = vector.extract_strided_slice %266 {offsets = [0, 0], sizes = [8, 512], strides = [1, 1]} : vector<8x1024xf32> to vector<8x512xf32>
    %268 = arith.addf %267, %263 : vector<8x512xf32>
    %269 = vector.extract_strided_slice %268 {offsets = [0, 0], sizes = [8, 384], strides = [1, 1]} : vector<8x512xf32> to vector<8x384xf32>
    %270 = arith.negf %269 : vector<8x384xf32>
    %271 = math.exp %270 : vector<8x384xf32>
    %cst_84 = arith.constant 1.000000e+00 : f32
    %272 = vector.broadcast %cst_84 : f32 to vector<8x384xf32>
    %273 = arith.addf %272, %271 : vector<8x384xf32>
    %274 = arith.divf %272, %273 : vector<8x384xf32>
    %275 = vector.extract_strided_slice %274 {offsets = [0, 0], sizes = [8, 128], strides = [1, 1]} : vector<8x384xf32> to vector<8x128xf32>
    %276 = vector.extract_strided_slice %274 {offsets = [0, 128], sizes = [8, 128], strides = [1, 1]} : vector<8x384xf32> to vector<8x128xf32>
    %277 = vector.extract_strided_slice %274 {offsets = [0, 256], sizes = [8, 128], strides = [1, 1]} : vector<8x384xf32> to vector<8x128xf32>
    %278 = vector.extract_strided_slice %268 {offsets = [0, 384], sizes = [8, 128], strides = [1, 1]} : vector<8x512xf32> to vector<8x128xf32>
    %279 = math.tanh %278 : vector<8x128xf32>
    %280 = arith.mulf %276, %232 : vector<8x128xf32>
    %281 = arith.mulf %275, %279 : vector<8x128xf32>
    %282 = arith.addf %280, %281 : vector<8x128xf32>
    %283 = math.tanh %282 : vector<8x128xf32>
    %284 = arith.mulf %277, %283 : vector<8x128xf32>
    %c5_85 = arith.constant 5 : index
    %c0_86 = arith.constant 0 : index
    %c0_87 = arith.constant 0 : index
    %285 = vector.load %arg9[%c5_85, %c0_86, %c0_87] : memref<8x8x128xf32, #tpu.memory_space<vmem>>, vector<1x8x128xf32>
    %286 = vector.shape_cast %285 : vector<1x8x128xf32> to vector<8x128xf32>
    %287 = vector.shape_cast %284 : vector<8x128xf32> to vector<1x8x128xf32>
    tpu.vector_store %arg9[%c5_85, %c0_86, %c0_87], %287 {strides = array<i32>} : memref<8x8x128xf32, #tpu.memory_space<vmem>>, vector<1x8x128xf32>,
    %c2_88 = arith.constant 2 : index
    %c0_89 = arith.constant 0 : index
    %c0_90 = arith.constant 0 : index
    %288 = vector.load %arg8[%c2_88, %c0_89, %c0_90] : memref<8x8x1024xf32, #tpu.memory_space<vmem>>, vector<1x8x1024xf32>
    %289 = vector.shape_cast %288 : vector<1x8x1024xf32> to vector<8x1024xf32>
    %290 = vector.extract_strided_slice %289 {offsets = [0, 512], sizes = [8, 512], strides = [1, 1]} : vector<8x1024xf32> to vector<8x512xf32>
    %291 = arith.addf %290, %264 : vector<8x512xf32>
    %292 = vector.extract_strided_slice %291 {offsets = [0, 0], sizes = [8, 384], strides = [1, 1]} : vector<8x512xf32> to vector<8x384xf32>
    %293 = arith.negf %292 : vector<8x384xf32>
    %294 = math.exp %293 : vector<8x384xf32>
    %cst_91 = arith.constant 1.000000e+00 : f32
    %295 = vector.broadcast %cst_91 : f32 to vector<8x384xf32>
    %296 = arith.addf %295, %294 : vector<8x384xf32>
    %297 = arith.divf %295, %296 : vector<8x384xf32>
    %298 = vector.extract_strided_slice %297 {offsets = [0, 0], sizes = [8, 128], strides = [1, 1]} : vector<8x384xf32> to vector<8x128xf32>
    %299 = vector.extract_strided_slice %297 {offsets = [0, 128], sizes = [8, 128], strides = [1, 1]} : vector<8x384xf32> to vector<8x128xf32>
    %300 = vector.extract_strided_slice %297 {offsets = [0, 256], sizes = [8, 128], strides = [1, 1]} : vector<8x384xf32> to vector<8x128xf32>
    %301 = vector.extract_strided_slice %291 {offsets = [0, 384], sizes = [8, 128], strides = [1, 1]} : vector<8x512xf32> to vector<8x128xf32>
    %302 = math.tanh %301 : vector<8x128xf32>
    %303 = arith.mulf %299, %255 : vector<8x128xf32>
    %304 = arith.mulf %298, %302 : vector<8x128xf32>
    %305 = arith.addf %303, %304 : vector<8x128xf32>
    %306 = math.tanh %305 : vector<8x128xf32>
    %307 = arith.mulf %300, %306 : vector<8x128xf32>
    %c2_92 = arith.constant 2 : index
    %c0_93 = arith.constant 0 : index
    %c0_94 = arith.constant 0 : index
    %308 = vector.load %arg10[%c2_92, %c0_93, %c0_94] : memref<8x8x128xf32, #tpu.memory_space<vmem>>, vector<1x8x128xf32>
    %309 = vector.shape_cast %308 : vector<1x8x128xf32> to vector<8x128xf32>
    %310 = vector.shape_cast %307 : vector<8x128xf32> to vector<1x8x128xf32>
    tpu.vector_store %arg10[%c2_92, %c0_93, %c0_94], %310 {strides = array<i32>} : memref<8x8x128xf32, #tpu.memory_space<vmem>>, vector<1x8x128xf32>,
    %311 = tpu.concatenate %284, %307 in 1 : vector<8x128xf32>, vector<8x128xf32> -> vector<8x256xf32>
    %cst_95 = arith.constant dense<0.000000e+00> : vector<8x1024xf32>
    %312 = tpu.matmul %311, %9, %cst_95 {dimension_numbers = #tpu.dot_dimension_numbers<[1], [0], [0], [1], [0, 0, 1, 1], [], []>} : vector<8x256xf32>, vector<256x1024xf32>, vector<8x1024xf32> -> vector<8x1024xf32>
    %313 = vector.extract_strided_slice %312 {offsets = [0, 0], sizes = [8, 512], strides = [1, 1]} : vector<8x1024xf32> to vector<8x512xf32>
    %314 = vector.extract_strided_slice %312 {offsets = [0, 512], sizes = [8, 512], strides = [1, 1]} : vector<8x1024xf32> to vector<8x512xf32>
    %c6_96 = arith.constant 6 : index
    %c0_97 = arith.constant 0 : index
    %c0_98 = arith.constant 0 : index
    %315 = vector.load %arg8[%c6_96, %c0_97, %c0_98] : memref<8x8x1024xf32, #tpu.memory_space<vmem>>, vector<1x8x1024xf32>
    %316 = vector.shape_cast %315 : vector<1x8x1024xf32> to vector<8x1024xf32>
    %317 = vector.extract_strided_slice %316 {offsets = [0, 0], sizes = [8, 512], strides = [1, 1]} : vector<8x1024xf32> to vector<8x512xf32>
    %318 = arith.addf %317, %313 : vector<8x512xf32>
    %319 = vector.extract_strided_slice %318 {offsets = [0, 0], sizes = [8, 384], strides = [1, 1]} : vector<8x512xf32> to vector<8x384xf32>
    %320 = arith.negf %319 : vector<8x384xf32>
    %321 = math.exp %320 : vector<8x384xf32>
    %cst_99 = arith.constant 1.000000e+00 : f32
    %322 = vector.broadcast %cst_99 : f32 to vector<8x384xf32>
    %323 = arith.addf %322, %321 : vector<8x384xf32>
    %324 = arith.divf %322, %323 : vector<8x384xf32>
    %325 = vector.extract_strided_slice %324 {offsets = [0, 0], sizes = [8, 128], strides = [1, 1]} : vector<8x384xf32> to vector<8x128xf32>
    %326 = vector.extract_strided_slice %324 {offsets = [0, 128], sizes = [8, 128], strides = [1, 1]} : vector<8x384xf32> to vector<8x128xf32>
    %327 = vector.extract_strided_slice %324 {offsets = [0, 256], sizes = [8, 128], strides = [1, 1]} : vector<8x384xf32> to vector<8x128xf32>
    %328 = vector.extract_strided_slice %318 {offsets = [0, 384], sizes = [8, 128], strides = [1, 1]} : vector<8x512xf32> to vector<8x128xf32>
    %329 = math.tanh %328 : vector<8x128xf32>
    %330 = arith.mulf %326, %282 : vector<8x128xf32>
    %331 = arith.mulf %325, %329 : vector<8x128xf32>
    %332 = arith.addf %330, %331 : vector<8x128xf32>
    %333 = math.tanh %332 : vector<8x128xf32>
    %334 = arith.mulf %327, %333 : vector<8x128xf32>
    %c6_100 = arith.constant 6 : index
    %c0_101 = arith.constant 0 : index
    %c0_102 = arith.constant 0 : index
    %335 = vector.load %arg9[%c6_100, %c0_101, %c0_102] : memref<8x8x128xf32, #tpu.memory_space<vmem>>, vector<1x8x128xf32>
    %336 = vector.shape_cast %335 : vector<1x8x128xf32> to vector<8x128xf32>
    %337 = vector.shape_cast %334 : vector<8x128xf32> to vector<1x8x128xf32>
    tpu.vector_store %arg9[%c6_100, %c0_101, %c0_102], %337 {strides = array<i32>} : memref<8x8x128xf32, #tpu.memory_space<vmem>>, vector<1x8x128xf32>,
    %c1_103 = arith.constant 1 : index
    %c0_104 = arith.constant 0 : index
    %c0_105 = arith.constant 0 : index
    %338 = vector.load %arg8[%c1_103, %c0_104, %c0_105] : memref<8x8x1024xf32, #tpu.memory_space<vmem>>, vector<1x8x1024xf32>
    %339 = vector.shape_cast %338 : vector<1x8x1024xf32> to vector<8x1024xf32>
    %340 = vector.extract_strided_slice %339 {offsets = [0, 512], sizes = [8, 512], strides = [1, 1]} : vector<8x1024xf32> to vector<8x512xf32>
    %341 = arith.addf %340, %314 : vector<8x512xf32>
    %342 = vector.extract_strided_slice %341 {offsets = [0, 0], sizes = [8, 384], strides = [1, 1]} : vector<8x512xf32> to vector<8x384xf32>
    %343 = arith.negf %342 : vector<8x384xf32>
    %344 = math.exp %343 : vector<8x384xf32>
    %cst_106 = arith.constant 1.000000e+00 : f32
    %345 = vector.broadcast %cst_106 : f32 to vector<8x384xf32>
    %346 = arith.addf %345, %344 : vector<8x384xf32>
    %347 = arith.divf %345, %346 : vector<8x384xf32>
    %348 = vector.extract_strided_slice %347 {offsets = [0, 0], sizes = [8, 128], strides = [1, 1]} : vector<8x384xf32> to vector<8x128xf32>
    %349 = vector.extract_strided_slice %347 {offsets = [0, 128], sizes = [8, 128], strides = [1, 1]} : vector<8x384xf32> to vector<8x128xf32>
    %350 = vector.extract_strided_slice %347 {offsets = [0, 256], sizes = [8, 128], strides = [1, 1]} : vector<8x384xf32> to vector<8x128xf32>
    %351 = vector.extract_strided_slice %341 {offsets = [0, 384], sizes = [8, 128], strides = [1, 1]} : vector<8x512xf32> to vector<8x128xf32>
    %352 = math.tanh %351 : vector<8x128xf32>
    %353 = arith.mulf %349, %305 : vector<8x128xf32>
    %354 = arith.mulf %348, %352 : vector<8x128xf32>
    %355 = arith.addf %353, %354 : vector<8x128xf32>
    %356 = math.tanh %355 : vector<8x128xf32>
    %357 = arith.mulf %350, %356 : vector<8x128xf32>
    %c1_107 = arith.constant 1 : index
    %c0_108 = arith.constant 0 : index
    %c0_109 = arith.constant 0 : index
    %358 = vector.load %arg10[%c1_107, %c0_108, %c0_109] : memref<8x8x128xf32, #tpu.memory_space<vmem>>, vector<1x8x128xf32>
    %359 = vector.shape_cast %358 : vector<1x8x128xf32> to vector<8x128xf32>
    %360 = vector.shape_cast %357 : vector<8x128xf32> to vector<1x8x128xf32>
    tpu.vector_store %arg10[%c1_107, %c0_108, %c0_109], %360 {strides = array<i32>} : memref<8x8x128xf32, #tpu.memory_space<vmem>>, vector<1x8x128xf32>,
    %361 = tpu.concatenate %334, %357 in 1 : vector<8x128xf32>, vector<8x128xf32> -> vector<8x256xf32>
    %cst_110 = arith.constant dense<0.000000e+00> : vector<8x1024xf32>
    %362 = tpu.matmul %361, %9, %cst_110 {dimension_numbers = #tpu.dot_dimension_numbers<[1], [0], [0], [1], [0, 0, 1, 1], [], []>} : vector<8x256xf32>, vector<256x1024xf32>, vector<8x1024xf32> -> vector<8x1024xf32>
    %363 = vector.extract_strided_slice %362 {offsets = [0, 0], sizes = [8, 512], strides = [1, 1]} : vector<8x1024xf32> to vector<8x512xf32>
    %364 = vector.extract_strided_slice %362 {offsets = [0, 512], sizes = [8, 512], strides = [1, 1]} : vector<8x1024xf32> to vector<8x512xf32>
    %c7_111 = arith.constant 7 : index
    %c0_112 = arith.constant 0 : index
    %c0_113 = arith.constant 0 : index
    %365 = vector.load %arg8[%c7_111, %c0_112, %c0_113] : memref<8x8x1024xf32, #tpu.memory_space<vmem>>, vector<1x8x1024xf32>
    %366 = vector.shape_cast %365 : vector<1x8x1024xf32> to vector<8x1024xf32>
    %367 = vector.extract_strided_slice %366 {offsets = [0, 0], sizes = [8, 512], strides = [1, 1]} : vector<8x1024xf32> to vector<8x512xf32>
    %368 = arith.addf %367, %363 : vector<8x512xf32>
    %369 = vector.extract_strided_slice %368 {offsets = [0, 0], sizes = [8, 384], strides = [1, 1]} : vector<8x512xf32> to vector<8x384xf32>
    %370 = arith.negf %369 : vector<8x384xf32>
    %371 = math.exp %370 : vector<8x384xf32>
    %cst_114 = arith.constant 1.000000e+00 : f32
    %372 = vector.broadcast %cst_114 : f32 to vector<8x384xf32>
    %373 = arith.addf %372, %371 : vector<8x384xf32>
    %374 = arith.divf %372, %373 : vector<8x384xf32>
    %375 = vector.extract_strided_slice %374 {offsets = [0, 0], sizes = [8, 128], strides = [1, 1]} : vector<8x384xf32> to vector<8x128xf32>
    %376 = vector.extract_strided_slice %374 {offsets = [0, 128], sizes = [8, 128], strides = [1, 1]} : vector<8x384xf32> to vector<8x128xf32>
    %377 = vector.extract_strided_slice %374 {offsets = [0, 256], sizes = [8, 128], strides = [1, 1]} : vector<8x384xf32> to vector<8x128xf32>
    %378 = vector.extract_strided_slice %368 {offsets = [0, 384], sizes = [8, 128], strides = [1, 1]} : vector<8x512xf32> to vector<8x128xf32>
    %379 = math.tanh %378 : vector<8x128xf32>
    %380 = arith.mulf %376, %332 : vector<8x128xf32>
    %381 = arith.mulf %375, %379 : vector<8x128xf32>
    %382 = arith.addf %380, %381 : vector<8x128xf32>
    %383 = math.tanh %382 : vector<8x128xf32>
    %384 = arith.mulf %377, %383 : vector<8x128xf32>
    %c7_115 = arith.constant 7 : index
    %c0_116 = arith.constant 0 : index
    %c0_117 = arith.constant 0 : index
    %385 = vector.load %arg9[%c7_115, %c0_116, %c0_117] : memref<8x8x128xf32, #tpu.memory_space<vmem>>, vector<1x8x128xf32>
    %386 = vector.shape_cast %385 : vector<1x8x128xf32> to vector<8x128xf32>
    %387 = vector.shape_cast %384 : vector<8x128xf32> to vector<1x8x128xf32>
    tpu.vector_store %arg9[%c7_115, %c0_116, %c0_117], %387 {strides = array<i32>} : memref<8x8x128xf32, #tpu.memory_space<vmem>>, vector<1x8x128xf32>,
    %c0_118 = arith.constant 0 : index
    %c0_119 = arith.constant 0 : index
    %c0_120 = arith.constant 0 : index
    %388 = vector.load %arg8[%c0_118, %c0_119, %c0_120] : memref<8x8x1024xf32, #tpu.memory_space<vmem>>, vector<1x8x1024xf32>
    %389 = vector.shape_cast %388 : vector<1x8x1024xf32> to vector<8x1024xf32>
    %390 = vector.extract_strided_slice %389 {offsets = [0, 512], sizes = [8, 512], strides = [1, 1]} : vector<8x1024xf32> to vector<8x512xf32>
    %391 = arith.addf %390, %364 : vector<8x512xf32>
    %392 = vector.extract_strided_slice %391 {offsets = [0, 0], sizes = [8, 384], strides = [1, 1]} : vector<8x512xf32> to vector<8x384xf32>
    %393 = arith.negf %392 : vector<8x384xf32>
    %394 = math.exp %393 : vector<8x384xf32>
    %cst_121 = arith.constant 1.000000e+00 : f32
    %395 = vector.broadcast %cst_121 : f32 to vector<8x384xf32>
    %396 = arith.addf %395, %394 : vector<8x384xf32>
    %397 = arith.divf %395, %396 : vector<8x384xf32>
    %398 = vector.extract_strided_slice %397 {offsets = [0, 0], sizes = [8, 128], strides = [1, 1]} : vector<8x384xf32> to vector<8x128xf32>
    %399 = vector.extract_strided_slice %397 {offsets = [0, 128], sizes = [8, 128], strides = [1, 1]} : vector<8x384xf32> to vector<8x128xf32>
    %400 = vector.extract_strided_slice %397 {offsets = [0, 256], sizes = [8, 128], strides = [1, 1]} : vector<8x384xf32> to vector<8x128xf32>
    %401 = vector.extract_strided_slice %391 {offsets = [0, 384], sizes = [8, 128], strides = [1, 1]} : vector<8x512xf32> to vector<8x128xf32>
    %402 = math.tanh %401 : vector<8x128xf32>
    %403 = arith.mulf %399, %355 : vector<8x128xf32>
    %404 = arith.mulf %398, %402 : vector<8x128xf32>
    %405 = arith.addf %403, %404 : vector<8x128xf32>
    %406 = math.tanh %405 : vector<8x128xf32>
    %407 = arith.mulf %400, %406 : vector<8x128xf32>
    %c0_122 = arith.constant 0 : index
    %c0_123 = arith.constant 0 : index
    %c0_124 = arith.constant 0 : index
    %408 = vector.load %arg10[%c0_122, %c0_123, %c0_124] : memref<8x8x128xf32, #tpu.memory_space<vmem>>, vector<1x8x128xf32>
    %409 = vector.shape_cast %408 : vector<1x8x128xf32> to vector<8x128xf32>
    %410 = vector.shape_cast %407 : vector<8x128xf32> to vector<1x8x128xf32>
    tpu.vector_store %arg10[%c0_122, %c0_123, %c0_124], %410 {strides = array<i32>} : memref<8x8x128xf32, #tpu.memory_space<vmem>>, vector<1x8x128xf32>,
    %c0_125 = arith.constant 0 : index
    %c0_126 = arith.constant 0 : index
    %c0_127 = arith.constant 0 : index
    %411 = vector.load %arg9[%c0_125, %c0_126, %c0_127] : memref<8x8x128xf32, #tpu.memory_space<vmem>>, vector<8x8x128xf32>
    %412 = vector.shape_cast %411 : vector<8x8x128xf32> to vector<64x128xf32>
    %c0_128 = arith.constant 0 : index
    %c0_129 = arith.constant 0 : index
    %c0_130 = arith.constant 0 : index
    %413 = vector.load %arg10[%c0_128, %c0_129, %c0_130] : memref<8x8x128xf32, #tpu.memory_space<vmem>>, vector<8x8x128xf32>
    %414 = vector.shape_cast %413 : vector<8x8x128xf32> to vector<64x128xf32>
    %c0_131 = arith.constant 0 : index
    %c0_132 = arith.constant 0 : index
    %415 = vector.load %arg4[%c0_131, %c0_132] : memref<128x128xf32, #tpu.memory_space<vmem>>, vector<128x128xf32>
    %cst_133 = arith.constant dense<0.000000e+00> : vector<64x128xf32>
    %416 = tpu.matmul %412, %415, %cst_133 {dimension_numbers = #tpu.dot_dimension_numbers<[1], [0], [0], [1], [0, 0, 1, 1], [], []>} : vector<64x128xf32>, vector<128x128xf32>, vector<64x128xf32> -> vector<64x128xf32>
    %c0_134 = arith.constant 0 : index
    %c0_135 = arith.constant 0 : index
    %417 = vector.load %arg5[%c0_134, %c0_135] : memref<128x128xf32, #tpu.memory_space<vmem>>, vector<128x128xf32>
    %cst_136 = arith.constant dense<0.000000e+00> : vector<64x128xf32>
    %418 = tpu.matmul %414, %417, %cst_136 {dimension_numbers = #tpu.dot_dimension_numbers<[1], [0], [0], [1], [0, 0, 1, 1], [], []>} : vector<64x128xf32>, vector<128x128xf32>, vector<64x128xf32> -> vector<64x128xf32>
    %419 = arith.addf %416, %418 : vector<64x128xf32>
    %c0_137 = arith.constant 0 : index
    %c0_138 = arith.constant 0 : index
    %420 = vector.load %arg6[%c0_137, %c0_138] : memref<1x128xf32, #tpu.memory_space<vmem>>, vector<1x128xf32>
    %421 = vector.broadcast %420 : vector<1x128xf32> to vector<64x128xf32>
    %422 = arith.addf %419, %421 : vector<64x128xf32>
    %423 = vector.shape_cast %422 : vector<64x128xf32> to vector<8x8x128xf32>
    %c0_139 = arith.constant 0 : index
    %c0_140 = arith.constant 0 : index
    %c0_141 = arith.constant 0 : index
    %424 = vector.load %arg7[%c0_139, %c0_140, %c0_141] : memref<8x8x128xf32, #tpu.memory_space<vmem>>, vector<8x8x128xf32>
    tpu.vector_store %arg7[%c0_139, %c0_140, %c0_141], %423 {strides = array<i32>} : memref<8x8x128xf32, #tpu.memory_space<vmem>>, vector<8x8x128xf32>,
    return
  }
}

</mosaic_0001>

<bundles_post_ra>
// kernel: tpu_custom_call.1
= control target key start
LH: loop header
LB: loop body
LE: loop exit
PB: predicated region body
PF: predicated region fallthrough
CT: control target
= control target key end

     0   :  { %12 = vsyncpa [#allocation6], 0  ;;  %s8839_s0 = inlined_call_operand.hbm [shape: f32[8,8,16], index: 0, kind: input, shape index: {}]   ;;  %s8840_s1 = inlined_call_operand.hbm [shape: f32[16,1024], index: 1, kind: input, shape index: {}]   ;;  %s8841_s2 = inlined_call_operand.hbm [shape: f32[1,1024], index: 2, kind: input, shape index: {}]   ;;  %s8842_s3 = inlined_call_operand.hbm [shape: f32[256,1024], index: 3, kind: input, shape index: {}]   ;;  %s8843_s4 = inlined_call_operand.hbm [shape: f32[128,128], index: 4, kind: input, shape index: {}]   ;;  %s8844_s5 = inlined_call_operand.hbm [shape: f32[128,128], index: 5, kind: input, shape index: {}]   ;;  %s8845_s6 = inlined_call_operand.vmem [shape: f32[1,128], index: 6, kind: input, shape index: {}]   ;;  %s8846_s7 = inlined_call_operand.hbm [shape: f32[8,8,128], index: 7, kind: output, shape index: {}]  }
   0x1   :  { %13 = vsyncpa [#allocation9], 0 }
   0x2   :  { %14 = vsyncpa [#allocation12], 0 }
   0x3   :  { %15 = vsyncpa [#allocation15], 0 }
   0x4   :  { %16 = vsyncpa [#allocation7], 0  ;;  %s7005_s24 = smov [#allocation8]   ;;  %s6841_s28 = scalar_lea.hbm %s8840_s1, 2048 }
   0x5   :  { %s34_s25 = sshll.u32 %s7005_s24, 4  ;;  %p6842_p0 = scmp.ne.s32.totalorder %s8840_s1, %s6841_s28  ;;  %s35_s25 = int_to_ptr.vmem [resolvable:$true] %s34_s25 }
   0x6   :  { %p6845_p1 = scmp.lt.u32.totalorder %s6841_s28, %s8840_s1 }
   0x8   :  { %p6847_p2 = pnand %p6845_p1, %p6842_p0 }
   0xa   :  { %6850 = shalt.err (!%p6847_p2)
}
   0xb   :  { %s6851_s10 = scalar_lea.vmem %s35_s25, 2048  ;;  %p6856_p4 = scmp.lt.s32.totalorder %s35_s25, %s35_s25 }
   0xc   :  { %p6852_p3 = scmp.ne.s32.totalorder %s35_s25, %s6851_s10  ;;  %p6857_p5 = scmp.lt.s32.totalorder %s6851_s10, %s6851_s10 }
   0xe   :  { %p6858_p6 = por %p6857_p5, %p6856_p4 }
  0x10   :  { %p6859_p7 = pnand %p6858_p6, %p6852_p3 }
  0x12   :  { %6862 = shalt.err (!%p6859_p7)
}
  0x13   :  { %s7006_s11 = smov 1024   ;;  %s7007_s12 = smov 64  }
  0x14   :  { %40 = dma.hbm_to_vmem [thread:$0]  %s8840_s1, 2048, %s35_s25, [#allocation9], %s7006_s11, %s7006_s11, %s7007_s12  }
  0x15   :  { %s7008_s15 = smov [#allocation11]   ;;  %s7009_s17 = smov [#allocation5]  }
  0x16   :  { %s56_s16 = sshll.u32 %s7008_s15, 4  ;;  %s22_s18 = sshll.u32 %s7009_s17, 4  ;;  %s57_s16 = int_to_ptr.vmem [resolvable:$true] %s56_s16  ;;  %s23_s18 = int_to_ptr.vmem [resolvable:$true] %s22_s18 }
  0x17   :  { %s6863_s21 = scalar_lea.hbm %s8842_s3, 32768 }
  0x18   :  { %p6864_p8 = scmp.ne.s32.totalorder %s8842_s3, %s6863_s21  ;;  %p6867_p9 = scmp.lt.u32.totalorder %s6863_s21, %s8842_s3 }
  0x1a   :  { %p6869_p10 = pnand %p6867_p9, %p6864_p8 }
  0x1c   :  { %6872 = shalt.err (!%p6869_p10)
}
  0x1d   :  { %s6873_s1 = scalar_lea.vmem %s57_s16, 32768  ;;  %p6878_p12 = scmp.lt.s32.totalorder %s57_s16, %s57_s16 }
  0x1e   :  { %p6874_p11 = scmp.ne.s32.totalorder %s57_s16, %s6873_s1  ;;  %p6879_p13 = scmp.lt.s32.totalorder %s6873_s1, %s6873_s1 }
  0x20   :  { %p6880_p0 = por %p6879_p13, %p6878_p12 }
  0x22   :  { %p6881_p1 = pnand %p6880_p0, %p6874_p11 }
  0x24   :  { %6884 = shalt.err (!%p6881_p1)
}
  0x25   :  { %62 = dma.hbm_to_vmem [thread:$0]  %s8842_s3, 32768, %s57_s16, [#allocation12], %s7006_s11, %s7006_s11, %s7007_s12  }
  0x26   :  { %s6885_s30 = scalar_lea.hbm %s8839_s0, 1024 }
  0x27   :  { %p6886_p2 = scmp.ne.s32.totalorder %s8839_s0, %s6885_s30  ;;  %p6889_p3 = scmp.lt.u32.totalorder %s6885_s30, %s8839_s0 }
  0x29   :  { %p6891_p4 = pnand %p6889_p3, %p6886_p2 }
  0x2b   :  { %6894 = shalt.err (!%p6891_p4)
}
  0x2c   :  { %s6895_s14 = scalar_lea.vmem %s23_s18, 1024  ;;  %p6900_p6 = scmp.lt.s32.totalorder %s23_s18, %s23_s18 }
  0x2d   :  { %p6896_p5 = scmp.ne.s32.totalorder %s23_s18, %s6895_s14  ;;  %p6901_p7 = scmp.lt.s32.totalorder %s6895_s14, %s6895_s14 }
  0x2f   :  { %p6902_p8 = por %p6901_p7, %p6900_p6 }
  0x31   :  { %p6903_p9 = pnand %p6902_p8, %p6896_p5 }
  0x33   :  { %6906 = shalt.err (!%p6903_p9)
}
  0x34   :  { %s7010_s3 = smov 128   ;;  %s7011_s11 = smov 8  }
  0x35   :  { %28 = dma.hbm_to_vmem [thread:$0]  %s8839_s0, 1024, %s23_s18, [#allocation6], %s7010_s3, %s7010_s3, %s7011_s11  }
  0x36   :  { %s7012_s16 = smov [#allocation10]   ;;  %s7013_s19 = smov [#allocation13]  }
  0x37   :  { %s47_s17 = sshll.u32 %s7012_s16, 4  ;;  %s68_s20 = sshll.u32 %s7013_s19, 4  ;;  %s48_s17 = int_to_ptr.vmem [resolvable:$true] %s47_s17  ;;  %s69_s20 = int_to_ptr.vmem [resolvable:$true] %s68_s20 }
  0x38   :  { %s6907_s23 = scalar_lea.hbm %s8841_s2, 128 }
  0x39   :  { %p6908_p10 = scmp.ne.s32.totalorder %s8841_s2, %s6907_s23  ;;  %p6911_p11 = scmp.lt.u32.totalorder %s6907_s23, %s8841_s2 }
  0x3b   :  { %p6913_p12 = pnand %p6911_p11, %p6908_p10 }
  0x3d   :  { %6916 = shalt.err (!%p6913_p12)
}
  0x3e   :  { %s6917_s0 = scalar_lea.vmem %s48_s17, 128  ;;  %p6922_p0 = scmp.lt.s32.totalorder %s48_s17, %s48_s17 }
  0x3f   :  { %p6918_p13 = scmp.ne.s32.totalorder %s48_s17, %s6917_s0  ;;  %p6923_p1 = scmp.lt.s32.totalorder %s6917_s0, %s6917_s0 }
  0x41   :  { %p6924_p2 = por %p6923_p1, %p6922_p0 }
  0x43   :  { %p6925_p3 = pnand %p6924_p2, %p6918_p13 }
  0x45   :  { %6928 = shalt.err (!%p6925_p3)
}
  0x46   :  { %50 = dma.hbm_to_vmem [thread:$0]  %s8841_s2, 128, %s48_s17, [#allocation9]  }
  0x47   :  { %s6929_s30 = scalar_lea.hbm %s8843_s4, 2048 }
  0x48   :  { %p6930_p4 = scmp.ne.s32.totalorder %s8843_s4, %s6929_s30  ;;  %p6933_p5 = scmp.lt.u32.totalorder %s6929_s30, %s8843_s4 }
  0x4a   :  { %p6935_p6 = pnand %p6933_p5, %p6930_p4 }
  0x4c   :  { %6938 = shalt.err (!%p6935_p6)
}
  0x4d   :  { %s6939_s14 = scalar_lea.vmem %s69_s20, 2048  ;;  %p6944_p8 = scmp.lt.s32.totalorder %s69_s20, %s69_s20 }
  0x4e   :  { %p6940_p7 = scmp.ne.s32.totalorder %s69_s20, %s6939_s14  ;;  %p6945_p9 = scmp.lt.s32.totalorder %s6939_s14, %s6939_s14 }
  0x50   :  { %p6946_p10 = por %p6945_p9, %p6944_p8 }
  0x52   :  { %p6947_p11 = pnand %p6946_p10, %p6940_p7 }
  0x54   :  { %6950 = shalt.err (!%p6947_p11)
}
  0x55   :  { %74 = dma.hbm_to_vmem [thread:$0]  %s8843_s4, 2048, %s69_s20, [#allocation12], %s7010_s3, %s7010_s3, %s7011_s11  }
  0x56   :  { %s7014_s15 = smov [#allocation14]   ;;  %s6951_s21 = scalar_lea.hbm %s8844_s5, 2048 }
  0x57   :  { %s80_s16 = sshll.u32 %s7014_s15, 4  ;;  %p6952_p12 = scmp.ne.s32.totalorder %s8844_s5, %s6951_s21  ;;  %s81_s16 = int_to_ptr.vmem [resolvable:$true] %s80_s16 }
  0x58   :  { %p6955_p13 = scmp.lt.u32.totalorder %s6951_s21, %s8844_s5 }
  0x5a   :  { %p6957_p0 = pnand %p6955_p13, %p6952_p12 }
  0x5c   :  { %6960 = shalt.err (!%p6957_p0)
}
  0x5d   :  { %s6961_s1 = scalar_lea.vmem %s81_s16, 2048  ;;  %p6966_p2 = scmp.lt.s32.totalorder %s81_s16, %s81_s16 }
  0x5e   :  { %p6962_p1 = scmp.ne.s32.totalorder %s81_s16, %s6961_s1  ;;  %p6967_p3 = scmp.lt.s32.totalorder %s6961_s1, %s6961_s1 }
  0x60   :  { %p6968_p4 = por %p6967_p3, %p6966_p2 }
  0x62   :  { %p6969_p5 = pnand %p6968_p4, %p6962_p1 }
  0x64   :  { %6972 = shalt.err (!%p6969_p5)
}
  0x65   :  { %86 = dma.hbm_to_vmem [thread:$0]  %s8844_s5, 2048, %s81_s16, [#allocation15], %s7010_s3, %s7010_s3, %s7011_s11  }
  0x66   :  { %6995 = dma.done.wait [#allocation6], 1024  }
  0x67   :  { %6996 = vsyncadd [#allocation6], 4294966272 }
  0x68   :  { %6997 = dma.done.wait [#allocation9], 2176  }
  0x69   :  { %6998 = vsyncadd [#allocation9], 4294965120 }
  0x6a   :  { %6999 = dma.done.wait [#allocation12], 34816  }
  0x6b   :  { %7000 = vsyncadd [#allocation12], 4294932480 }
  0x6c   :  { %7001 = dma.done.wait [#allocation15], 2048  }
  0x6d   :  { %7002 = vsyncadd [#allocation15], 4294965248  ;;  %v8851_v0 = vmov 0.0   ;;  %v116_v1 = vld [vmem:[#allocation8 + $0x8] sm:$0xff]  ;;  %v115_v6 = vld [vmem:[#allocation8] sm:$0xff]  ;;  %vm173_vm0 = vcmask 130048  }
  0x6e   :  { %262 = vmatprep.mubr.f32.mxu1 %v8851_v0  ;;  %488 = vmatprep.mubr.f32.mxu0 %v8851_v0  ;;  %v124_v2 = vld [vmem:[#allocation8 + $0x48] sm:$0xff]  ;;  %v123_v7 = vld [vmem:[#allocation8 + $0x40] sm:$0xff]  ;;  %v118_v14 = vld [vmem:[#allocation8 + $0x18] sm:$0xff]  ;;  %s7016_s0 = smov [#allocation16]  }
  0x6f   :  { %v120_v3 = vld [vmem:[#allocation8 + $0x28] sm:$0xff]  ;;  %v4309_v4 = vpack.c.bf16 %v124_v2, %v116_v1  ;;  %v4311_v9 = vpack.c.bf16 %v123_v7, %v115_v6  ;;  %v119_v10 = vld [vmem:[#allocation8 + $0x20] sm:$0xff]  ;;  %v126_v15 = vld [vmem:[#allocation8 + $0x58] sm:$0xff]  ;;  %s4077_s18 = sshll.u32 %s7016_s0, 4  ;;  %s4078_s18 = int_to_ptr.vmem [resolvable:$true] %s4077_s18 }
  0x70   :  { %v128_v5 = vld [vmem:[#allocation8 + $0x68] sm:$0xff]  ;;  %v127_v11 = vld [vmem:[#allocation8 + $0x60] sm:$0xff]  ;;  %v715_v16 = vld [vmem:[#allocation11 + $0x8] sm:$0xff]  ;;  %v4313_v17 = vpack.c.bf16 %v126_v15, %v118_v14  ;;  %p6978_p7 = scmp.lt.s32.totalorder %s4078_s18, %s4078_s18 }
  0x71   :  { %v4317_v8 = vpack.c.bf16 %v128_v5, %v120_v3  ;;  %v7140_v12 = vld [vmem:[#allocation5] sm:$0xff]  ;;  %4310 = vmatprep.subr.bf16.mxu1 %v4309_v4  ;;  %v4319_v13 = vpack.c.bf16 %v127_v11, %v119_v10  ;;  %v723_v18 = vld [vmem:[#allocation11 + $0x48] sm:$0xff]  ;;  %v714_v23 = vld [vmem:[#allocation11] sm:$0xff] }
  0x72   :  { %4312 = vmatpush1.bf16.msra.mxu1 %v4311_v9  ;;  %v117_v19 = vld [vmem:[#allocation8 + $0x10] sm:$0xff]  ;;  %v7142_v21 = vpack.c.bf16 %v723_v18, %v715_v16  ;;  %v722_v24 = vld [vmem:[#allocation11 + $0x40] sm:$0xff]  ;;  %v7180_v47 = vld [vmem:[#allocation5 + $0x18] sm:$0xff] }
  0x73   :  { %4318 = vmatprep.subr.bf16.mxu0 %v4317_v8  ;;  %v125_v20 = vld [vmem:[#allocation8 + $0x50] sm:$0xff]  ;;  %4314 = vmatprep.subr.bf16.mxu1 %v4313_v17  ;;  %v7144_v25 = vpack.c.bf16 %v722_v24, %v714_v23  ;;  %v730_v28 = vld [vmem:[#allocation11 + $0x80] sm:$0xff]  ;;  %v122_v49 = vld [vmem:[#allocation8 + $0x38] sm:$0xff] }
  0x74   :  { %4320 = vmatpush1.bf16.msra.mxu0 %v4319_v13  ;;  %9119 = vst [vmem:[#allocation22_spill] sm:$0xff] %v7142_v21  ;;  %v4315_v22 = vpack.c.bf16 %v125_v20, %v117_v19  ;;  %v731_v26 = vld [vmem:[#allocation11 + $0x88] sm:$0xff]  ;;  %v738_v30 = vld [vmem:[#allocation11 + $0xc0] sm:$0xff]  ;;  %v130_v50 = vld [vmem:[#allocation8 + $0x78] sm:$0xff] }
  0x75   :  { %9120 = vst [vmem:[#allocation23_spill] sm:$0xff] %v7144_v25  ;;  %v739_v27 = vld [vmem:[#allocation11 + $0xc8] sm:$0xff]  ;;  %4092 = vmatmul.mubr.msk.f32.vlgmr.msra.gmra.mrb[0].mxu1 %vm173_vm0, %v7140_v12  ;;  %4326 = vmatprep.subr.bf16.mxu0 %v7142_v21  ;;  %v7153_v32 = vld [vmem:[#allocation5 + $0x8] sm:$0xff]  ;;  %v7157_v34 = vpack.c.bf16 %v738_v30, %v730_v28  ;;  %v4321_v54 = vpack.c.bf16 %v130_v50, %v122_v49  ;;  %v7194_v57 = vld [vmem:[#allocation5 + $0x20] sm:$0xff] }
  0x76   :  { %v7149_v29 = vpack.c.bf16 %v739_v27, %v731_v26  ;;  %v747_v31 = vld [vmem:[#allocation11 + $0x108] sm:$0xff]  ;;  %4316 = vmatpush1.bf16.msra.mxu1 %v4315_v22  ;;  %268 = vmatprep.mubr.f32.mxu1 %v8851_v0  ;;  %v746_v36 = vld [vmem:[#allocation11 + $0x100] sm:$0xff]  ;;  %v7236_v16 = vld [vmem:[#allocation5 + $0x38] sm:$0xff] }
  0x77   :  { %4108 = vmatmul.mubr.msk.f32.vlgmr.msra.gmra.mrb[0].mxu0 %vm173_vm0, %v7140_v12  ;;  %v755_v33 = vld [vmem:[#allocation11 + $0x148] sm:$0xff]  ;;  %9122 = vst [vmem:[#allocation25_spill] sm:$0xff] %v7157_v34  ;;  %v754_v37 = vld [vmem:[#allocation11 + $0x140] sm:$0xff]  ;;  %4322 = vmatprep.subr.bf16.mxu1 %v4321_v54  ;;  %v717_v24 = vld [vmem:[#allocation11 + $0x18] sm:$0xff] }
  0x78   :  { %9121 = vst [vmem:[#allocation24_spill] sm:$0xff] %v7149_v29  ;;  %4328 = vmatpush1.bf16.msra.mxu0 %v7144_v25  ;;  %v7160_v35 = vpack.c.bf16 %v755_v33, %v747_v31  ;;  %494 = vmatprep.mubr.f32.mxu0 %v8851_v0  ;;  %v763_v38 = vld [vmem:[#allocation11 + $0x188] sm:$0xff]  ;;  %v7171_v41 = vpack.c.bf16 %v754_v37, %v746_v36  ;;  %v762_v43 = vld [vmem:[#allocation11 + $0x180] sm:$0xff]  ;;  %v725_v26 = vld [vmem:[#allocation11 + $0x58] sm:$0xff] }
  0x79   :  { %4330 = vmatprep.subr.bf16.mxu0 %v7149_v29  ;;  %4093 = vmatmul.mubr.msk.f32.gmra.mrb[2].mxu1 %vm173_vm0, %v7153_v32  ;;  %v771_v39 = vld [vmem:[#allocation11 + $0x1c8] sm:$0xff]  ;;  %v770_v44 = vld [vmem:[#allocation11 + $0x1c0] sm:$0xff]  ;;  %v7253_v33 = vpack.c.bf16 %v725_v26, %v717_v24 }
  0x7a   :  { %9123 = vst [vmem:[#allocation26_spill] sm:$0xff] %v7160_v35  ;;  %274 = vmatprep.mubr.f32.mxu1 %v8851_v0  ;;  %v7166_v40 = vld [vmem:[#allocation5 + $0x10] sm:$0xff]  ;;  %9124 = vst [vmem:[#allocation27_spill] sm:$0xff] %v7171_v41  ;;  %v7175_v42 = vpack.c.bf16 %v771_v39, %v763_v38  ;;  %v7185_v48 = vpack.c.bf16 %v770_v44, %v762_v43  ;;  %v778_v52 = vld [vmem:[#allocation11 + $0x200] sm:$0xff] }
  0x7b   :  { %4109 = vmatmul.mubr.msk.f32.gmra.mrb[2].mxu0 %vm173_vm0, %v7153_v32  ;;  %v779_v45 = vld [vmem:[#allocation11 + $0x208] sm:$0xff]  ;;  %v786_v53 = vld [vmem:[#allocation11 + $0x240] sm:$0xff]  ;;  %9137 = vst [vmem:[#allocation40_spill] sm:$0xff] %v7253_v33 }
  0x7c   :  { %4332 = vmatpush1.bf16.msra.mxu0 %v7157_v34  ;;  %500 = vmatprep.mubr.f32.mxu0 %v8851_v0  ;;  %9125 = vst [vmem:[#allocation28_spill] sm:$0xff] %v7175_v42  ;;  %v787_v46 = vld [vmem:[#allocation11 + $0x248] sm:$0xff]  ;;  %9126 = vst [vmem:[#allocation29_spill] sm:$0xff] %v7185_v48  ;;  %v7197_v58 = vpack.c.bf16 %v786_v53, %v778_v52  ;;  %v794_v60 = vld [vmem:[#allocation11 + $0x280] sm:$0xff] }
  0x7d   :  { %4334 = vmatprep.subr.bf16.mxu0 %v7160_v35  ;;  %4094 = vmatmul.mubr.msk.f32.gmra.mrb[4].mxu1 %vm173_vm0, %v7166_v40  ;;  %v7189_v51 = vpack.c.bf16 %v787_v46, %v779_v45  ;;  %v795_v55 = vld [vmem:[#allocation11 + $0x288] sm:$0xff]  ;;  %v802_v61 = vld [vmem:[#allocation11 + $0x2c0] sm:$0xff] }
  0x7e   :  { %280 = vmatprep.mubr.f32.mxu1 %v8851_v0  ;;  %v803_v56 = vld [vmem:[#allocation11 + $0x2c8] sm:$0xff]  ;;  %9128 = vst [vmem:[#allocation31_spill] sm:$0xff] %v7197_v58  ;;  %v7208_v1 = vld [vmem:[#allocation5 + $0x28] sm:$0xff]  ;;  %v7211_v2 = vpack.c.bf16 %v802_v61, %v794_v60 }
  0x7f   :  { %4110 = vmatmul.mubr.msk.f32.gmra.mrb[4].mxu0 %vm173_vm0, %v7166_v40  ;;  %9127 = vst [vmem:[#allocation30_spill] sm:$0xff] %v7189_v51  ;;  %v7200_v59 = vpack.c.bf16 %v803_v56, %v795_v55  ;;  %v811_v62 = vld [vmem:[#allocation11 + $0x308] sm:$0xff]  ;;  %v810_v4 = vld [vmem:[#allocation11 + $0x300] sm:$0xff] }
  0x80   :  { %4336 = vmatpush1.bf16.msra.mxu0 %v7171_v41  ;;  %506 = vmatprep.mubr.f32.mxu0 %v8851_v0  ;;  %v819_v63 = vld [vmem:[#allocation11 + $0x348] sm:$0xff]  ;;  %9130 = vst [vmem:[#allocation33_spill] sm:$0xff] %v7211_v2  ;;  %v818_v5 = vld [vmem:[#allocation11 + $0x340] sm:$0xff] }
  0x81   :  { %4338 = vmatprep.subr.bf16.mxu0 %v7175_v42  ;;  %4095 = vmatmul.mubr.msk.f32.gmra.mrb[6].mxu1 %vm173_vm0, %v7180_v47  ;;  %9129 = vst [vmem:[#allocation32_spill] sm:$0xff] %v7200_v59  ;;  %v7214_v3 = vpack.c.bf16 %v819_v63, %v811_v62  ;;  %v827_v6 = vld [vmem:[#allocation11 + $0x388] sm:$0xff]  ;;  %v7225_v9 = vpack.c.bf16 %v818_v5, %v810_v4  ;;  %v826_v11 = vld [vmem:[#allocation11 + $0x380] sm:$0xff] }
  0x82   :  { %286 = vmatprep.mubr.f32.mxu1 %v8851_v0  ;;  %v835_v7 = vld [vmem:[#allocation11 + $0x3c8] sm:$0xff]  ;;  %v834_v13 = vld [vmem:[#allocation11 + $0x3c0] sm:$0xff] }
  0x83   :  { %4111 = vmatmul.mubr.msk.f32.gmra.mrb[6].mxu0 %vm173_vm0, %v7180_v47  ;;  %9131 = vst [vmem:[#allocation34_spill] sm:$0xff] %v7214_v3  ;;  %v7222_v8 = vld [vmem:[#allocation5 + $0x30] sm:$0xff]  ;;  %9132 = vst [vmem:[#allocation35_spill] sm:$0xff] %v7225_v9  ;;  %v7228_v10 = vpack.c.bf16 %v835_v7, %v827_v6  ;;  %v7239_v17 = vpack.c.bf16 %v834_v13, %v826_v11  ;;  %v842_v20 = vld [vmem:[#allocation11 + $0x400] sm:$0xff] }
  0x84   :  { %4340 = vmatpush1.bf16.msra.mxu0 %v7185_v48  ;;  %512 = vmatprep.mubr.f32.mxu0 %v8851_v0  ;;  %v843_v14 = vld [vmem:[#allocation11 + $0x408] sm:$0xff]  ;;  %v850_v23 = vld [vmem:[#allocation11 + $0x440] sm:$0xff] }
  0x85   :  { %4342 = vmatprep.subr.bf16.mxu0 %v7189_v51  ;;  %4096 = vmatmul.mubr.msk.f32.gmra.mrb[8].mxu1 %vm173_vm0, %v7194_v57  ;;  %9133 = vst [vmem:[#allocation36_spill] sm:$0xff] %v7228_v10  ;;  %v851_v15 = vld [vmem:[#allocation11 + $0x448] sm:$0xff]  ;;  %9134 = vst [vmem:[#allocation37_spill] sm:$0xff] %v7239_v17  ;;  %v7251_v31 = vpack.c.bf16 %v850_v23, %v842_v20  ;;  %v858_v37 = vld [vmem:[#allocation11 + $0x480] sm:$0xff] }
  0x86   :  { %292 = vmatprep.mubr.f32.mxu1 %v8851_v0  ;;  %v121_v18 = vld [vmem:[#allocation8 + $0x30] sm:$0xff]  ;;  %v7242_v22 = vpack.c.bf16 %v851_v15, %v843_v14  ;;  %v866_v38 = vld [vmem:[#allocation11 + $0x4c0] sm:$0xff] }
  0x87   :  { %4112 = vmatmul.mubr.msk.f32.gmra.mrb[8].mxu0 %vm173_vm0, %v7194_v57  ;;  %v129_v19 = vld [vmem:[#allocation8 + $0x70] sm:$0xff]  ;;  %9136 = vst [vmem:[#allocation39_spill] sm:$0xff] %v7251_v31  ;;  %v7265_v44 = vpack.c.bf16 %v866_v38, %v858_v37  ;;  %v874_v46 = vld [vmem:[#allocation11 + $0x500] sm:$0xff] }
  0x88   :  { %4344 = vmatpush1.bf16.msra.mxu0 %v7197_v58  ;;  %518 = vmatprep.mubr.f32.mxu0 %v8851_v0  ;;  %9135 = vst [vmem:[#allocation38_spill] sm:$0xff] %v7242_v22  ;;  %v859_v27 = vld [vmem:[#allocation11 + $0x488] sm:$0xff]  ;;  %v4323_v30 = vpack.c.bf16 %v129_v19, %v121_v18  ;;  %v882_v49 = vld [vmem:[#allocation11 + $0x540] sm:$0xff] }
  0x89   :  { %4346 = vmatprep.subr.bf16.mxu0 %v7200_v59  ;;  %4097 = vmatmul.mubr.msk.f32.gmra.mrb[10].mxu1 %vm173_vm0, %v7208_v1  ;;  %v867_v28 = vld [vmem:[#allocation11 + $0x4c8] sm:$0xff]  ;;  %9139 = vst [vmem:[#allocation42_spill] sm:$0xff] %v7265_v44  ;;  %v7275_v53 = vpack.c.bf16 %v882_v49, %v874_v46  ;;  %v890_v55 = vld [vmem:[#allocation11 + $0x580] sm:$0xff] }
  0x8a   :  { %298 = vmatprep.mubr.f32.mxu1 %v8851_v0  ;;  %v7256_v36 = vpack.c.bf16 %v867_v28, %v859_v27  ;;  %v875_v39 = vld [vmem:[#allocation11 + $0x508] sm:$0xff]  ;;  %v898_v56 = vld [vmem:[#allocation11 + $0x5c0] sm:$0xff] }
  0x8b   :  { %4113 = vmatmul.mubr.msk.f32.gmra.mrb[10].mxu0 %vm173_vm0, %v7208_v1  ;;  %v883_v43 = vld [vmem:[#allocation11 + $0x548] sm:$0xff]  ;;  %9141 = vst [vmem:[#allocation44_spill] sm:$0xff] %v7275_v53  ;;  %v7284_v62 = vpack.c.bf16 %v898_v56, %v890_v55  ;;  %v906_v4 = vld [vmem:[#allocation11 + $0x600] sm:$0xff] }
  0x8c   :  { %4348 = vmatpush1.bf16.msra.mxu0 %v7211_v2  ;;  %524 = vmatprep.mubr.f32.mxu0 %v8851_v0  ;;  %9138 = vst [vmem:[#allocation41_spill] sm:$0xff] %v7256_v36  ;;  %v7269_v45 = vpack.c.bf16 %v883_v43, %v875_v39  ;;  %v891_v50 = vld [vmem:[#allocation11 + $0x588] sm:$0xff]  ;;  %v914_v5 = vld [vmem:[#allocation11 + $0x640] sm:$0xff] }
  0x8d   :  { %4350 = vmatprep.subr.bf16.mxu0 %v7214_v3  ;;  %4098 = vmatmul.mubr.msk.f32.gmra.mrb[12].mxu1 %vm173_vm0, %v7222_v8  ;;  %v899_v52 = vld [vmem:[#allocation11 + $0x5c8] sm:$0xff]  ;;  %9143 = vst [vmem:[#allocation46_spill] sm:$0xff] %v7284_v62  ;;  %v7293_v11 = vpack.c.bf16 %v914_v5, %v906_v4  ;;  %v922_v14 = vld [vmem:[#allocation11 + $0x680] sm:$0xff]  ;;  %v741_v4 = vld [vmem:[#allocation11 + $0xd8] sm:$0xff] }
  0x8e   :  { %304 = vmatprep.mubr.f32.mxu1 %v8851_v0  ;;  %9140 = vst [vmem:[#allocation43_spill] sm:$0xff] %v7269_v45  ;;  %v7278_v54 = vpack.c.bf16 %v899_v52, %v891_v50  ;;  %v907_v60 = vld [vmem:[#allocation11 + $0x608] sm:$0xff]  ;;  %v930_v15 = vld [vmem:[#allocation11 + $0x6c0] sm:$0xff]  ;;  %v716_v50 = vld [vmem:[#allocation11 + $0x10] sm:$0xff] }
  0x8f   :  { %4114 = vmatmul.mubr.msk.f32.gmra.mrb[12].mxu0 %vm173_vm0, %v7222_v8  ;;  %v915_v61 = vld [vmem:[#allocation11 + $0x648] sm:$0xff]  ;;  %9145 = vst [vmem:[#allocation48_spill] sm:$0xff] %v7293_v11  ;;  %v7302_v20 = vpack.c.bf16 %v930_v15, %v922_v14  ;;  %v938_v24 = vld [vmem:[#allocation11 + $0x700] sm:$0xff]  ;;  %v724_v52 = vld [vmem:[#allocation11 + $0x50] sm:$0xff] }
  0x90   :  { %4352 = vmatpush1.bf16.msra.mxu0 %v7225_v9  ;;  %530 = vmatprep.mubr.f32.mxu0 %v8851_v0  ;;  %9142 = vst [vmem:[#allocation45_spill] sm:$0xff] %v7278_v54  ;;  %v7287_v63 = vpack.c.bf16 %v915_v61, %v907_v60  ;;  %v923_v6 = vld [vmem:[#allocation11 + $0x688] sm:$0xff]  ;;  %v946_v26 = vld [vmem:[#allocation11 + $0x740] sm:$0xff]  ;;  %v733_v61 = vld [vmem:[#allocation11 + $0x98] sm:$0xff] }
  0x91   :  { %4354 = vmatprep.subr.bf16.mxu0 %v7228_v10  ;;  %4099 = vmatmul.mubr.msk.f32.gmra.mrb[14].mxu1 %vm173_vm0, %v7236_v16  ;;  %v931_v7 = vld [vmem:[#allocation11 + $0x6c8] sm:$0xff]  ;;  %9147 = vst [vmem:[#allocation50_spill] sm:$0xff] %v7302_v20  ;;  %v954_v38 = vld [vmem:[#allocation11 + $0x780] sm:$0xff]  ;;  %v7333_v15 = vpack.c.bf16 %v741_v4, %v733_v61 }
  0x92   :  { %375 = vmatprep.mubr.f32.mxu1 %v8851_v0  ;;  %9144 = vst [vmem:[#allocation47_spill] sm:$0xff] %v7287_v63  ;;  %v7296_v13 = vpack.c.bf16 %v931_v7, %v923_v6  ;;  %v939_v18 = vld [vmem:[#allocation11 + $0x708] sm:$0xff]  ;;  %v962_v39 = vld [vmem:[#allocation11 + $0x7c0] sm:$0xff]  ;;  %v7328_v7 = vpack.c.bf16 %v724_v52, %v716_v50 }
  0x93   :  { %4115 = vmatmul.mubr.msk.f32.gmra.mrb[14].mxu0 %vm173_vm0, %v7236_v16  ;;  %v947_v19 = vld [vmem:[#allocation11 + $0x748] sm:$0xff]  ;;  %v7320_v49 = vpack.c.bf16 %v962_v39, %v954_v38  ;;  %v718_v55 = vld [vmem:[#allocation11 + $0x20] sm:$0xff]  ;;  %9155 = vst [vmem:[#allocation58_spill] sm:$0xff] %v7333_v15  ;;  %v757_v38 = vld [vmem:[#allocation11 + $0x158] sm:$0xff] }
  0x94   :  { %4356 = vmatpush1.bf16.msra.mxu0 %v7239_v17  ;;  %1034 = vmatprep.mubr.f32.mxu0 %v8851_v0  ;;  %9146 = vst [vmem:[#allocation49_spill] sm:$0xff] %v7296_v13  ;;  %v7305_v23 = vpack.c.bf16 %v947_v19, %v939_v18  ;;  %v955_v27 = vld [vmem:[#allocation11 + $0x788] sm:$0xff]  ;;  %v726_v60 = vld [vmem:[#allocation11 + $0x60] sm:$0xff]  ;;  %9153 = vst [vmem:[#allocation56_spill] sm:$0xff] %v7328_v7 }
  0x95   :  { %4358 = vmatprep.subr.bf16.mxu0 %v7242_v22  ;;  %4100 = vmatmul.mubr.msk.f32.vlgmr.msra.gmra.mrb[16].mxu1 %vm173_vm0, %v7140_v12  ;;  %v963_v28 = vld [vmem:[#allocation11 + $0x7c8] sm:$0xff]  ;;  %9151 = vst [vmem:[#allocation54_spill] sm:$0xff] %v7320_v49  ;;  %v7331_v14 = vpack.c.bf16 %v726_v60, %v718_v55  ;;  %v732_v18 = vld [vmem:[#allocation11 + $0x90] sm:$0xff]  ;;  %v750_v61 = vld [vmem:[#allocation11 + $0x120] sm:$0xff] }
  0x96   :  { %4324 = vmatpush1.bf16.msra.mxu1 %v4323_v30  ;;  %381 = vmatprep.mubr.f32.mxu1 %v8851_v0  ;;  %9148 = vst [vmem:[#allocation51_spill] sm:$0xff] %v7305_v23  ;;  %v7311_v30 = vpack.c.bf16 %v946_v26, %v938_v24  ;;  %v7314_v37 = vpack.c.bf16 %v963_v28, %v955_v27  ;;  %v719_v43 = vld [vmem:[#allocation11 + $0x28] sm:$0xff]  ;;  %v740_v19 = vld [vmem:[#allocation11 + $0xd0] sm:$0xff]  ;;  %v734_v24 = vld [vmem:[#allocation11 + $0xa0] sm:$0xff] }
  0x97   :  { %4390 = vmatprep.subr.bf16.mxu1 %v7253_v33  ;;  %v727_v46 = vld [vmem:[#allocation11 + $0x68] sm:$0xff]  ;;  %9154 = vst [vmem:[#allocation57_spill] sm:$0xff] %v7331_v14  ;;  %v742_v27 = vld [vmem:[#allocation11 + $0xe0] sm:$0xff]  ;;  %v749_v28 = vld [vmem:[#allocation11 + $0x118] sm:$0xff] }
  0x98   :  { %4360 = vmatpush1.bf16.msra.mxu0 %v7251_v31  ;;  %9149 = vst [vmem:[#allocation52_spill] sm:$0xff] %v7311_v30  ;;  %9150 = vst [vmem:[#allocation53_spill] sm:$0xff] %v7314_v37  ;;  %v7323_v56 = vpack.c.bf16 %v727_v46, %v719_v43  ;;  %v735_v5 = vld [vmem:[#allocation11 + $0xa8] sm:$0xff]  ;;  %v7342_v46 = vpack.c.bf16 %v740_v19, %v732_v18  ;;  %v7346_v50 = vpack.c.bf16 %v742_v27, %v734_v24  ;;  %v748_v55 = vld [vmem:[#allocation11 + $0x110] sm:$0xff] }
  0x99   :  { %4362 = vmatprep.subr.bf16.mxu0 %v7256_v36  ;;  %4101 = vmatmul.mubr.msk.f32.gmra.mrb[18].mxu1 %vm173_vm0, %v7153_v32  ;;  %v743_v6 = vld [vmem:[#allocation11 + $0xe8] sm:$0xff]  ;;  %v7348_v52 = vpack.c.bf16 %v757_v38, %v749_v28  ;;  %v756_v60 = vld [vmem:[#allocation11 + $0x150] sm:$0xff]  ;;  %v758_v4 = vld [vmem:[#allocation11 + $0x160] sm:$0xff] }
  0x9a   :  { %387 = vmatprep.mubr.f32.mxu1 %v8851_v0  ;;  %9152 = vst [vmem:[#allocation55_spill] sm:$0xff] %v7323_v56  ;;  %v7336_v26 = vpack.c.bf16 %v743_v6, %v735_v5  ;;  %v751_v39 = vld [vmem:[#allocation11 + $0x128] sm:$0xff]  ;;  %9157 = vst [vmem:[#allocation60_spill] sm:$0xff] %v7342_v46  ;;  %v765_v5 = vld [vmem:[#allocation11 + $0x198] sm:$0xff]  ;;  %v7358_v24 = vpack.c.bf16 %v756_v60, %v748_v55  ;;  %v7363_v27 = vpack.c.bf16 %v758_v4, %v750_v61  ;;  %v9166_v4 = vmov 0.0  }
  0x9b   :  { %v759_v43 = vld [vmem:[#allocation11 + $0x168] sm:$0xff]  ;;  %9158 = vst [vmem:[#allocation61_spill] sm:$0xff] %v7346_v50  ;;  %9159 = vst [vmem:[#allocation62_spill] sm:$0xff] %v7348_v52  ;;  %v773_v6 = vld [vmem:[#allocation11 + $0x1d8] sm:$0xff] }
  0x9c   :  { %4364 = vmatpush1.bf16.msra.mxu0 %v7265_v44  ;;  %9156 = vst [vmem:[#allocation59_spill] sm:$0xff] %v7336_v26  ;;  %v767_v18 = vld [vmem:[#allocation11 + $0x1a8] sm:$0xff]  ;;  %9161 = vst [vmem:[#allocation64_spill] sm:$0xff] %v7358_v24  ;;  %v7365_v28 = vpack.c.bf16 %v773_v6, %v765_v5  ;;  %v764_v38 = vld [vmem:[#allocation11 + $0x190] sm:$0xff] }
  0x9d   :  { %4366 = vmatprep.subr.bf16.mxu0 %v7269_v45  ;;  %4102 = vmatmul.mubr.msk.f32.gmra.mrb[20].mxu1 %vm173_vm0, %v7166_v40  ;;  %v775_v19 = vld [vmem:[#allocation11 + $0x1e8] sm:$0xff]  ;;  %9162 = vst [vmem:[#allocation65_spill] sm:$0xff] %v7363_v27  ;;  %v781_v55 = vld [vmem:[#allocation11 + $0x218] sm:$0xff] }
  0x9e   :  { %393 = vmatprep.mubr.f32.mxu1 %v8851_v0  ;;  %9163 = vst [vmem:[#allocation66_spill] sm:$0xff] %v7365_v28  ;;  %v789_v60 = vld [vmem:[#allocation11 + $0x258] sm:$0xff] }
  0x9f   :  { %v7380_v6 = vpack.c.bf16 %v789_v60, %v781_v55  ;;  %v804_v55 = vld [vmem:[#allocation11 + $0x2d0] sm:$0xff]  ;;  %v798_v60 = vld [vmem:[#allocation11 + $0x2a0] sm:$0xff] }
  0xa0   :  { %4368 = vmatpush1.bf16.msra.mxu0 %v7275_v53 }
  0xa1   :  { %4370 = vmatprep.subr.bf16.mxu0 %v7278_v54  ;;  %4103 = vmatmul.mubr.msk.f32.gmra.mrb[22].mxu1 %vm173_vm0, %v7180_v47  ;;  %9168 = vst [vmem:[#allocation70_spill] sm:$0xff] %v7380_v6 }
  0xa2   :  { %399 = vmatprep.mubr.f32.mxu1 %v8851_v0 }
  0xa4   :  { %4372 = vmatpush1.bf16.msra.mxu0 %v7284_v62 }
  0xa5   :  { %4374 = vmatprep.subr.bf16.mxu0 %v7287_v63  ;;  %4104 = vmatmul.mubr.msk.f32.gmra.mrb[24].mxu1 %vm173_vm0, %v7194_v57 }
  0xa6   :  { %405 = vmatprep.mubr.f32.mxu1 %v8851_v0 }
  0xa8   :  { %4376 = vmatpush1.bf16.msra.mxu0 %v7293_v11 }
  0xa9   :  { %4378 = vmatprep.subr.bf16.mxu0 %v7296_v13  ;;  %4105 = vmatmul.mubr.msk.f32.gmra.mrb[26].mxu1 %vm173_vm0, %v7208_v1 }
  0xaa   :  { %411 = vmatprep.mubr.f32.mxu1 %v8851_v0 }
  0xac   :  { %4380 = vmatpush1.bf16.msra.mxu0 %v7302_v20 }
  0xad   :  { %4382 = vmatprep.subr.bf16.mxu0 %v7305_v23  ;;  %4106 = vmatmul.mubr.msk.f32.gmra.mrb[28].mxu1 %vm173_vm0, %v7222_v8 }
  0xae   :  { %417 = vmatprep.mubr.f32.mxu1 %v8851_v0 }
  0xb0   :  { %4384 = vmatpush1.bf16.msra.mxu0 %v7311_v30 }
  0xb1   :  { %4386 = vmatprep.subr.bf16.mxu0 %v7314_v37  ;;  %4107 = vmatmul.mubr.msk.f32.gmra.mrb[30].mxu1 %vm173_vm0, %v7236_v16 }
  0xb2   :  { %601 = vmatprep.mubr.f32.mxu1 %v8851_v0 }
  0xb4   :  { %4388 = vmatpush1.bf16.msra.mxu0 %v7320_v49 }
  0xb5   :  { %4454 = vmatprep.subr.bf16.mxu0 %v7323_v56  ;;  %4116 = vmatmul.mubr.msk.f32.vlgmr.msra.gmra.mrb[32].mxu1 %vm173_vm0, %v7140_v12  ;;  %v7351_v12 = vpack.c.bf16 %v759_v43, %v751_v39  ;;  %v772_v39 = vld [vmem:[#allocation11 + $0x1d0] sm:$0xff]  ;;  %v766_v43 = vld [vmem:[#allocation11 + $0x1a0] sm:$0xff] }
  0xb6   :  { %4392 = vmatpush1.bf16.msra.mxu1 %v7328_v7  ;;  %607 = vmatprep.mubr.f32.mxu1 %v8851_v0  ;;  %v7373_v61 = vpack.c.bf16 %v772_v39, %v764_v38  ;;  %v797_v38 = vld [vmem:[#allocation11 + $0x298] sm:$0xff] }
  0xb7   :  { %1035 = vmatmul.mubr.f32.vlgmr.msra.gmra.mrb[16].mxu0 %v8851_v0  ;;  %4394 = vmatprep.subr.bf16.mxu1 %v7333_v15  ;;  %9160 = vst [vmem:[#allocation63_spill] sm:$0xff] %v7351_v12  ;;  %v805_v39 = vld [vmem:[#allocation11 + $0x2d8] sm:$0xff] }
  0xb8   :  { %4456 = vmatpush1.bf16.msra.mxu0 %v7331_v14  ;;  %1176 = vmatprep.mubr.f32.mxu0 %v8851_v0  ;;  %v783_v14 = vld [vmem:[#allocation11 + $0x228] sm:$0xff]  ;;  %9165 = vst [vmem:[#allocation68_spill] sm:$0xff] %v7373_v61 }
  0xb9   :  { %4458 = vmatprep.subr.bf16.mxu0 %v7336_v26  ;;  %4117 = vmatmul.mubr.msk.f32.gmra.mrb[34].mxu1 %vm173_vm0, %v7153_v32  ;;  %v7368_v32 = vpack.c.bf16 %v775_v19, %v767_v18  ;;  %v774_v26 = vld [vmem:[#allocation11 + $0x1e0] sm:$0xff]  ;;  %v780_v18 = vld [vmem:[#allocation11 + $0x210] sm:$0xff] }
  0xba   :  { %4396 = vmatpush1.bf16.msra.mxu1 %v7342_v46  ;;  %613 = vmatprep.mubr.f32.mxu1 %v8851_v0  ;;  %v791_v0 = vld [vmem:[#allocation11 + $0x268] sm:$0xff]  ;;  %v7378_v5 = vpack.c.bf16 %v774_v26, %v766_v43  ;;  %v788_v19 = vld [vmem:[#allocation11 + $0x250] sm:$0xff] }
  0xbb   :  { %4398 = vmatprep.subr.bf16.mxu1 %v7348_v52  ;;  %9164 = vst [vmem:[#allocation67_spill] sm:$0xff] %v7368_v32  ;;  %v807_v52 = vld [vmem:[#allocation11 + $0x2e8] sm:$0xff]  ;;  %v7388_v26 = vpack.c.bf16 %v788_v19, %v780_v18  ;;  %v796_v43 = vld [vmem:[#allocation11 + $0x290] sm:$0xff]  ;;  %v813_v18 = vld [vmem:[#allocation11 + $0x318] sm:$0xff] }
  0xbc   :  { %4460 = vmatpush1.bf16.msra.mxu0 %v7346_v50  ;;  %9167 = vst [vmem:[#allocation69_spill] sm:$0xff] %v7378_v5  ;;  %v790_v50 = vld [vmem:[#allocation11 + $0x260] sm:$0xff]  ;;  %v821_v19 = vld [vmem:[#allocation11 + $0x358] sm:$0xff] }
  0xbd   :  { %4462 = vmatprep.subr.bf16.mxu0 %v7351_v12  ;;  %4118 = vmatmul.mubr.msk.f32.gmra.mrb[36].mxu1 %vm173_vm0, %v7166_v40  ;;  %v782_v12 = vld [vmem:[#allocation11 + $0x220] sm:$0xff]  ;;  %v7383_v40 = vpack.c.bf16 %v791_v0, %v783_v14  ;;  %9170 = vst [vmem:[#allocation72_spill] sm:$0xff] %v7388_v26  ;;  %v7395_v14 = vpack.c.bf16 %v805_v39, %v797_v38  ;;  %v820_v38 = vld [vmem:[#allocation11 + $0x350] sm:$0xff] }
  0xbe   :  { %4400 = vmatpush1.bf16.msra.mxu1 %v7358_v24  ;;  %619 = vmatprep.mubr.f32.mxu1 %v9166_v4  ;;  %v799_v24 = vld [vmem:[#allocation11 + $0x2a8] sm:$0xff]  ;;  %v7393_v0 = vpack.c.bf16 %v790_v50, %v782_v12  ;;  %v7403_v50 = vpack.c.bf16 %v804_v55, %v796_v43  ;;  %v7410_v12 = vpack.c.bf16 %v821_v19, %v813_v18  ;;  %v814_v39 = vld [vmem:[#allocation11 + $0x320] sm:$0xff]  ;;  %v829_v43 = vld [vmem:[#allocation11 + $0x398] sm:$0xff] }
  0xbf   :  { %4402 = vmatprep.subr.bf16.mxu1 %v7365_v28  ;;  %9169 = vst [vmem:[#allocation71_spill] sm:$0xff] %v7383_v40  ;;  %9172 = vst [vmem:[#allocation74_spill] sm:$0xff] %v7395_v14  ;;  %v837_v55 = vld [vmem:[#allocation11 + $0x3d8] sm:$0xff]  ;;  %v836_v18 = vld [vmem:[#allocation11 + $0x3d0] sm:$0xff] }
  0xc0   :  { %4464 = vmatpush1.bf16.msra.mxu0 %v7363_v27  ;;  %9171 = vst [vmem:[#allocation73_spill] sm:$0xff] %v7393_v0  ;;  %v815_v27 = vld [vmem:[#allocation11 + $0x328] sm:$0xff]  ;;  %9174 = vst [vmem:[#allocation76_spill] sm:$0xff] %v7403_v50  ;;  %v830_v19 = vld [vmem:[#allocation11 + $0x3a0] sm:$0xff] }
  0xc1   :  { %4466 = vmatprep.subr.bf16.mxu0 %v7368_v32  ;;  %4119 = vmatmul.mubr.msk.f32.gmra.mrb[38].mxu1 %vm173_vm0, %v7180_v47  ;;  %v7398_v47 = vpack.c.bf16 %v807_v52, %v799_v24  ;;  %v806_v32 = vld [vmem:[#allocation11 + $0x2e0] sm:$0xff]  ;;  %9176 = vst [vmem:[#allocation78_spill] sm:$0xff] %v7410_v12  ;;  %v812_v24 = vld [vmem:[#allocation11 + $0x310] sm:$0xff] }
  0xc2   :  { %4404 = vmatpush1.bf16.msra.mxu1 %v7373_v61  ;;  %625 = vmatprep.mubr.f32.mxu1 %v9166_v4  ;;  %v823_v61 = vld [vmem:[#allocation11 + $0x368] sm:$0xff]  ;;  %v7408_v52 = vpack.c.bf16 %v806_v32, %v798_v60  ;;  %v7418_v32 = vpack.c.bf16 %v820_v38, %v812_v24  ;;  %v828_v60 = vld [vmem:[#allocation11 + $0x390] sm:$0xff]  ;;  %v845_v24 = vld [vmem:[#allocation11 + $0x418] sm:$0xff] }
  0xc3   :  { %4406 = vmatprep.subr.bf16.mxu1 %v7380_v6  ;;  %9173 = vst [vmem:[#allocation75_spill] sm:$0xff] %v7398_v47  ;;  %v853_v38 = vld [vmem:[#allocation11 + $0x458] sm:$0xff] }
  0xc4   :  { %4468 = vmatpush1.bf16.msra.mxu0 %v7378_v5  ;;  %9175 = vst [vmem:[#allocation77_spill] sm:$0xff] %v7408_v52  ;;  %v831_v5 = vld [vmem:[#allocation11 + $0x3a8] sm:$0xff]  ;;  %9178 = vst [vmem:[#allocation80_spill] sm:$0xff] %v7418_v32 }
  0xc5   :  { %4470 = vmatprep.subr.bf16.mxu0 %v7383_v40  ;;  %4120 = vmatmul.mubr.msk.f32.gmra.mrb[40].mxu1 %vm173_vm0, %v7194_v57  ;;  %v7413_v57 = vpack.c.bf16 %v823_v61, %v815_v27  ;;  %v822_v40 = vld [vmem:[#allocation11 + $0x360] sm:$0xff]  ;;  %v7425_v61 = vpack.c.bf16 %v837_v55, %v829_v43  ;;  %v852_v43 = vld [vmem:[#allocation11 + $0x450] sm:$0xff] }
  0xc6   :  { %4408 = vmatpush1.bf16.msra.mxu1 %v7388_v26  ;;  %631 = vmatprep.mubr.f32.mxu1 %v9166_v4  ;;  %v839_v26 = vld [vmem:[#allocation11 + $0x3e8] sm:$0xff]  ;;  %v7423_v27 = vpack.c.bf16 %v822_v40, %v814_v39  ;;  %v7433_v40 = vpack.c.bf16 %v836_v18, %v828_v60  ;;  %v844_v39 = vld [vmem:[#allocation11 + $0x410] sm:$0xff]  ;;  %v846_v55 = vld [vmem:[#allocation11 + $0x420] sm:$0xff] }
  0xc7   :  { %4410 = vmatprep.subr.bf16.mxu1 %v7395_v14  ;;  %9177 = vst [vmem:[#allocation79_spill] sm:$0xff] %v7413_v57  ;;  %9180 = vst [vmem:[#allocation82_spill] sm:$0xff] %v7425_v61  ;;  %v861_v60 = vld [vmem:[#allocation11 + $0x498] sm:$0xff] }
  0xc8   :  { %4472 = vmatpush1.bf16.msra.mxu0 %v7393_v0  ;;  %9179 = vst [vmem:[#allocation81_spill] sm:$0xff] %v7423_v27  ;;  %v847_v0 = vld [vmem:[#allocation11 + $0x428] sm:$0xff]  ;;  %9182 = vst [vmem:[#allocation84_spill] sm:$0xff] %v7433_v40  ;;  %v869_v18 = vld [vmem:[#allocation11 + $0x4d8] sm:$0xff] }
  0xc9   :  { %4474 = vmatprep.subr.bf16.mxu0 %v7398_v47  ;;  %4121 = vmatmul.mubr.msk.f32.gmra.mrb[42].mxu1 %vm173_vm0, %v7208_v1  ;;  %v7428_v1 = vpack.c.bf16 %v839_v26, %v831_v5  ;;  %v838_v47 = vld [vmem:[#allocation11 + $0x3e0] sm:$0xff]  ;;  %v7440_v26 = vpack.c.bf16 %v853_v38, %v845_v24  ;;  %v868_v24 = vld [vmem:[#allocation11 + $0x4d0] sm:$0xff] }
  0xca   :  { %4412 = vmatpush1.bf16.msra.mxu1 %v7403_v50  ;;  %637 = vmatprep.mubr.f32.mxu1 %v9166_v4  ;;  %v855_v50 = vld [vmem:[#allocation11 + $0x468] sm:$0xff]  ;;  %v7438_v5 = vpack.c.bf16 %v838_v47, %v830_v19  ;;  %v7448_v47 = vpack.c.bf16 %v852_v43, %v844_v39  ;;  %v860_v19 = vld [vmem:[#allocation11 + $0x490] sm:$0xff]  ;;  %v862_v38 = vld [vmem:[#allocation11 + $0x4a0] sm:$0xff] }
  0xcb   :  { %4414 = vmatprep.subr.bf16.mxu1 %v7410_v12  ;;  %9181 = vst [vmem:[#allocation83_spill] sm:$0xff] %v7428_v1  ;;  %9184 = vst [vmem:[#allocation86_spill] sm:$0xff] %v7440_v26  ;;  %v877_v39 = vld [vmem:[#allocation11 + $0x518] sm:$0xff] }
  0xcc   :  { %4476 = vmatpush1.bf16.msra.mxu0 %v7408_v52  ;;  %9183 = vst [vmem:[#allocation85_spill] sm:$0xff] %v7438_v5  ;;  %v863_v52 = vld [vmem:[#allocation11 + $0x4a8] sm:$0xff]  ;;  %9186 = vst [vmem:[#allocation88_spill] sm:$0xff] %v7448_v47  ;;  %v885_v43 = vld [vmem:[#allocation11 + $0x558] sm:$0xff] }
  0xcd   :  { %4478 = vmatprep.subr.bf16.mxu0 %v7413_v57  ;;  %4122 = vmatmul.mubr.msk.f32.gmra.mrb[44].mxu1 %vm173_vm0, %v7222_v8  ;;  %v7443_v8 = vpack.c.bf16 %v855_v50, %v847_v0  ;;  %v854_v57 = vld [vmem:[#allocation11 + $0x460] sm:$0xff]  ;;  %v7455_v50 = vpack.c.bf16 %v869_v18, %v861_v60  ;;  %v876_v60 = vld [vmem:[#allocation11 + $0x510] sm:$0xff] }
  0xce   :  { %4416 = vmatpush1.bf16.msra.mxu1 %v7418_v32  ;;  %643 = vmatprep.mubr.f32.mxu1 %v9166_v4  ;;  %v871_v32 = vld [vmem:[#allocation11 + $0x4e8] sm:$0xff]  ;;  %v7453_v0 = vpack.c.bf16 %v854_v57, %v846_v55  ;;  %v7467_v55 = vpack.c.bf16 %v885_v43, %v877_v39  ;;  %v892_v39 = vld [vmem:[#allocation11 + $0x590] sm:$0xff] }
  0xcf   :  { %4418 = vmatprep.subr.bf16.mxu1 %v7425_v61  ;;  %9185 = vst [vmem:[#allocation87_spill] sm:$0xff] %v7443_v8  ;;  %9188 = vst [vmem:[#allocation90_spill] sm:$0xff] %v7455_v50 }
  0xd0   :  { %4480 = vmatpush1.bf16.msra.mxu0 %v7423_v27  ;;  %9187 = vst [vmem:[#allocation89_spill] sm:$0xff] %v7453_v0  ;;  %v879_v27 = vld [vmem:[#allocation11 + $0x528] sm:$0xff]  ;;  %9192 = vst [vmem:[#allocation94_spill] sm:$0xff] %v7467_v55 }
  0xd1   :  { %4482 = vmatprep.subr.bf16.mxu0 %v7428_v1  ;;  %4123 = vmatmul.mubr.msk.f32.gmra.mrb[46].mxu1 %vm173_vm0, %v7236_v16  ;;  %v7458_v16 = vpack.c.bf16 %v871_v32, %v863_v52  ;;  %v870_v1 = vld [vmem:[#allocation11 + $0x4e0] sm:$0xff]  ;;  %v884_v52 = vld [vmem:[#allocation11 + $0x550] sm:$0xff] }
  0xd2   :  { %4420 = vmatpush1.bf16.msra.mxu1 %v7433_v40  ;;  %1105 = vmatprep.mubr.f32.mxu1 %v9166_v4  ;;  %v887_v40 = vld [vmem:[#allocation11 + $0x568] sm:$0xff]  ;;  %v7465_v57 = vpack.c.bf16 %v870_v1, %v862_v38  ;;  %v878_v32 = vld [vmem:[#allocation11 + $0x520] sm:$0xff] }
  0xd3   :  { %4422 = vmatprep.subr.bf16.mxu1 %v7440_v26  ;;  %9189 = vst [vmem:[#allocation91_spill] sm:$0xff] %v7458_v16  ;;  %v7470_v18 = vpack.c.bf16 %v887_v40, %v879_v27  ;;  %v893_v26 = vld [vmem:[#allocation11 + $0x598] sm:$0xff]  ;;  %v900_v27 = vld [vmem:[#allocation11 + $0x5d0] sm:$0xff]  ;;  %v894_v40 = vld [vmem:[#allocation11 + $0x5a0] sm:$0xff] }
  0xd4   :  { %4484 = vmatpush1.bf16.msra.mxu0 %v7438_v5  ;;  %v7461_v5 = vpack.c.bf16 %v868_v24, %v860_v19  ;;  %9191 = vst [vmem:[#allocation93_spill] sm:$0xff] %v7465_v57  ;;  %v895_v19 = vld [vmem:[#allocation11 + $0x5a8] sm:$0xff] }
  0xd5   :  { %4486 = vmatprep.subr.bf16.mxu0 %v7443_v8  ;;  %9193 = vst [vmem:[#allocation95_spill] sm:$0xff] %v7470_v18  ;;  %v886_v8 = vld [vmem:[#allocation11 + $0x560] sm:$0xff]  ;;  %v903_v24 = vld [vmem:[#allocation11 + $0x5e8] sm:$0xff] }
  0xd6   :  { %4424 = vmatpush1.bf16.msra.mxu1 %v7448_v47  ;;  %9190 = vst [vmem:[#allocation92_spill] sm:$0xff] %v7461_v5  ;;  %v901_v47 = vld [vmem:[#allocation11 + $0x5d8] sm:$0xff]  ;;  %v7477_v1 = vpack.c.bf16 %v886_v8, %v878_v32  ;;  %v7482_v43 = vpack.c.bf16 %v903_v24, %v895_v19  ;;  %v916_v32 = vld [vmem:[#allocation11 + $0x650] sm:$0xff]  ;;  %v910_v19 = vld [vmem:[#allocation11 + $0x620] sm:$0xff] }
  0xd7   :  { %4426 = vmatprep.subr.bf16.mxu1 %v7455_v50  ;;  %v7479_v38 = vpack.c.bf16 %v901_v47, %v893_v26  ;;  %v909_v50 = vld [vmem:[#allocation11 + $0x618] sm:$0xff]  ;;  %v908_v47 = vld [vmem:[#allocation11 + $0x610] sm:$0xff] }
  0xd8   :  { %4488 = vmatpush1.bf16.msra.mxu0 %v7453_v0  ;;  %v7473_v0 = vpack.c.bf16 %v884_v52, %v876_v60  ;;  %9195 = vst [vmem:[#allocation97_spill] sm:$0xff] %v7477_v1  ;;  %9197 = vst [vmem:[#allocation99_spill] sm:$0xff] %v7482_v43  ;;  %v911_v60 = vld [vmem:[#allocation11 + $0x628] sm:$0xff] }
  0xd9   :  { %4490 = vmatprep.subr.bf16.mxu0 %v7458_v16  ;;  %9196 = vst [vmem:[#allocation98_spill] sm:$0xff] %v7479_v38  ;;  %v902_v16 = vld [vmem:[#allocation11 + $0x5e0] sm:$0xff]  ;;  %v919_v52 = vld [vmem:[#allocation11 + $0x668] sm:$0xff] }
  0xda   :  { %4428 = vmatpush1.bf16.msra.mxu1 %v7461_v5  ;;  %9194 = vst [vmem:[#allocation96_spill] sm:$0xff] %v7473_v0  ;;  %v917_v5 = vld [vmem:[#allocation11 + $0x658] sm:$0xff]  ;;  %v7489_v26 = vpack.c.bf16 %v902_v16, %v894_v40  ;;  %v7494_v24 = vpack.c.bf16 %v919_v52, %v911_v60  ;;  %v924_v16 = vld [vmem:[#allocation11 + $0x690] sm:$0xff]  ;;  %v926_v60 = vld [vmem:[#allocation11 + $0x6a0] sm:$0xff] }
  0xdb   :  { %4430 = vmatprep.subr.bf16.mxu1 %v7467_v55  ;;  %v7491_v8 = vpack.c.bf16 %v917_v5, %v909_v50  ;;  %v925_v55 = vld [vmem:[#allocation11 + $0x698] sm:$0xff]  ;;  %v932_v40 = vld [vmem:[#allocation11 + $0x6d0] sm:$0xff] }
  0xdc   :  { %4492 = vmatpush1.bf16.msra.mxu0 %v7465_v57  ;;  %v7485_v57 = vpack.c.bf16 %v900_v27, %v892_v39  ;;  %9199 = vst [vmem:[#allocation101_spill] sm:$0xff] %v7489_v26  ;;  %9201 = vst [vmem:[#allocation103_spill] sm:$0xff] %v7494_v24  ;;  %v927_v39 = vld [vmem:[#allocation11 + $0x6a8] sm:$0xff] }
  0xdd   :  { %4494 = vmatprep.subr.bf16.mxu0 %v7470_v18  ;;  %9200 = vst [vmem:[#allocation102_spill] sm:$0xff] %v7491_v8  ;;  %v918_v18 = vld [vmem:[#allocation11 + $0x660] sm:$0xff]  ;;  %v935_v27 = vld [vmem:[#allocation11 + $0x6e8] sm:$0xff] }
  0xde   :  { %4432 = vmatpush1.bf16.msra.mxu1 %v7473_v0  ;;  %9198 = vst [vmem:[#allocation100_spill] sm:$0xff] %v7485_v57  ;;  %v933_v0 = vld [vmem:[#allocation11 + $0x6d8] sm:$0xff]  ;;  %v7501_v5 = vpack.c.bf16 %v918_v18, %v910_v19  ;;  %v7506_v52 = vpack.c.bf16 %v935_v27, %v927_v39  ;;  %v940_v18 = vld [vmem:[#allocation11 + $0x710] sm:$0xff]  ;;  %v942_v39 = vld [vmem:[#allocation11 + $0x720] sm:$0xff] }
  0xdf   :  { %4434 = vmatprep.subr.bf16.mxu1 %v7479_v38  ;;  %v7503_v50 = vpack.c.bf16 %v933_v0, %v925_v55  ;;  %v941_v38 = vld [vmem:[#allocation11 + $0x718] sm:$0xff]  ;;  %v948_v19 = vld [vmem:[#allocation11 + $0x750] sm:$0xff] }
  0xe0   :  { %4496 = vmatpush1.bf16.msra.mxu0 %v7477_v1  ;;  %v7497_v1 = vpack.c.bf16 %v916_v32, %v908_v47  ;;  %9203 = vst [vmem:[#allocation105_spill] sm:$0xff] %v7501_v5  ;;  %9205 = vst [vmem:[#allocation107_spill] sm:$0xff] %v7506_v52  ;;  %v943_v47 = vld [vmem:[#allocation11 + $0x728] sm:$0xff] }
  0xe1   :  { %4498 = vmatprep.subr.bf16.mxu0 %v7482_v43  ;;  %9204 = vst [vmem:[#allocation106_spill] sm:$0xff] %v7503_v50  ;;  %v934_v43 = vld [vmem:[#allocation11 + $0x6e0] sm:$0xff]  ;;  %v951_v32 = vld [vmem:[#allocation11 + $0x768] sm:$0xff] }
  0xe2   :  { %4436 = vmatpush1.bf16.msra.mxu1 %v7485_v57  ;;  %9202 = vst [vmem:[#allocation104_spill] sm:$0xff] %v7497_v1  ;;  %v949_v57 = vld [vmem:[#allocation11 + $0x758] sm:$0xff]  ;;  %v7513_v0 = vpack.c.bf16 %v934_v43, %v926_v60  ;;  %v7518_v27 = vpack.c.bf16 %v951_v32, %v943_v47  ;;  %v956_v43 = vld [vmem:[#allocation11 + $0x790] sm:$0xff]  ;;  %v958_v47 = vld [vmem:[#allocation11 + $0x7a0] sm:$0xff] }
  0xe3   :  { %4438 = vmatprep.subr.bf16.mxu1 %v7491_v8  ;;  %v7515_v55 = vpack.c.bf16 %v949_v57, %v941_v38  ;;  %v957_v8 = vld [vmem:[#allocation11 + $0x798] sm:$0xff]  ;;  %v964_v60 = vld [vmem:[#allocation11 + $0x7d0] sm:$0xff] }
  0xe4   :  { %4500 = vmatpush1.bf16.msra.mxu0 %v7489_v26  ;;  %v7509_v26 = vpack.c.bf16 %v932_v40, %v924_v16  ;;  %9207 = vst [vmem:[#allocation109_spill] sm:$0xff] %v7513_v0  ;;  %9209 = vst [vmem:[#allocation111_spill] sm:$0xff] %v7518_v27  ;;  %v959_v16 = vld [vmem:[#allocation11 + $0x7a8] sm:$0xff] }
  0xe5   :  { %4502 = vmatprep.subr.bf16.mxu0 %v7494_v24  ;;  %9208 = vst [vmem:[#allocation110_spill] sm:$0xff] %v7515_v55  ;;  %v950_v24 = vld [vmem:[#allocation11 + $0x760] sm:$0xff]  ;;  %v967_v40 = vld [vmem:[#allocation11 + $0x7e8] sm:$0xff] }
  0xe6   :  { %4440 = vmatpush1.bf16.msra.mxu1 %v7497_v1  ;;  %9206 = vst [vmem:[#allocation108_spill] sm:$0xff] %v7509_v26  ;;  %v965_v1 = vld [vmem:[#allocation11 + $0x7d8] sm:$0xff]  ;;  %v7525_v57 = vpack.c.bf16 %v950_v24, %v942_v39  ;;  %v7530_v32 = vpack.c.bf16 %v967_v40, %v959_v16  ;;  %v720_v24 = vld [vmem:[#allocation11 + $0x30] sm:$0xff] }
  0xe7   :  { %4442 = vmatprep.subr.bf16.mxu1 %v7503_v50  ;;  %v7527_v38 = vpack.c.bf16 %v965_v1, %v957_v8  ;;  %v721_v50 = vld [vmem:[#allocation11 + $0x38] sm:$0xff] }
  0xe8   :  { %4504 = vmatpush1.bf16.msra.mxu0 %v7501_v5  ;;  %v7521_v5 = vpack.c.bf16 %v948_v19, %v940_v18  ;;  %9211 = vst [vmem:[#allocation113_spill] sm:$0xff] %v7525_v57  ;;  %9213 = vst [vmem:[#allocation115_spill] sm:$0xff] %v7530_v32  ;;  %v7533_v18 = vpack.c.bf16 %v964_v60, %v956_v43  ;;  %v728_v19 = vld [vmem:[#allocation11 + $0x70] sm:$0xff]  ;;  %v737_v39 = vld [vmem:[#allocation11 + $0xb8] sm:$0xff] }
  0xe9   :  { %4506 = vmatprep.subr.bf16.mxu0 %v7506_v52  ;;  %9212 = vst [vmem:[#allocation114_spill] sm:$0xff] %v7527_v38  ;;  %v966_v52 = vld [vmem:[#allocation11 + $0x7e0] sm:$0xff]  ;;  %v745_v16 = vld [vmem:[#allocation11 + $0xf8] sm:$0xff]  ;;  %v7543_v40 = vpack.c.bf16 %v728_v19, %v720_v24  ;;  %v744_v60 = vld [vmem:[#allocation11 + $0xf0] sm:$0xff] }
  0xea   :  { %4444 = vmatpush1.bf16.msra.mxu1 %v7509_v26  ;;  %9210 = vst [vmem:[#allocation112_spill] sm:$0xff] %v7521_v5  ;;  %v729_v26 = vld [vmem:[#allocation11 + $0x78] sm:$0xff]  ;;  %9214 = vst [vmem:[#allocation116_spill] sm:$0xff] %v7533_v18  ;;  %v7537_v1 = vpack.c.bf16 %v966_v52, %v958_v47  ;;  %v7547_v43 = vpack.c.bf16 %v745_v16, %v737_v39  ;;  %v736_v52 = vld [vmem:[#allocation11 + $0xb0] sm:$0xff] }
  0xeb   :  { %4446 = vmatprep.subr.bf16.mxu1 %v7515_v55  ;;  %v7539_v8 = vpack.c.bf16 %v729_v26, %v721_v50  ;;  %v753_v26 = vld [vmem:[#allocation11 + $0x138] sm:$0xff]  ;;  %v7553_v47 = vpack.c.bf16 %v744_v60, %v736_v52  ;;  %v752_v19 = vld [vmem:[#allocation11 + $0x130] sm:$0xff] }
  0xec   :  { %4508 = vmatpush1.bf16.msra.mxu0 %v7513_v0  ;;  %9215 = vst [vmem:[#allocation117_spill] sm:$0xff] %v7537_v1  ;;  %v761_v50 = vld [vmem:[#allocation11 + $0x178] sm:$0xff]  ;;  %v760_v39 = vld [vmem:[#allocation11 + $0x170] sm:$0xff] }
  0xed   :  { %4510 = vmatprep.subr.bf16.mxu0 %v7518_v27  ;;  %9216 = vst [vmem:[#allocation118_spill] sm:$0xff] %v7539_v8  ;;  %v7556_v24 = vpack.c.bf16 %v761_v50, %v753_v26  ;;  %v769_v16 = vld [vmem:[#allocation11 + $0x1b8] sm:$0xff]  ;;  %v768_v60 = vld [vmem:[#allocation11 + $0x1b0] sm:$0xff] }
  0xee   :  { %4448 = vmatpush1.bf16.msra.mxu1 %v7521_v5  ;;  %v776_v26 = vld [vmem:[#allocation11 + $0x1f0] sm:$0xff]  ;;  %v785_v50 = vld [vmem:[#allocation11 + $0x238] sm:$0xff] }
  0xef   :  { %4450 = vmatprep.subr.bf16.mxu1 %v7527_v38 }
  0xf0   :  { %4512 = vmatpush1.bf16.msra.mxu0 %v7525_v57 }
  0xf1   :  { %4514 = vmatprep.subr.bf16.mxu0 %v7530_v32  ;;  %v793_v32 = vld [vmem:[#allocation11 + $0x278] sm:$0xff] }
  0xf2   :  { %4452 = vmatpush1.bf16.msra.mxu1 %v7533_v18 }
  0xf3   :  { %4518 = vmatprep.subr.bf16.mxu1 %v7539_v8 }
  0xf4   :  { %4516 = vmatpush1.bf16.msra.mxu0 %v7537_v1  ;;  %v777_v1 = vld [vmem:[#allocation11 + $0x1f8] sm:$0xff] }
  0xf5   :  { %4582 = vmatprep.subr.bf16.mxu0 %v7142_v21  ;;  %1106 = vmatmul.mubr.f32.vlgmr.msra.gmra.mrb[16].mxu1 %v9166_v4  ;;  %v7562_v21 = vpack.c.bf16 %v760_v39, %v752_v19  ;;  %v7565_v52 = vpack.c.bf16 %v777_v1, %v769_v16  ;;  %v7573_v19 = vpack.c.bf16 %v793_v32, %v785_v50  ;;  %v784_v39 = vld [vmem:[#allocation11 + $0x230] sm:$0xff]  ;;  %v801_v1 = vld [vmem:[#allocation11 + $0x2b8] sm:$0xff] }
  0xf6   :  { %4520 = vmatpush1.bf16.msra.mxu1 %v7543_v40  ;;  %1247 = vmatprep.mubr.f32.mxu1 %v9166_v4  ;;  %v809_v16 = vld [vmem:[#allocation11 + $0x2f8] sm:$0xff] }
  0xf7   :  { %1177 = vmatmul.mubr.f32.vlgmr.msra.gmra.mrb[14].mxu0 %v9166_v4  ;;  %4522 = vmatprep.subr.bf16.mxu1 %v7547_v43  ;;  %v817_v32 = vld [vmem:[#allocation11 + $0x338] sm:$0xff] }
  0xf8   :  { %4584 = vmatpush1.bf16.msra.mxu0 %v7144_v25  ;;  %v7570_v25 = vpack.c.bf16 %v776_v26, %v768_v60  ;;  %v7581_v60 = vpack.c.bf16 %v809_v16, %v801_v1  ;;  %v800_v26 = vld [vmem:[#allocation11 + $0x2b0] sm:$0xff]  ;;  %v825_v50 = vld [vmem:[#allocation11 + $0x378] sm:$0xff] }
  0xf9   :  { %4586 = vmatprep.subr.bf16.mxu0 %v7149_v29  ;;  %v792_v29 = vld [vmem:[#allocation11 + $0x270] sm:$0xff]  ;;  %v833_v1 = vld [vmem:[#allocation11 + $0x3b8] sm:$0xff] }
  0xfa   :  { %4524 = vmatpush1.bf16.msra.mxu1 %v7553_v47  ;;  %9218 = vst [vmem:[#allocation120_spill] sm:$0xff] %v7581_v60  ;;  %v841_v16 = vld [vmem:[#allocation11 + $0x3f8] sm:$0xff] }
  0xfb   :  { %4526 = vmatprep.subr.bf16.mxu1 %v7556_v24 }
  0xfc   :  { %4588 = vmatpush1.bf16.msra.mxu0 %v7157_v34  ;;  %v7578_v34 = vpack.c.bf16 %v792_v29, %v784_v39  ;;  %v7589_v29 = vpack.c.bf16 %v825_v50, %v817_v32  ;;  %v816_v39 = vld [vmem:[#allocation11 + $0x330] sm:$0xff]  ;;  %v849_v32 = vld [vmem:[#allocation11 + $0x438] sm:$0xff] }
  0xfd   :  { %4590 = vmatprep.subr.bf16.mxu0 %v7160_v35  ;;  %v808_v35 = vld [vmem:[#allocation11 + $0x2f0] sm:$0xff]  ;;  %v857_v50 = vld [vmem:[#allocation11 + $0x478] sm:$0xff] }
  0xfe   :  { %4528 = vmatpush1.bf16.msra.mxu1 %v7562_v21  ;;  %9217 = vst [vmem:[#allocation119_spill] sm:$0xff] %v7578_v34  ;;  %9220 = vst [vmem:[#allocation122_spill] sm:$0xff] %v7589_v29 }
  0xff   :  { %4530 = vmatprep.subr.bf16.mxu1 %v7565_v52 }
 0x100   :  { %4592 = vmatpush1.bf16.msra.mxu0 %v7171_v41  ;;  %v7586_v41 = vpack.c.bf16 %v808_v35, %v800_v26  ;;  %v7597_v35 = vpack.c.bf16 %v841_v16, %v833_v1  ;;  %v832_v26 = vld [vmem:[#allocation11 + $0x3b0] sm:$0xff]  ;;  %v865_v1 = vld [vmem:[#allocation11 + $0x4b8] sm:$0xff] }
 0x101   :  { %4594 = vmatprep.subr.bf16.mxu0 %v7175_v42  ;;  %v824_v42 = vld [vmem:[#allocation11 + $0x370] sm:$0xff]  ;;  %v873_v16 = vld [vmem:[#allocation11 + $0x4f8] sm:$0xff] }
 0x102   :  { %4532 = vmatpush1.bf16.msra.mxu1 %v7570_v25  ;;  %9219 = vst [vmem:[#allocation121_spill] sm:$0xff] %v7586_v41  ;;  %9222 = vst [vmem:[#allocation124_spill] sm:$0xff] %v7597_v35 }
 0x103   :  { %4534 = vmatprep.subr.bf16.mxu1 %v7573_v19 }
 0x104   :  { %4596 = vmatpush1.bf16.msra.mxu0 %v7185_v48  ;;  %v7594_v48 = vpack.c.bf16 %v824_v42, %v816_v39  ;;  %v7605_v42 = vpack.c.bf16 %v857_v50, %v849_v32  ;;  %v848_v39 = vld [vmem:[#allocation11 + $0x430] sm:$0xff]  ;;  %v881_v32 = vld [vmem:[#allocation11 + $0x538] sm:$0xff] }
 0x105   :  { %4598 = vmatprep.subr.bf16.mxu0 %v7189_v51  ;;  %v840_v51 = vld [vmem:[#allocation11 + $0x3f0] sm:$0xff]  ;;  %v889_v50 = vld [vmem:[#allocation11 + $0x578] sm:$0xff] }
 0x106   :  { %4536 = vmatpush1.bf16.msra.mxu1 %v7578_v34  ;;  %9221 = vst [vmem:[#allocation123_spill] sm:$0xff] %v7594_v48  ;;  %9224 = vst [vmem:[#allocation126_spill] sm:$0xff] %v7605_v42 }
 0x107   :  { %4538 = vmatprep.subr.bf16.mxu1 %v7581_v60 }
 0x108   :  { %4600 = vmatpush1.bf16.msra.mxu0 %v7197_v58  ;;  %v7602_v58 = vpack.c.bf16 %v840_v51, %v832_v26  ;;  %v7613_v51 = vpack.c.bf16 %v873_v16, %v865_v1  ;;  %v864_v26 = vld [vmem:[#allocation11 + $0x4b0] sm:$0xff]  ;;  %v897_v1 = vld [vmem:[#allocation11 + $0x5b8] sm:$0xff] }
 0x109   :  { %4602 = vmatprep.subr.bf16.mxu0 %v7200_v59  ;;  %v856_v59 = vld [vmem:[#allocation11 + $0x470] sm:$0xff]  ;;  %v905_v16 = vld [vmem:[#allocation11 + $0x5f8] sm:$0xff] }
 0x10a   :  { %4540 = vmatpush1.bf16.msra.mxu1 %v7586_v41  ;;  %9223 = vst [vmem:[#allocation125_spill] sm:$0xff] %v7602_v58  ;;  %9226 = vst [vmem:[#allocation128_spill] sm:$0xff] %v7613_v51 }
 0x10b   :  { %4542 = vmatprep.subr.bf16.mxu1 %v7589_v29 }
 0x10c   :  { %4604 = vmatpush1.bf16.msra.mxu0 %v7211_v2  ;;  %v7610_v2 = vpack.c.bf16 %v856_v59, %v848_v39  ;;  %v7621_v59 = vpack.c.bf16 %v889_v50, %v881_v32  ;;  %v880_v39 = vld [vmem:[#allocation11 + $0x530] sm:$0xff]  ;;  %v913_v32 = vld [vmem:[#allocation11 + $0x638] sm:$0xff] }
 0x10d   :  { %4606 = vmatprep.subr.bf16.mxu0 %v7214_v3  ;;  %v872_v3 = vld [vmem:[#allocation11 + $0x4f0] sm:$0xff]  ;;  %v921_v50 = vld [vmem:[#allocation11 + $0x678] sm:$0xff] }
 0x10e   :  { %4544 = vmatpush1.bf16.msra.mxu1 %v7594_v48  ;;  %9225 = vst [vmem:[#allocation127_spill] sm:$0xff] %v7610_v2  ;;  %9228 = vst [vmem:[#allocation130_spill] sm:$0xff] %v7621_v59 }
 0x10f   :  { %4546 = vmatprep.subr.bf16.mxu1 %v7597_v35 }
 0x110   :  { %4608 = vmatpush1.bf16.msra.mxu0 %v7225_v9  ;;  %v7618_v9 = vpack.c.bf16 %v872_v3, %v864_v26  ;;  %v7629_v3 = vpack.c.bf16 %v905_v16, %v897_v1  ;;  %v896_v26 = vld [vmem:[#allocation11 + $0x5b0] sm:$0xff]  ;;  %v929_v1 = vld [vmem:[#allocation11 + $0x6b8] sm:$0xff] }
 0x111   :  { %4610 = vmatprep.subr.bf16.mxu0 %v7228_v10  ;;  %v888_v10 = vld [vmem:[#allocation11 + $0x570] sm:$0xff]  ;;  %v937_v16 = vld [vmem:[#allocation11 + $0x6f8] sm:$0xff] }
 0x112   :  { %4548 = vmatpush1.bf16.msra.mxu1 %v7602_v58  ;;  %9227 = vst [vmem:[#allocation129_spill] sm:$0xff] %v7618_v9  ;;  %9230 = vst [vmem:[#allocation132_spill] sm:$0xff] %v7629_v3 }
 0x113   :  { %4550 = vmatprep.subr.bf16.mxu1 %v7605_v42 }
 0x114   :  { %4612 = vmatpush1.bf16.msra.mxu0 %v7239_v17  ;;  %v7626_v17 = vpack.c.bf16 %v888_v10, %v880_v39  ;;  %v7637_v10 = vpack.c.bf16 %v921_v50, %v913_v32  ;;  %v912_v39 = vld [vmem:[#allocation11 + $0x630] sm:$0xff]  ;;  %v945_v32 = vld [vmem:[#allocation11 + $0x738] sm:$0xff] }
 0x115   :  { %4614 = vmatprep.subr.bf16.mxu0 %v7242_v22  ;;  %v904_v22 = vld [vmem:[#allocation11 + $0x5f0] sm:$0xff]  ;;  %v953_v50 = vld [vmem:[#allocation11 + $0x778] sm:$0xff] }
 0x116   :  { %4552 = vmatpush1.bf16.msra.mxu1 %v7610_v2  ;;  %9229 = vst [vmem:[#allocation131_spill] sm:$0xff] %v7626_v17  ;;  %9232 = vst [vmem:[#allocation134_spill] sm:$0xff] %v7637_v10 }
 0x117   :  { %4554 = vmatprep.subr.bf16.mxu1 %v7613_v51 }
 0x118   :  { %4616 = vmatpush1.bf16.msra.mxu0 %v7251_v31  ;;  %v7634_v31 = vpack.c.bf16 %v904_v22, %v896_v26  ;;  %v7645_v22 = vpack.c.bf16 %v937_v16, %v929_v1  ;;  %v928_v26 = vld [vmem:[#allocation11 + $0x6b0] sm:$0xff]  ;;  %v961_v1 = vld [vmem:[#allocation11 + $0x7b8] sm:$0xff] }
 0x119   :  { %4618 = vmatprep.subr.bf16.mxu0 %v7256_v36  ;;  %v920_v36 = vld [vmem:[#allocation11 + $0x670] sm:$0xff]  ;;  %v969_v16 = vld [vmem:[#allocation11 + $0x7f8] sm:$0xff] }
 0x11a   :  { %4556 = vmatpush1.bf16.msra.mxu1 %v7618_v9  ;;  %9231 = vst [vmem:[#allocation133_spill] sm:$0xff] %v7634_v31  ;;  %9234 = vst [vmem:[#allocation136_spill] sm:$0xff] %v7645_v22 }
 0x11b   :  { %4558 = vmatprep.subr.bf16.mxu1 %v7621_v59 }
 0x11c   :  { %4620 = vmatpush1.bf16.msra.mxu0 %v7265_v44  ;;  %v7642_v44 = vpack.c.bf16 %v920_v36, %v912_v39  ;;  %v7653_v36 = vpack.c.bf16 %v953_v50, %v945_v32  ;;  %v944_v39 = vld [vmem:[#allocation11 + $0x730] sm:$0xff]  ;;  %v133_v50 = vlaneseq }
 0x11d   :  { %4622 = vmatprep.subr.bf16.mxu0 %v7269_v45  ;;  %v936_v45 = vld [vmem:[#allocation11 + $0x6f0] sm:$0xff] }
 0x11e   :  { %4560 = vmatpush1.bf16.msra.mxu1 %v7626_v17  ;;  %9233 = vst [vmem:[#allocation135_spill] sm:$0xff] %v7642_v44  ;;  %9236 = vst [vmem:[#allocation138_spill] sm:$0xff] %v7653_v36 }
 0x11f   :  { %4562 = vmatprep.subr.bf16.mxu1 %v7629_v3 }
 0x120   :  { %4624 = vmatpush1.bf16.msra.mxu0 %v7275_v53  ;;  %v7650_v53 = vpack.c.bf16 %v936_v45, %v928_v26  ;;  %v7661_v45 = vpack.c.bf16 %v969_v16, %v961_v1  ;;  %v960_v26 = vld [vmem:[#allocation11 + $0x7b0] sm:$0xff]  ;;  %v7683_v1 = vshrl.u32 %v133_v50, 7 }
 0x121   :  { %4626 = vmatprep.subr.bf16.mxu0 %v7278_v54  ;;  %v952_v54 = vld [vmem:[#allocation11 + $0x770] sm:$0xff] }
 0x122   :  { %4564 = vmatpush1.bf16.msra.mxu1 %v7634_v31  ;;  %9235 = vst [vmem:[#allocation137_spill] sm:$0xff] %v7650_v53  ;;  %9238 = vst [vmem:[#allocation140_spill] sm:$0xff] %v7661_v45  ;;  %v135_v16 = vsub.s32 0, %v7683_v1 }
 0x123   :  { %4566 = vmatprep.subr.bf16.mxu1 %v7637_v10 }
 0x124   :  { %4628 = vmatpush1.bf16.msra.mxu0 %v7284_v62  ;;  %v7658_v62 = vpack.c.bf16 %v952_v54, %v944_v39  ;;  %v9240_v54 = vld [vmem:[#allocation62_spill] sm:$0xff]  ;;  %v9242_v39 = vld [vmem:[#allocation68_spill] sm:$0xff] }
 0x125   :  { %4630 = vmatprep.subr.bf16.mxu0 %v7287_v63  ;;  %v968_v63 = vld [vmem:[#allocation11 + $0x7f0] sm:$0xff] }
 0x126   :  { %4568 = vmatpush1.bf16.msra.mxu1 %v7642_v44  ;;  %9237 = vst [vmem:[#allocation139_spill] sm:$0xff] %v7658_v62  ;;  %v7666_v32 = vpack.c.bf16 %v968_v63, %v960_v26  ;;  %v9241_v63 = vld [vmem:[#allocation64_spill] sm:$0xff]  ;;  %v7689_v26 = vld [vmem:[#allocation10] sm:$0xff] }
 0x127   :  { %4570 = vmatprep.subr.bf16.mxu1 %v7645_v22 }
 0x128   :  { %4632 = vmatpush1.bf16.msra.mxu0 %v7293_v11  ;;  %9239 = vst [vmem:[#allocation141_spill] sm:$0xff] %v7666_v32 }
 0x129   :  { %4634 = vmatprep.subr.bf16.mxu0 %v7296_v13 }
 0x12a   :  { %4572 = vmatpush1.bf16.msra.mxu1 %v7650_v53 }
 0x12b   :  { %4574 = vmatprep.subr.bf16.mxu1 %v7653_v36 }
 0x12c   :  { %4636 = vmatpush1.bf16.msra.mxu0 %v7302_v20 }
 0x12d   :  { %4638 = vmatprep.subr.bf16.mxu0 %v7305_v23  ;;  %v136_v23 = vrot.slane %v7689_v26, %v135_v16  ;;  %v9250_v16 = vld [vmem:[#allocation84_spill] sm:$0xff] }
 0x12e   :  { %4576 = vmatpush1.bf16.msra.mxu1 %v7658_v62 }
 0x12f   :  { %4578 = vmatprep.subr.bf16.mxu1 %v7661_v45 }
 0x130   :  { %4640 = vmatpush1.bf16.msra.mxu0 %v7311_v30  ;;  %v9244_v30 = vld [vmem:[#allocation76_spill] sm:$0xff] }
 0x131   :  { %4642 = vmatprep.subr.bf16.mxu0 %v7314_v37 }
 0x132   :  { %4580 = vmatpush1.bf16.msra.mxu1 %v7666_v32 }
 0x133   :  { %4646 = vmatprep.subr.bf16.mxu1 %v7253_v33 }
 0x134   :  { %4644 = vmatpush1.bf16.msra.mxu0 %v7320_v49  ;;  %v139_v49 = vsub.s32 1, %v7683_v1 }
 0x135   :  { %1248 = vmatmul.mubr.f32.vlgmr.msra.gmra.mrb[46].mxu1 %v9166_v4  ;;  %4710 = vmatprep.subr.bf16.mxu0 %v7323_v56  ;;  %v9243_v4 = vld [vmem:[#allocation72_spill] sm:$0xff] }
 0x136   :  { %4648 = vmatpush1.bf16.msra.mxu1 %v7328_v7  ;;  %v140_v50 = vrot.slane %v7689_v26, %v139_v49 }
 0x137   :  { %4650 = vmatprep.subr.bf16.mxu1 %v7333_v15 }
 0x13a   :  { %4652 = vmatpush1.bf16.msra.mxu1 %v7342_v46 }
 0x13b   :  { %4654 = vmatprep.subr.bf16.mxu1 %v9240_v54 }
 0x13e   :  { %4656 = vmatpush1.bf16.msra.mxu1 %v9241_v63 }
 0x13f   :  { %4658 = vmatprep.subr.bf16.mxu1 %v7365_v28 }
 0x142   :  { %4660 = vmatpush1.bf16.msra.mxu1 %v9242_v39 }
 0x143   :  { %4662 = vmatprep.subr.bf16.mxu1 %v7380_v6 }
 0x146   :  { %4664 = vmatpush1.bf16.msra.mxu1 %v9243_v4 }
 0x147   :  { %4666 = vmatprep.subr.bf16.mxu1 %v7395_v14  ;;  %v9247_v14 = vld [vmem:[#allocation80_spill] sm:$0xff] }
 0x148   :  { %v264_v56 = vpop.f32.mrb[0].mxu1 }
 0x149   :  { %v266_v37 = vpop.f32.mrb[1].mxu1 }
 0x14a   :  { %4668 = vmatpush1.bf16.msra.mxu1 %v9244_v30 }
 0x14b   :  { %4670 = vmatprep.subr.bf16.mxu1 %v7410_v12  ;;  %v9251_v12 = vld [vmem:[#allocation86_spill] sm:$0xff] }
 0x14c   :  { %v270_v20 = vpop.f32.mrb[2].mxu1 }
 0x14d   :  { %v7696_v13 = vadd.f32 %v270_v20, %v136_v23  ;;  %v272_v11 = vpop.f32.mrb[3].mxu1 }
 0x14e   :  { %v7698_v4 = vadd.f32 %v272_v11, %v140_v50  ;;  %4672 = vmatpush1.bf16.msra.mxu1 %v9247_v14  ;;  %v9255_v14 = vld [vmem:[#allocation90_spill] sm:$0xff] }
 0x14f   :  { %9245 = vst [vmem:[#allocation142_spill] sm:$0xff] %v7696_v13  ;;  %4674 = vmatprep.subr.bf16.mxu1 %v7425_v61 }
 0x150   :  { %9246 = vst [vmem:[#allocation143_spill] sm:$0xff] %v7698_v4  ;;  %v276_v6 = vpop.f32.mrb[4].mxu1  ;;  %v9254_v4 = vld [vmem:[#allocation88_spill] sm:$0xff] }
 0x151   :  { %v7702_v39 = vadd.f32 %v276_v6, %v136_v23  ;;  %v278_v30 = vpop.f32.mrb[5].mxu1 }
 0x152   :  { %v7704_v28 = vadd.f32 %v278_v30, %v140_v50  ;;  %4676 = vmatpush1.bf16.msra.mxu1 %v9250_v16  ;;  %v9259_v16 = vld [vmem:[#allocation94_spill] sm:$0xff] }
 0x153   :  { %9248 = vst [vmem:[#allocation144_spill] sm:$0xff] %v7702_v39  ;;  %4678 = vmatprep.subr.bf16.mxu1 %v9251_v12 }
 0x154   :  { %9249 = vst [vmem:[#allocation145_spill] sm:$0xff] %v7704_v28  ;;  %v282_v49 = vpop.f32.mrb[6].mxu1  ;;  %v9258_v28 = vld [vmem:[#allocation92_spill] sm:$0xff] }
 0x155   :  { %v7708_v20 = vadd.f32 %v282_v49, %v136_v23  ;;  %v284_v13 = vpop.f32.mrb[7].mxu1 }
 0x156   :  { %v7710_v11 = vadd.f32 %v284_v13, %v140_v50  ;;  %4680 = vmatpush1.bf16.msra.mxu1 %v9254_v4  ;;  %v9263_v4 = vld [vmem:[#allocation98_spill] sm:$0xff] }
 0x157   :  { %9252 = vst [vmem:[#allocation146_spill] sm:$0xff] %v7708_v20  ;;  %4682 = vmatprep.subr.bf16.mxu1 %v9255_v14 }
 0x158   :  { %9253 = vst [vmem:[#allocation147_spill] sm:$0xff] %v7710_v11  ;;  %v288_v61 = vpop.f32.mrb[8].mxu1  ;;  %v9262_v11 = vld [vmem:[#allocation96_spill] sm:$0xff] }
 0x159   :  { %v7714_v6 = vadd.f32 %v288_v61, %v136_v23  ;;  %v290_v39 = vpop.f32.mrb[9].mxu1 }
 0x15a   :  { %v7716_v30 = vadd.f32 %v290_v39, %v140_v50  ;;  %4684 = vmatpush1.bf16.msra.mxu1 %v9258_v28  ;;  %v9267_v28 = vld [vmem:[#allocation102_spill] sm:$0xff] }
 0x15b   :  { %9256 = vst [vmem:[#allocation148_spill] sm:$0xff] %v7714_v6  ;;  %4686 = vmatprep.subr.bf16.mxu1 %v9259_v16 }
 0x15c   :  { %9257 = vst [vmem:[#allocation149_spill] sm:$0xff] %v7716_v30  ;;  %v294_v12 = vpop.f32.mrb[10].mxu1  ;;  %v9266_v30 = vld [vmem:[#allocation100_spill] sm:$0xff] }
 0x15d   :  { %v7720_v49 = vadd.f32 %v294_v12, %v136_v23  ;;  %v296_v20 = vpop.f32.mrb[11].mxu1 }
 0x15e   :  { %v7722_v13 = vadd.f32 %v296_v20, %v140_v50  ;;  %4688 = vmatpush1.bf16.msra.mxu1 %v9262_v11  ;;  %v9271_v11 = vld [vmem:[#allocation106_spill] sm:$0xff] }
 0x15f   :  { %9260 = vst [vmem:[#allocation150_spill] sm:$0xff] %v7720_v49  ;;  %4690 = vmatprep.subr.bf16.mxu1 %v9263_v4  ;;  %v9272_v4 = vld [vmem:[#allocation108_spill] sm:$0xff] }
 0x160   :  { %9261 = vst [vmem:[#allocation151_spill] sm:$0xff] %v7722_v13  ;;  %v300_v14 = vpop.f32.mrb[12].mxu1  ;;  %v9270_v13 = vld [vmem:[#allocation104_spill] sm:$0xff] }
 0x161   :  { %v7726_v61 = vadd.f32 %v300_v14, %v136_v23  ;;  %v302_v6 = vpop.f32.mrb[13].mxu1  ;;  %v265_v14 = vadd.f32 %v264_v56, %v136_v23 }
 0x162   :  { %v7728_v39 = vadd.f32 %v302_v6, %v140_v50  ;;  %4692 = vmatpush1.bf16.msra.mxu1 %v9266_v30 }
 0x163   :  { %9264 = vst [vmem:[#allocation152_spill] sm:$0xff] %v7726_v61  ;;  %4694 = vmatprep.subr.bf16.mxu1 %v9267_v28 }
 0x164   :  { %9265 = vst [vmem:[#allocation153_spill] sm:$0xff] %v7728_v39  ;;  %v306_v16 = vpop.f32.mrb[14].mxu1 }
 0x165   :  { %v7732_v12 = vadd.f32 %v306_v16, %v136_v23  ;;  %v308_v49 = vpop.f32.mrb[15].mxu1  ;;  %v267_v16 = vadd.f32 %v266_v37, %v140_v50 }
 0x166   :  { %v7734_v20 = vadd.f32 %v308_v49, %v140_v50  ;;  %4696 = vmatpush1.bf16.msra.mxu1 %v9270_v13 }
 0x167   :  { %9268 = vst [vmem:[#allocation154_spill] sm:$0xff] %v7732_v12  ;;  %4698 = vmatprep.subr.bf16.mxu1 %v9271_v11 }
 0x168   :  { %9269 = vst [vmem:[#allocation155_spill] sm:$0xff] %v7734_v20 }
 0x16a   :  { %4700 = vmatpush1.bf16.msra.mxu1 %v9272_v4 }
 0x16b   :  { %4702 = vmatprep.subr.bf16.mxu1 %v7515_v55  ;;  %v147_v55 = vsub.s32 3, %v7683_v1 }
 0x16e   :  { %4704 = vmatpush1.bf16.msra.mxu1 %v7521_v5 }
 0x16f   :  { %4706 = vmatprep.subr.bf16.mxu1 %v7527_v38  ;;  %v7746_v38 = vrot.slane %v7689_v26, %v147_v55  ;;  %v155_v55 = vsub.s32 5, %v7683_v1 }
 0x172   :  { %4708 = vmatpush1.bf16.msra.mxu1 %v7533_v18 }
 0x173   :  { %4774 = vmatprep.subr.bf16.mxu1 %v7539_v8 }
 0x18a   :  { %v1036_v6 = vpop.f32.mrb[16].mxu0 }
 0x18b   :  { %v1258_v49 = vadd.f32 %v1036_v6, %v265_v14  ;;  %v1038_v20 = vpop.f32.mrb[17].mxu0 }
 0x18c   :  { %v1259_v12 = vadd.f32 %v1038_v20, %v267_v16 }
 0x18d   :  { %v4124_v61 = vmul.f32 -1.442695, %v1258_v49 }
 0x18e   :  { %v4125_v39 = vmul.f32 -1.442695, %v1259_v12 }
 0x190   :  { %6585 = vpow2.f32 %v4125_v39 }
 0x191   :  { %6587 = vpow2.f32 %v4124_v61 }
 0x19a   :  { %v6586_v4 = vpop.eup %6585 }
 0x19b   :  { %v6588_v5 = vpop.eup %6587  ;;  %v1272_v11 = vadd.f32 1.0, %v6586_v4  ;;  %v7754_v4 = vrot.slane %v7689_v26, %v155_v55 }
 0x19c   :  { %v1271_v18 = vadd.f32 1.0, %v6588_v5  ;;  %v151_v5 = vsub.s32 4, %v7683_v1 }
 0x19d   :  { %6589 = vrcp.f32 %v1272_v11  ;;  %9273 = vst [vmem:[#allocation156_spill] sm:$0xff] %v7754_v4 }
 0x19e   :  { %6591 = vrcp.f32 %v1271_v18  ;;  %v7757_v11 = vrot.slane %v7689_v26, %v151_v5 }
 0x1a0   :  { %9274 = vst [vmem:[#allocation157_spill] sm:$0xff] %v7757_v11 }
 0x1a7   :  { %v6590_v39 = vpop.eup %6589 }
 0x1a8   :  { %v6592_v61 = vpop.eup %6591  ;;  %v1281_v20 = vmul.f32 0.0, %v6590_v39 }
 0x1c8   :  { %v1107_v8 = vpop.f32.mrb[16].mxu1 }
 0x1c9   :  { %v1109_v23 = vpop.f32.mrb[17].mxu1 }
 0x1ca   :  { %v1178_v37 = vpop.f32.mrb[14].mxu0  ;;  %v6470_v56 = vadd.f32 %v1109_v23, %v7746_v38 }
 0x1cb   :  { %v1180_v50 = vpop.f32.mrb[15].mxu0  ;;  %v6499_v6 = vadd.f32 %v1178_v37, %v7757_v11 }
 0x1cc   :  { %6593 = vtanh.f32 %v6470_v56  ;;  %v6500_v18 = vadd.f32 %v1180_v50, %v7754_v4  ;;  %v143_v56 = vsub.s32 2, %v7683_v1 }
 0x1cd   :  { %v4127_v23 = vmul.f32 -1.442695, %v6499_v6 }
 0x1ce   :  { %v4128_v49 = vmul.f32 -1.442695, %v6500_v18  ;;  %v7763_v39 = vrot.slane %v7689_v26, %v143_v56 }
 0x1d0   :  { %6595 = vpow2.f32 %v4128_v49  ;;  %9275 = vst [vmem:[#allocation158_spill] sm:$0xff] %v7763_v39 }
 0x1d1   :  { %6597 = vpow2.f32 %v4127_v23 }
 0x1d6   :  { %v6594_v12 = vpop.eup %6593 }
 0x1d7   :  { %v1282_v14 = vmul.f32 %v6594_v12, %v6592_v61  ;;  %v6469_v61 = vadd.f32 %v1107_v8, %v7763_v39  ;;  %v159_v12 = vsub.s32 6, %v7683_v1 }
 0x1d9   :  { %v7749_v16 = vadd.f32 %v1282_v14, %v1281_v20  ;;  %v163_v20 = vsub.s32 7, %v7683_v1  ;;  %v4126_v55 = vmul.f32 -1.442695, %v6469_v61  ;;  %v7769_v37 = vrot.slane %v7689_v26, %v159_v12 }
 0x1da   :  { %v6596_v14 = vpop.eup %6595 }
 0x1db   :  { %v6598_v50 = vpop.eup %6597  ;;  %v1306_v5 = vadd.f32 1.0, %v6596_v14  ;;  %v7772_v18 = vrot.slane %v7689_v26, %v163_v20  ;;  %6599 = vpow2.f32 %v4126_v55 }
 0x1dc   :  { %v1305_v6 = vadd.f32 1.0, %v6598_v50 }
 0x1dd   :  { %6601 = vrcp.f32 %v1306_v5 }
 0x1de   :  { %6603 = vrcp.f32 %v1305_v6 }
 0x1e5   :  { %v6600_v61 = vpop.eup %6599 }
 0x1e6   :  { %v1273_v39 = vadd.f32 1.0, %v6600_v61  ;;  %v9280_v61 = vld [vmem:[#allocation61_spill] sm:$0xff] }
 0x1e7   :  { %v6602_v12 = vpop.eup %6601 }
 0x1e8   :  { %v6604_v14 = vpop.eup %6603  ;;  %v1315_v20 = vmul.f32 0.0, %v6602_v12  ;;  %v9281_v12 = vld [vmem:[#allocation63_spill] sm:$0xff] }
 0x208   :  { %v1249_v49 = vpop.f32.mrb[46].mxu1 }
 0x209   :  { %v6515_v23 = vadd.f32 %v1249_v49, %v7769_v37  ;;  %v1251_v8 = vpop.f32.mrb[47].mxu1 }
 0x20a   :  { %v6516_v56 = vadd.f32 %v1251_v8, %v7772_v18 }
 0x20b   :  { %v4129_v1 = vmul.f32 -1.442695, %v6515_v23 }
 0x20c   :  { %6605 = vtanh.f32 %v6516_v56 }
 0x20d   :  { %6607 = vpow2.f32 %v4129_v1 }
 0x20e   :  { %6609 = vrcp.f32 %v1273_v39  ;;  %v9279_v39 = vld [vmem:[#allocation59_spill] sm:$0xff] }
 0x20f   :  { %6611 = vtanh.f32 %v7749_v16 }
 0x216   :  { %v6606_v4 = vpop.eup %6605 }
 0x217   :  { %v6608_v26 = vpop.eup %6607  ;;  %v1316_v55 = vmul.f32 %v6606_v4, %v6604_v14  ;;  %v9278_v4 = vld [vmem:[#allocation57_spill] sm:$0xff] }
 0x218   :  { %v1307_v50 = vadd.f32 1.0, %v6608_v26  ;;  %v6610_v5 = vpop.eup %6609  ;;  %v9282_v14 = vld [vmem:[#allocation65_spill] sm:$0xff]  ;;  %v9283_v26 = vld [vmem:[#allocation67_spill] sm:$0xff] }
 0x219   :  { %v7777_v49 = vadd.f32 %v1316_v55, %v1315_v20  ;;  %v6612_v6 = vpop.eup %6611  ;;  %v9284_v20 = vld [vmem:[#allocation69_spill] sm:$0xff]  ;;  %v9285_v55 = vld [vmem:[#allocation71_spill] sm:$0xff] }
 0x21a   :  { %6613 = vrcp.f32 %v1307_v50  ;;  %v7782_v1 = vmul.f32 %v6612_v6, %v6610_v5  ;;  %v9286_v50 = vld [vmem:[#allocation73_spill] sm:$0xff]  ;;  %v9287_v5 = vld [vmem:[#allocation75_spill] sm:$0xff] }
 0x21b   :  { %6615 = vtanh.f32 %v7777_v49  ;;  %v9288_v6 = vld [vmem:[#allocation77_spill] sm:$0xff] }
 0x21c   :  { %9277 = vst [vmem:[#allocation160_spill] sm:$0xff] %v7782_v1 }
 0x224   :  { %v6614_v23 = vpop.eup %6613 }
 0x225   :  { %v6616_v8 = vpop.eup %6615 }
 0x226   :  { %v7780_v56 = vmul.f32 %v6616_v8, %v6614_v23  ;;  %v9289_v23 = vld [vmem:[#allocation79_spill] sm:$0xff]  ;;  %v9290_v8 = vld [vmem:[#allocation81_spill] sm:$0xff] }
 0x228   :  { %9276 = vst [vmem:[#allocation159_spill] sm:$0xff] %v7780_v56  ;;  %1386 = vmatprep.mubr.f32.mxu0 %v7780_v56  ;;  %1457 = vmatprep.mubr.f32.mxu1 %v7780_v56 }
 0x229   :  { %1387 = vmatmul.mubr.f32.vlgmr.msra.gmra.mrb[18].mxu0 %v7782_v1  ;;  %1458 = vmatmul.mubr.f32.vlgmr.msra.gmra.mrb[18].mxu1 %v7782_v1 }
 0x22a   :  { %4712 = vmatpush1.bf16.msra.mxu0 %v9278_v4  ;;  %4776 = vmatpush1.bf16.msra.mxu1 %v7543_v40 }
 0x22b   :  { %1528 = vmatprep.mubr.f32.mxu0 %v7780_v56  ;;  %1599 = vmatprep.mubr.f32.mxu1 %v7780_v56  ;;  %v9291_v56 = vld [vmem:[#allocation83_spill] sm:$0xff] }
 0x22c   :  { %4714 = vmatprep.subr.bf16.mxu0 %v9279_v39  ;;  %4778 = vmatprep.subr.bf16.mxu1 %v7547_v43 }
 0x22e   :  { %4716 = vmatpush1.bf16.msra.mxu0 %v9280_v61  ;;  %4780 = vmatpush1.bf16.msra.mxu1 %v7553_v47 }
 0x22f   :  { %4718 = vmatprep.subr.bf16.mxu0 %v9281_v12  ;;  %4782 = vmatprep.subr.bf16.mxu1 %v7556_v24 }
 0x232   :  { %4720 = vmatpush1.bf16.msra.mxu0 %v9282_v14  ;;  %4784 = vmatpush1.bf16.msra.mxu1 %v7562_v21 }
 0x233   :  { %4722 = vmatprep.subr.bf16.mxu0 %v9283_v26  ;;  %4786 = vmatprep.subr.bf16.mxu1 %v7565_v52 }
 0x236   :  { %4724 = vmatpush1.bf16.msra.mxu0 %v9284_v20  ;;  %4788 = vmatpush1.bf16.msra.mxu1 %v7570_v25 }
 0x237   :  { %4726 = vmatprep.subr.bf16.mxu0 %v9285_v55  ;;  %4790 = vmatprep.subr.bf16.mxu1 %v7573_v19 }
 0x23a   :  { %4728 = vmatpush1.bf16.msra.mxu0 %v9286_v50  ;;  %4792 = vmatpush1.bf16.msra.mxu1 %v7578_v34  ;;  %v9292_v34 = vld [vmem:[#allocation85_spill] sm:$0xff] }
 0x23b   :  { %4730 = vmatprep.subr.bf16.mxu0 %v9287_v5  ;;  %4794 = vmatprep.subr.bf16.mxu1 %v7581_v60  ;;  %v9293_v60 = vld [vmem:[#allocation87_spill] sm:$0xff] }
 0x23e   :  { %4732 = vmatpush1.bf16.msra.mxu0 %v9288_v6  ;;  %4796 = vmatpush1.bf16.msra.mxu1 %v7586_v41  ;;  %v9294_v41 = vld [vmem:[#allocation89_spill] sm:$0xff] }
 0x23f   :  { %4734 = vmatprep.subr.bf16.mxu0 %v9289_v23  ;;  %4798 = vmatprep.subr.bf16.mxu1 %v7589_v29  ;;  %v9295_v29 = vld [vmem:[#allocation91_spill] sm:$0xff] }
 0x242   :  { %4736 = vmatpush1.bf16.msra.mxu0 %v9290_v8  ;;  %4800 = vmatpush1.bf16.msra.mxu1 %v7594_v48  ;;  %v9296_v48 = vld [vmem:[#allocation93_spill] sm:$0xff] }
 0x243   :  { %4738 = vmatprep.subr.bf16.mxu0 %v9291_v56  ;;  %4802 = vmatprep.subr.bf16.mxu1 %v7597_v35  ;;  %v9297_v35 = vld [vmem:[#allocation95_spill] sm:$0xff] }
 0x246   :  { %4740 = vmatpush1.bf16.msra.mxu0 %v9292_v34  ;;  %4804 = vmatpush1.bf16.msra.mxu1 %v7602_v58  ;;  %v9298_v58 = vld [vmem:[#allocation97_spill] sm:$0xff] }
 0x247   :  { %4742 = vmatprep.subr.bf16.mxu0 %v9293_v60  ;;  %4806 = vmatprep.subr.bf16.mxu1 %v7605_v42  ;;  %v9299_v42 = vld [vmem:[#allocation99_spill] sm:$0xff] }
 0x24a   :  { %4744 = vmatpush1.bf16.msra.mxu0 %v9294_v41  ;;  %4808 = vmatpush1.bf16.msra.mxu1 %v7610_v2  ;;  %v9300_v2 = vld [vmem:[#allocation101_spill] sm:$0xff] }
 0x24b   :  { %4746 = vmatprep.subr.bf16.mxu0 %v9295_v29  ;;  %4810 = vmatprep.subr.bf16.mxu1 %v7613_v51  ;;  %v9301_v51 = vld [vmem:[#allocation103_spill] sm:$0xff] }
 0x24e   :  { %4748 = vmatpush1.bf16.msra.mxu0 %v9296_v48  ;;  %4812 = vmatpush1.bf16.msra.mxu1 %v7618_v9  ;;  %v9302_v9 = vld [vmem:[#allocation105_spill] sm:$0xff] }
 0x24f   :  { %4750 = vmatprep.subr.bf16.mxu0 %v9297_v35  ;;  %4814 = vmatprep.subr.bf16.mxu1 %v7621_v59  ;;  %v9303_v59 = vld [vmem:[#allocation107_spill] sm:$0xff] }
 0x252   :  { %4752 = vmatpush1.bf16.msra.mxu0 %v9298_v58  ;;  %4816 = vmatpush1.bf16.msra.mxu1 %v7626_v17 }
 0x253   :  { %4754 = vmatprep.subr.bf16.mxu0 %v9299_v42  ;;  %4818 = vmatprep.subr.bf16.mxu1 %v7629_v3 }
 0x256   :  { %4756 = vmatpush1.bf16.msra.mxu0 %v9300_v2  ;;  %4820 = vmatpush1.bf16.msra.mxu1 %v7634_v31 }
 0x257   :  { %4758 = vmatprep.subr.bf16.mxu0 %v9301_v51  ;;  %4822 = vmatprep.subr.bf16.mxu1 %v7637_v10  ;;  %v9304_v10 = vld [vmem:[#allocation115_spill] sm:$0xff] }
 0x25a   :  { %4760 = vmatpush1.bf16.msra.mxu0 %v9302_v9  ;;  %4824 = vmatpush1.bf16.msra.mxu1 %v7642_v44  ;;  %v9305_v44 = vld [vmem:[#allocation117_spill] sm:$0xff] }
 0x25b   :  { %4762 = vmatprep.subr.bf16.mxu0 %v9303_v59  ;;  %4826 = vmatprep.subr.bf16.mxu1 %v7645_v22  ;;  %v9306_v22 = vld [vmem:[#allocation22_spill] sm:$0xff] }
 0x25e   :  { %4764 = vmatpush1.bf16.msra.mxu0 %v7513_v0  ;;  %4828 = vmatpush1.bf16.msra.mxu1 %v7650_v53 }
 0x25f   :  { %4766 = vmatprep.subr.bf16.mxu0 %v7518_v27  ;;  %4830 = vmatprep.subr.bf16.mxu1 %v7653_v36  ;;  %v9307_v36 = vld [vmem:[#allocation23_spill] sm:$0xff] }
 0x262   :  { %4768 = vmatpush1.bf16.msra.mxu0 %v7525_v57  ;;  %4832 = vmatpush1.bf16.msra.mxu1 %v7658_v62  ;;  %v9308_v62 = vld [vmem:[#allocation24_spill] sm:$0xff] }
 0x263   :  { %4770 = vmatprep.subr.bf16.mxu0 %v9304_v10  ;;  %4834 = vmatprep.subr.bf16.mxu1 %v7661_v45  ;;  %v9309_v45 = vld [vmem:[#allocation25_spill] sm:$0xff] }
 0x266   :  { %4772 = vmatpush1.bf16.msra.mxu0 %v9305_v44  ;;  %4836 = vmatpush1.bf16.msra.mxu1 %v7666_v32  ;;  %v9310_v32 = vld [vmem:[#allocation26_spill] sm:$0xff] }
 0x267   :  { %4838 = vmatprep.subr.bf16.mxu0 %v9306_v22  ;;  %4902 = vmatprep.subr.bf16.mxu1 %v7253_v33  ;;  %v9311_v33 = vld [vmem:[#allocation27_spill] sm:$0xff] }
 0x269   :  { %1529 = vmatmul.mubr.f32.vlgmr.msra.gmra.mrb[12].mxu0 %v7782_v1  ;;  %1600 = vmatmul.mubr.f32.vlgmr.msra.gmra.mrb[44].mxu1 %v7782_v1  ;;  %v9312_v1 = vld [vmem:[#allocation28_spill] sm:$0xff] }
 0x26a   :  { %4840 = vmatpush1.bf16.msra.mxu0 %v9307_v36  ;;  %4904 = vmatpush1.bf16.msra.mxu1 %v7328_v7  ;;  %v9313_v36 = vld [vmem:[#allocation66_spill] sm:$0xff]  ;;  %v9314_v7 = vld [vmem:[#allocation29_spill] sm:$0xff] }
 0x26b   :  { %4842 = vmatprep.subr.bf16.mxu0 %v9308_v62  ;;  %4906 = vmatprep.subr.bf16.mxu1 %v7333_v15  ;;  %v9315_v62 = vld [vmem:[#allocation68_spill] sm:$0xff]  ;;  %v9316_v15 = vld [vmem:[#allocation30_spill] sm:$0xff] }
 0x26e   :  { %4844 = vmatpush1.bf16.msra.mxu0 %v9309_v45  ;;  %4908 = vmatpush1.bf16.msra.mxu1 %v7342_v46  ;;  %v9317_v45 = vld [vmem:[#allocation70_spill] sm:$0xff]  ;;  %v9318_v46 = vld [vmem:[#allocation31_spill] sm:$0xff] }
 0x26f   :  { %4846 = vmatprep.subr.bf16.mxu0 %v9310_v32  ;;  %4910 = vmatprep.subr.bf16.mxu1 %v9240_v54  ;;  %v9319_v32 = vld [vmem:[#allocation72_spill] sm:$0xff] }
 0x270   :  { %v9320_v54 = vld [vmem:[#allocation32_spill] sm:$0xff] }
 0x272   :  { %4848 = vmatpush1.bf16.msra.mxu0 %v9311_v33  ;;  %4912 = vmatpush1.bf16.msra.mxu1 %v9241_v63  ;;  %v9321_v33 = vld [vmem:[#allocation74_spill] sm:$0xff]  ;;  %v9322_v63 = vld [vmem:[#allocation33_spill] sm:$0xff] }
 0x273   :  { %4850 = vmatprep.subr.bf16.mxu0 %v9312_v1  ;;  %4914 = vmatprep.subr.bf16.mxu1 %v9313_v36  ;;  %v9323_v1 = vld [vmem:[#allocation76_spill] sm:$0xff]  ;;  %v9324_v36 = vld [vmem:[#allocation34_spill] sm:$0xff] }
 0x276   :  { %4852 = vmatpush1.bf16.msra.mxu0 %v9314_v7  ;;  %4916 = vmatpush1.bf16.msra.mxu1 %v9315_v62  ;;  %v9325_v7 = vld [vmem:[#allocation78_spill] sm:$0xff]  ;;  %v9326_v62 = vld [vmem:[#allocation35_spill] sm:$0xff] }
 0x277   :  { %4854 = vmatprep.subr.bf16.mxu0 %v9316_v15  ;;  %4918 = vmatprep.subr.bf16.mxu1 %v9317_v45  ;;  %v9327_v15 = vld [vmem:[#allocation80_spill] sm:$0xff] }
 0x278   :  { %v9328_v45 = vld [vmem:[#allocation36_spill] sm:$0xff] }
 0x27a   :  { %4856 = vmatpush1.bf16.msra.mxu0 %v9318_v46  ;;  %4920 = vmatpush1.bf16.msra.mxu1 %v9319_v32  ;;  %v9329_v46 = vld [vmem:[#allocation82_spill] sm:$0xff]  ;;  %v9330_v32 = vld [vmem:[#allocation37_spill] sm:$0xff] }
 0x27b   :  { %4858 = vmatprep.subr.bf16.mxu0 %v9320_v54  ;;  %4922 = vmatprep.subr.bf16.mxu1 %v9321_v33  ;;  %v9331_v54 = vld [vmem:[#allocation84_spill] sm:$0xff]  ;;  %v9332_v33 = vld [vmem:[#allocation38_spill] sm:$0xff] }
 0x27e   :  { %4860 = vmatpush1.bf16.msra.mxu0 %v9322_v63  ;;  %4924 = vmatpush1.bf16.msra.mxu1 %v9323_v1  ;;  %v9333_v63 = vld [vmem:[#allocation86_spill] sm:$0xff]  ;;  %v9334_v1 = vld [vmem:[#allocation39_spill] sm:$0xff] }
 0x27f   :  { %4862 = vmatprep.subr.bf16.mxu0 %v9324_v36  ;;  %4926 = vmatprep.subr.bf16.mxu1 %v9325_v7  ;;  %v9335_v36 = vld [vmem:[#allocation88_spill] sm:$0xff]  ;;  %v9336_v7 = vld [vmem:[#allocation41_spill] sm:$0xff] }
 0x282   :  { %4864 = vmatpush1.bf16.msra.mxu0 %v9326_v62  ;;  %4928 = vmatpush1.bf16.msra.mxu1 %v9327_v15  ;;  %v9337_v62 = vld [vmem:[#allocation90_spill] sm:$0xff] }
 0x283   :  { %4866 = vmatprep.subr.bf16.mxu0 %v9328_v45  ;;  %4930 = vmatprep.subr.bf16.mxu1 %v9329_v46  ;;  %v9338_v15 = vld [vmem:[#allocation42_spill] sm:$0xff]  ;;  %v9339_v45 = vld [vmem:[#allocation92_spill] sm:$0xff]  ;;  %v9340_v46 = vld [vmem:[#allocation43_spill] sm:$0xff] }
 0x286   :  { %4868 = vmatpush1.bf16.msra.mxu0 %v9330_v32  ;;  %4932 = vmatpush1.bf16.msra.mxu1 %v9331_v54  ;;  %v9341_v32 = vld [vmem:[#allocation94_spill] sm:$0xff]  ;;  %v9342_v54 = vld [vmem:[#allocation44_spill] sm:$0xff] }
 0x287   :  { %4870 = vmatprep.subr.bf16.mxu0 %v9332_v33  ;;  %4934 = vmatprep.subr.bf16.mxu1 %v9333_v63  ;;  %v9343_v33 = vld [vmem:[#allocation96_spill] sm:$0xff]  ;;  %v9344_v63 = vld [vmem:[#allocation45_spill] sm:$0xff] }
 0x28a   :  { %4872 = vmatpush1.bf16.msra.mxu0 %v9334_v1  ;;  %4936 = vmatpush1.bf16.msra.mxu1 %v9335_v36  ;;  %v9345_v1 = vld [vmem:[#allocation98_spill] sm:$0xff] }
 0x28b   :  { %4874 = vmatprep.subr.bf16.mxu0 %v9336_v7  ;;  %4938 = vmatprep.subr.bf16.mxu1 %v9337_v62  ;;  %v9346_v36 = vld [vmem:[#allocation46_spill] sm:$0xff]  ;;  %v9347_v62 = vld [vmem:[#allocation47_spill] sm:$0xff] }
 0x28c   :  { %v9364_v7 = vld [vmem:[#allocation143_spill] sm:$0xff] }
 0x28e   :  { %4876 = vmatpush1.bf16.msra.mxu0 %v9338_v15  ;;  %4940 = vmatpush1.bf16.msra.mxu1 %v9339_v45  ;;  %v9348_v45 = vld [vmem:[#allocation48_spill] sm:$0xff] }
 0x28f   :  { %4878 = vmatprep.subr.bf16.mxu0 %v9340_v46  ;;  %4942 = vmatprep.subr.bf16.mxu1 %v9341_v32  ;;  %v9349_v32 = vld [vmem:[#allocation49_spill] sm:$0xff]  ;;  %v9363_v46 = vld [vmem:[#allocation142_spill] sm:$0xff] }
 0x292   :  { %4880 = vmatpush1.bf16.msra.mxu0 %v9342_v54  ;;  %4944 = vmatpush1.bf16.msra.mxu1 %v9343_v33  ;;  %v9350_v54 = vld [vmem:[#allocation106_spill] sm:$0xff] }
 0x293   :  { %4882 = vmatprep.subr.bf16.mxu0 %v9344_v63  ;;  %4946 = vmatprep.subr.bf16.mxu1 %v9345_v1  ;;  %v9351_v33 = vld [vmem:[#allocation50_spill] sm:$0xff]  ;;  %v9352_v63 = vld [vmem:[#allocation108_spill] sm:$0xff]  ;;  %v9353_v1 = vld [vmem:[#allocation51_spill] sm:$0xff] }
 0x296   :  { %4884 = vmatpush1.bf16.msra.mxu0 %v9346_v36  ;;  %4948 = vmatpush1.bf16.msra.mxu1 %v9266_v30  ;;  %v9354_v36 = vld [vmem:[#allocation110_spill] sm:$0xff]  ;;  %v9355_v30 = vld [vmem:[#allocation52_spill] sm:$0xff] }
 0x297   :  { %4886 = vmatprep.subr.bf16.mxu0 %v9347_v62  ;;  %4950 = vmatprep.subr.bf16.mxu1 %v9267_v28  ;;  %v9356_v62 = vld [vmem:[#allocation112_spill] sm:$0xff]  ;;  %v9357_v28 = vld [vmem:[#allocation53_spill] sm:$0xff] }
 0x29a   :  { %4888 = vmatpush1.bf16.msra.mxu0 %v9348_v45  ;;  %4952 = vmatpush1.bf16.msra.mxu1 %v9270_v13  ;;  %v9358_v45 = vld [vmem:[#allocation114_spill] sm:$0xff] }
 0x29b   :  { %4890 = vmatprep.subr.bf16.mxu0 %v9349_v32  ;;  %4954 = vmatprep.subr.bf16.mxu1 %v9350_v54  ;;  %v9359_v13 = vld [vmem:[#allocation54_spill] sm:$0xff]  ;;  %v9360_v32 = vld [vmem:[#allocation116_spill] sm:$0xff]  ;;  %v9361_v54 = vld [vmem:[#allocation55_spill] sm:$0xff] }
 0x29e   :  { %4892 = vmatpush1.bf16.msra.mxu0 %v9351_v33  ;;  %4956 = vmatpush1.bf16.msra.mxu1 %v9352_v63  ;;  %v9362_v33 = vld [vmem:[#allocation118_spill] sm:$0xff] }
 0x29f   :  { %4894 = vmatprep.subr.bf16.mxu0 %v9353_v1  ;;  %4958 = vmatprep.subr.bf16.mxu1 %v9354_v36 }
 0x2a2   :  { %4896 = vmatpush1.bf16.msra.mxu0 %v9355_v30  ;;  %4960 = vmatpush1.bf16.msra.mxu1 %v9356_v62 }
 0x2a3   :  { %4898 = vmatprep.subr.bf16.mxu0 %v9357_v28  ;;  %4962 = vmatprep.subr.bf16.mxu1 %v9358_v45 }
 0x2a6   :  { %4900 = vmatpush1.bf16.msra.mxu0 %v9359_v13  ;;  %4964 = vmatpush1.bf16.msra.mxu1 %v9360_v32 }
 0x2a7   :  { %4966 = vmatprep.subr.bf16.mxu0 %v9361_v54  ;;  %5030 = vmatprep.subr.bf16.mxu1 %v9362_v33 }
 0x2fc   :  { %v1388_v63 = vpop.f32.mrb[18].mxu0  ;;  %v1459_v1 = vpop.f32.mrb[18].mxu1 }
 0x2fd   :  { %v1611_v36 = vadd.f32 %v1388_v63, %v9363_v46  ;;  %v1390_v15 = vpop.f32.mrb[19].mxu0  ;;  %v1461_v30 = vpop.f32.mrb[19].mxu1 }
 0x2fe   :  { %v1612_v62 = vadd.f32 %v1390_v15, %v9364_v7  ;;  %v6472_v13 = vadd.f32 %v1461_v30, %v7746_v38 }
 0x2ff   :  { %v4130_v22 = vmul.f32 -1.442695, %v1611_v36 }
 0x300   :  { %v4131_v28 = vmul.f32 -1.442695, %v1612_v62 }
 0x301   :  { %6617 = vpow2.f32 %v4130_v22 }
 0x302   :  { %6619 = vpow2.f32 %v4131_v28 }
 0x303   :  { %6621 = vtanh.f32 %v6472_v13 }
 0x30b   :  { %v6618_v45 = vpop.eup %6617 }
 0x30c   :  { %v1624_v32 = vadd.f32 1.0, %v6618_v45  ;;  %v6620_v44 = vpop.eup %6619  ;;  %v9365_v45 = vld [vmem:[#allocation156_spill] sm:$0xff] }
 0x30d   :  { %v1625_v33 = vadd.f32 1.0, %v6620_v44  ;;  %v6622_v54 = vpop.eup %6621  ;;  %v9366_v44 = vld [vmem:[#allocation158_spill] sm:$0xff] }
 0x30e   :  { %6623 = vrcp.f32 %v1624_v32 }
 0x30f   :  { %6625 = vrcp.f32 %v1625_v33 }
 0x318   :  { %v6624_v10 = vpop.eup %6623 }
 0x319   :  { %v1635_v46 = vmul.f32 %v6624_v10, %v6622_v54  ;;  %v6626_v63 = vpop.eup %6625  ;;  %v6471_v10 = vadd.f32 %v1459_v1, %v9366_v44 }
 0x31a   :  { %v1634_v57 = vmul.f32 %v6626_v63, %v7749_v16 }
 0x31c   :  { %v7924_v7 = vadd.f32 %v1635_v46, %v1634_v57  ;;  %v4132_v46 = vmul.f32 -1.442695, %v6471_v10 }
 0x33c   :  { %v1530_v62 = vpop.f32.mrb[12].mxu0  ;;  %v1601_v15 = vpop.f32.mrb[44].mxu1 }
 0x33d   :  { %v6497_v28 = vadd.f32 %v1530_v62, %v7757_v11  ;;  %v1532_v22 = vpop.f32.mrb[13].mxu0  ;;  %v1603_v36 = vpop.f32.mrb[45].mxu1  ;;  %v6513_v33 = vadd.f32 %v1601_v15, %v7769_v37 }
 0x33e   :  { %v6498_v30 = vadd.f32 %v1532_v22, %v9365_v45  ;;  %v6514_v54 = vadd.f32 %v1603_v36, %v7772_v18 }
 0x33f   :  { %v4133_v13 = vmul.f32 -1.442695, %v6497_v28  ;;  %v4135_v57 = vmul.f32 -1.442695, %v6513_v33 }
 0x340   :  { %v4134_v32 = vmul.f32 -1.442695, %v6498_v30 }
 0x341   :  { %6627 = vpow2.f32 %v4133_v13 }
 0x342   :  { %6629 = vpow2.f32 %v4134_v32 }
 0x343   :  { %6631 = vtanh.f32 %v6514_v54 }
 0x344   :  { %6633 = vpow2.f32 %v4135_v57 }
 0x34b   :  { %v6628_v16 = vpop.eup %6627 }
 0x34c   :  { %v1659_v63 = vadd.f32 1.0, %v6628_v16  ;;  %v6630_v62 = vpop.eup %6629 }
 0x34d   :  { %v1660_v11 = vadd.f32 1.0, %v6630_v62  ;;  %v6632_v28 = vpop.eup %6631  ;;  %v9370_v62 = vld [vmem:[#allocation120_spill] sm:$0xff] }
 0x34e   :  { %6635 = vrcp.f32 %v1659_v63  ;;  %v6634_v22 = vpop.eup %6633 }
 0x34f   :  { %6637 = vpow2.f32 %v4132_v46  ;;  %v1661_v1 = vadd.f32 1.0, %v6634_v22  ;;  %v9372_v22 = vld [vmem:[#allocation122_spill] sm:$0xff] }
 0x350   :  { %6639 = vrcp.f32 %v1660_v11 }
 0x351   :  { %6641 = vtanh.f32 %v7924_v7 }
 0x352   :  { %6643 = vrcp.f32 %v1661_v1  ;;  %v9377_v1 = vld [vmem:[#allocation127_spill] sm:$0xff] }
 0x358   :  { %v6636_v30 = vpop.eup %6635 }
 0x359   :  { %v6638_v13 = vpop.eup %6637  ;;  %v1670_v15 = vmul.f32 %v6636_v30, %v6632_v28  ;;  %v9371_v28 = vld [vmem:[#allocation121_spill] sm:$0xff]  ;;  %v9373_v30 = vld [vmem:[#allocation123_spill] sm:$0xff] }
 0x35a   :  { %v6640_v32 = vpop.eup %6639  ;;  %v1626_v33 = vadd.f32 1.0, %v6638_v13  ;;  %v9374_v13 = vld [vmem:[#allocation124_spill] sm:$0xff] }
 0x35b   :  { %v1669_v36 = vmul.f32 %v6640_v32, %v7777_v49  ;;  %v6642_v54 = vpop.eup %6641  ;;  %v9369_v49 = vld [vmem:[#allocation119_spill] sm:$0xff]  ;;  %v9376_v32 = vld [vmem:[#allocation126_spill] sm:$0xff] }
 0x35c   :  { %v6644_v11 = vpop.eup %6643 }
 0x35d   :  { %v7933_v10 = vadd.f32 %v1670_v15, %v1669_v36  ;;  %v9375_v15 = vld [vmem:[#allocation125_spill] sm:$0xff]  ;;  %v9378_v36 = vld [vmem:[#allocation128_spill] sm:$0xff] }
 0x35f   :  { %6645 = vtanh.f32 %v7933_v10 }
 0x360   :  { %6647 = vrcp.f32 %v1626_v33  ;;  %v9379_v33 = vld [vmem:[#allocation129_spill] sm:$0xff] }
 0x369   :  { %v6646_v57 = vpop.eup %6645 }
 0x36a   :  { %v6648_v16 = vpop.eup %6647  ;;  %v7936_v46 = vmul.f32 %v6646_v57, %v6644_v11  ;;  %v9381_v11 = vld [vmem:[#allocation134_spill] sm:$0xff]  ;;  %v9382_v57 = vld [vmem:[#allocation135_spill] sm:$0xff] }
 0x36b   :  { %v7938_v63 = vmul.f32 %v6648_v16, %v6642_v54  ;;  %v9380_v54 = vld [vmem:[#allocation130_spill] sm:$0xff]  ;;  %v9383_v16 = vld [vmem:[#allocation136_spill] sm:$0xff] }
 0x36c   :  { %9367 = vst [vmem:[#allocation57_spill] sm:$0xff] %v7936_v46  ;;  %1740 = vmatprep.mubr.f32.mxu0 %v7936_v46  ;;  %1811 = vmatprep.mubr.f32.mxu1 %v7936_v46 }
 0x36d   :  { %9368 = vst [vmem:[#allocation59_spill] sm:$0xff] %v7938_v63  ;;  %1741 = vmatmul.mubr.f32.vlgmr.msra.gmra.mrb[20].mxu0 %v7938_v63  ;;  %1812 = vmatmul.mubr.f32.vlgmr.msra.gmra.mrb[20].mxu1 %v7938_v63 }
 0x36e   :  { %4968 = vmatpush1.bf16.msra.mxu0 %v9278_v4  ;;  %5032 = vmatpush1.bf16.msra.mxu1 %v7543_v40 }
 0x36f   :  { %1882 = vmatprep.mubr.f32.mxu0 %v7936_v46  ;;  %1953 = vmatprep.mubr.f32.mxu1 %v7936_v46  ;;  %v9384_v46 = vld [vmem:[#allocation138_spill] sm:$0xff] }
 0x370   :  { %4970 = vmatprep.subr.bf16.mxu0 %v9279_v39  ;;  %5034 = vmatprep.subr.bf16.mxu1 %v7547_v43 }
 0x372   :  { %4972 = vmatpush1.bf16.msra.mxu0 %v9280_v61  ;;  %5036 = vmatpush1.bf16.msra.mxu1 %v7553_v47 }
 0x373   :  { %4974 = vmatprep.subr.bf16.mxu0 %v9281_v12  ;;  %5038 = vmatprep.subr.bf16.mxu1 %v7556_v24 }
 0x376   :  { %4976 = vmatpush1.bf16.msra.mxu0 %v9282_v14  ;;  %5040 = vmatpush1.bf16.msra.mxu1 %v7562_v21 }
 0x377   :  { %4978 = vmatprep.subr.bf16.mxu0 %v9283_v26  ;;  %5042 = vmatprep.subr.bf16.mxu1 %v7565_v52 }
 0x37a   :  { %4980 = vmatpush1.bf16.msra.mxu0 %v9284_v20  ;;  %5044 = vmatpush1.bf16.msra.mxu1 %v7570_v25 }
 0x37b   :  { %4982 = vmatprep.subr.bf16.mxu0 %v9285_v55  ;;  %5046 = vmatprep.subr.bf16.mxu1 %v7573_v19 }
 0x37e   :  { %4984 = vmatpush1.bf16.msra.mxu0 %v9286_v50  ;;  %5048 = vmatpush1.bf16.msra.mxu1 %v9369_v49 }
 0x37f   :  { %4986 = vmatprep.subr.bf16.mxu0 %v9287_v5  ;;  %5050 = vmatprep.subr.bf16.mxu1 %v9370_v62 }
 0x382   :  { %4988 = vmatpush1.bf16.msra.mxu0 %v9288_v6  ;;  %5052 = vmatpush1.bf16.msra.mxu1 %v9371_v28 }
 0x383   :  { %4990 = vmatprep.subr.bf16.mxu0 %v9289_v23  ;;  %5054 = vmatprep.subr.bf16.mxu1 %v9372_v22 }
 0x386   :  { %4992 = vmatpush1.bf16.msra.mxu0 %v9290_v8  ;;  %5056 = vmatpush1.bf16.msra.mxu1 %v9373_v30 }
 0x387   :  { %4994 = vmatprep.subr.bf16.mxu0 %v9291_v56  ;;  %5058 = vmatprep.subr.bf16.mxu1 %v9374_v13 }
 0x38a   :  { %4996 = vmatpush1.bf16.msra.mxu0 %v9292_v34  ;;  %5060 = vmatpush1.bf16.msra.mxu1 %v9375_v15 }
 0x38b   :  { %4998 = vmatprep.subr.bf16.mxu0 %v9293_v60  ;;  %5062 = vmatprep.subr.bf16.mxu1 %v9376_v32 }
 0x38e   :  { %5000 = vmatpush1.bf16.msra.mxu0 %v9294_v41  ;;  %5064 = vmatpush1.bf16.msra.mxu1 %v9377_v1 }
 0x38f   :  { %5002 = vmatprep.subr.bf16.mxu0 %v9295_v29  ;;  %5066 = vmatprep.subr.bf16.mxu1 %v9378_v36 }
 0x392   :  { %5004 = vmatpush1.bf16.msra.mxu0 %v9296_v48  ;;  %5068 = vmatpush1.bf16.msra.mxu1 %v9379_v33 }
 0x393   :  { %5006 = vmatprep.subr.bf16.mxu0 %v9297_v35  ;;  %5070 = vmatprep.subr.bf16.mxu1 %v9380_v54 }
 0x396   :  { %5008 = vmatpush1.bf16.msra.mxu0 %v9298_v58  ;;  %5072 = vmatpush1.bf16.msra.mxu1 %v7626_v17 }
 0x397   :  { %5010 = vmatprep.subr.bf16.mxu0 %v9299_v42  ;;  %5074 = vmatprep.subr.bf16.mxu1 %v7629_v3  ;;  %v9458_v3 = vld [vmem:[#allocation145_spill] sm:$0xff] }
 0x39a   :  { %5012 = vmatpush1.bf16.msra.mxu0 %v9300_v2  ;;  %5076 = vmatpush1.bf16.msra.mxu1 %v7634_v31  ;;  %v9385_v31 = vld [vmem:[#allocation113_spill] sm:$0xff] }
 0x39b   :  { %5014 = vmatprep.subr.bf16.mxu0 %v9301_v51  ;;  %5078 = vmatprep.subr.bf16.mxu1 %v9381_v11  ;;  %v9386_v51 = vld [vmem:[#allocation139_spill] sm:$0xff] }
 0x39c   :  { %v9387_v11 = vld [vmem:[#allocation115_spill] sm:$0xff] }
 0x39e   :  { %5016 = vmatpush1.bf16.msra.mxu0 %v9302_v9  ;;  %5080 = vmatpush1.bf16.msra.mxu1 %v9382_v57  ;;  %v9388_v9 = vld [vmem:[#allocation140_spill] sm:$0xff]  ;;  %v9389_v57 = vld [vmem:[#allocation117_spill] sm:$0xff] }
 0x39f   :  { %5018 = vmatprep.subr.bf16.mxu0 %v9303_v59  ;;  %5082 = vmatprep.subr.bf16.mxu1 %v9383_v16  ;;  %v9390_v59 = vld [vmem:[#allocation141_spill] sm:$0xff]  ;;  %v9391_v16 = vld [vmem:[#allocation22_spill] sm:$0xff] }
 0x3a2   :  { %5020 = vmatpush1.bf16.msra.mxu0 %v7513_v0  ;;  %5084 = vmatpush1.bf16.msra.mxu1 %v7650_v53  ;;  %v9392_v0 = vld [vmem:[#allocation40_spill] sm:$0xff] }
 0x3a3   :  { %5022 = vmatprep.subr.bf16.mxu0 %v7518_v27  ;;  %5086 = vmatprep.subr.bf16.mxu1 %v9384_v46  ;;  %v9393_v46 = vld [vmem:[#allocation23_spill] sm:$0xff]  ;;  %v9402_v27 = vld [vmem:[#allocation64_spill] sm:$0xff] }
 0x3a4   :  { %v9457_v53 = vld [vmem:[#allocation144_spill] sm:$0xff] }
 0x3a6   :  { %5024 = vmatpush1.bf16.msra.mxu0 %v9385_v31  ;;  %5088 = vmatpush1.bf16.msra.mxu1 %v9386_v51  ;;  %v9394_v31 = vld [vmem:[#allocation56_spill] sm:$0xff] }
 0x3a7   :  { %5026 = vmatprep.subr.bf16.mxu0 %v9387_v11  ;;  %5090 = vmatprep.subr.bf16.mxu1 %v9388_v9  ;;  %v9395_v51 = vld [vmem:[#allocation24_spill] sm:$0xff]  ;;  %v9396_v11 = vld [vmem:[#allocation58_spill] sm:$0xff]  ;;  %v9397_v9 = vld [vmem:[#allocation25_spill] sm:$0xff] }
 0x3aa   :  { %5028 = vmatpush1.bf16.msra.mxu0 %v9389_v57  ;;  %5092 = vmatpush1.bf16.msra.mxu1 %v9390_v59  ;;  %v9398_v57 = vld [vmem:[#allocation60_spill] sm:$0xff]  ;;  %v9399_v59 = vld [vmem:[#allocation26_spill] sm:$0xff] }
 0x3ab   :  { %5094 = vmatprep.subr.bf16.mxu0 %v9391_v16  ;;  %5158 = vmatprep.subr.bf16.mxu1 %v9392_v0  ;;  %v9400_v16 = vld [vmem:[#allocation62_spill] sm:$0xff]  ;;  %v9401_v0 = vld [vmem:[#allocation27_spill] sm:$0xff] }
 0x3ad   :  { %1883 = vmatmul.mubr.f32.vlgmr.msra.gmra.mrb[10].mxu0 %v7938_v63  ;;  %1954 = vmatmul.mubr.f32.vlgmr.msra.gmra.mrb[42].mxu1 %v7938_v63  ;;  %v9403_v63 = vld [vmem:[#allocation28_spill] sm:$0xff] }
 0x3ae   :  { %5096 = vmatpush1.bf16.msra.mxu0 %v9393_v46  ;;  %5160 = vmatpush1.bf16.msra.mxu1 %v9394_v31  ;;  %v9404_v46 = vld [vmem:[#allocation66_spill] sm:$0xff]  ;;  %v9405_v31 = vld [vmem:[#allocation29_spill] sm:$0xff] }
 0x3af   :  { %5098 = vmatprep.subr.bf16.mxu0 %v9395_v51  ;;  %5162 = vmatprep.subr.bf16.mxu1 %v9396_v11  ;;  %v9406_v51 = vld [vmem:[#allocation68_spill] sm:$0xff]  ;;  %v9407_v11 = vld [vmem:[#allocation30_spill] sm:$0xff] }
 0x3b2   :  { %5100 = vmatpush1.bf16.msra.mxu0 %v9397_v9  ;;  %5164 = vmatpush1.bf16.msra.mxu1 %v9398_v57  ;;  %v9408_v9 = vld [vmem:[#allocation70_spill] sm:$0xff]  ;;  %v9409_v57 = vld [vmem:[#allocation31_spill] sm:$0xff] }
 0x3b3   :  { %5102 = vmatprep.subr.bf16.mxu0 %v9399_v59  ;;  %5166 = vmatprep.subr.bf16.mxu1 %v9400_v16  ;;  %v9410_v59 = vld [vmem:[#allocation72_spill] sm:$0xff] }
 0x3b4   :  { %v9411_v16 = vld [vmem:[#allocation32_spill] sm:$0xff] }
 0x3b6   :  { %5104 = vmatpush1.bf16.msra.mxu0 %v9401_v0  ;;  %5168 = vmatpush1.bf16.msra.mxu1 %v9402_v27  ;;  %v9412_v0 = vld [vmem:[#allocation74_spill] sm:$0xff]  ;;  %v9413_v27 = vld [vmem:[#allocation33_spill] sm:$0xff] }
 0x3b7   :  { %5106 = vmatprep.subr.bf16.mxu0 %v9403_v63  ;;  %5170 = vmatprep.subr.bf16.mxu1 %v9404_v46  ;;  %v9414_v63 = vld [vmem:[#allocation76_spill] sm:$0xff]  ;;  %v9415_v46 = vld [vmem:[#allocation34_spill] sm:$0xff] }
 0x3ba   :  { %5108 = vmatpush1.bf16.msra.mxu0 %v9405_v31  ;;  %5172 = vmatpush1.bf16.msra.mxu1 %v9406_v51  ;;  %v9416_v31 = vld [vmem:[#allocation78_spill] sm:$0xff]  ;;  %v9417_v51 = vld [vmem:[#allocation35_spill] sm:$0xff] }
 0x3bb   :  { %5110 = vmatprep.subr.bf16.mxu0 %v9407_v11  ;;  %5174 = vmatprep.subr.bf16.mxu1 %v9408_v9  ;;  %v9418_v11 = vld [vmem:[#allocation80_spill] sm:$0xff] }
 0x3bc   :  { %v9419_v9 = vld [vmem:[#allocation36_spill] sm:$0xff] }
 0x3be   :  { %5112 = vmatpush1.bf16.msra.mxu0 %v9409_v57  ;;  %5176 = vmatpush1.bf16.msra.mxu1 %v9410_v59  ;;  %v9420_v57 = vld [vmem:[#allocation82_spill] sm:$0xff]  ;;  %v9421_v59 = vld [vmem:[#allocation37_spill] sm:$0xff] }
 0x3bf   :  { %5114 = vmatprep.subr.bf16.mxu0 %v9411_v16  ;;  %5178 = vmatprep.subr.bf16.mxu1 %v9412_v0  ;;  %v9422_v16 = vld [vmem:[#allocation84_spill] sm:$0xff]  ;;  %v9423_v0 = vld [vmem:[#allocation38_spill] sm:$0xff] }
 0x3c2   :  { %5116 = vmatpush1.bf16.msra.mxu0 %v9413_v27  ;;  %5180 = vmatpush1.bf16.msra.mxu1 %v9414_v63  ;;  %v9424_v27 = vld [vmem:[#allocation86_spill] sm:$0xff]  ;;  %v9425_v63 = vld [vmem:[#allocation39_spill] sm:$0xff] }
 0x3c3   :  { %5118 = vmatprep.subr.bf16.mxu0 %v9415_v46  ;;  %5182 = vmatprep.subr.bf16.mxu1 %v9416_v31  ;;  %v9426_v46 = vld [vmem:[#allocation88_spill] sm:$0xff]  ;;  %v9427_v31 = vld [vmem:[#allocation41_spill] sm:$0xff] }
 0x3c6   :  { %5120 = vmatpush1.bf16.msra.mxu0 %v9417_v51  ;;  %5184 = vmatpush1.bf16.msra.mxu1 %v9418_v11  ;;  %v9428_v51 = vld [vmem:[#allocation90_spill] sm:$0xff] }
 0x3c7   :  { %5122 = vmatprep.subr.bf16.mxu0 %v9419_v9  ;;  %5186 = vmatprep.subr.bf16.mxu1 %v9420_v57  ;;  %v9429_v11 = vld [vmem:[#allocation42_spill] sm:$0xff]  ;;  %v9430_v9 = vld [vmem:[#allocation92_spill] sm:$0xff]  ;;  %v9431_v57 = vld [vmem:[#allocation43_spill] sm:$0xff] }
 0x3ca   :  { %5124 = vmatpush1.bf16.msra.mxu0 %v9421_v59  ;;  %5188 = vmatpush1.bf16.msra.mxu1 %v9422_v16  ;;  %v9432_v59 = vld [vmem:[#allocation94_spill] sm:$0xff]  ;;  %v9433_v16 = vld [vmem:[#allocation44_spill] sm:$0xff] }
 0x3cb   :  { %5126 = vmatprep.subr.bf16.mxu0 %v9423_v0  ;;  %5190 = vmatprep.subr.bf16.mxu1 %v9424_v27  ;;  %v9434_v0 = vld [vmem:[#allocation96_spill] sm:$0xff]  ;;  %v9435_v27 = vld [vmem:[#allocation45_spill] sm:$0xff] }
 0x3ce   :  { %5128 = vmatpush1.bf16.msra.mxu0 %v9425_v63  ;;  %5192 = vmatpush1.bf16.msra.mxu1 %v9426_v46  ;;  %v9436_v63 = vld [vmem:[#allocation98_spill] sm:$0xff] }
 0x3cf   :  { %5130 = vmatprep.subr.bf16.mxu0 %v9427_v31  ;;  %5194 = vmatprep.subr.bf16.mxu1 %v9428_v51  ;;  %v9437_v46 = vld [vmem:[#allocation46_spill] sm:$0xff]  ;;  %v9438_v31 = vld [vmem:[#allocation100_spill] sm:$0xff]  ;;  %v9439_v51 = vld [vmem:[#allocation47_spill] sm:$0xff] }
 0x3d2   :  { %5132 = vmatpush1.bf16.msra.mxu0 %v9429_v11  ;;  %5196 = vmatpush1.bf16.msra.mxu1 %v9430_v9  ;;  %v9440_v11 = vld [vmem:[#allocation102_spill] sm:$0xff]  ;;  %v9441_v9 = vld [vmem:[#allocation48_spill] sm:$0xff] }
 0x3d3   :  { %5134 = vmatprep.subr.bf16.mxu0 %v9431_v57  ;;  %5198 = vmatprep.subr.bf16.mxu1 %v9432_v59  ;;  %v9442_v57 = vld [vmem:[#allocation104_spill] sm:$0xff]  ;;  %v9443_v59 = vld [vmem:[#allocation49_spill] sm:$0xff] }
 0x3d6   :  { %5136 = vmatpush1.bf16.msra.mxu0 %v9433_v16  ;;  %5200 = vmatpush1.bf16.msra.mxu1 %v9434_v0  ;;  %v9444_v16 = vld [vmem:[#allocation106_spill] sm:$0xff] }
 0x3d7   :  { %5138 = vmatprep.subr.bf16.mxu0 %v9435_v27  ;;  %5202 = vmatprep.subr.bf16.mxu1 %v9436_v63  ;;  %v9445_v0 = vld [vmem:[#allocation50_spill] sm:$0xff]  ;;  %v9446_v27 = vld [vmem:[#allocation108_spill] sm:$0xff]  ;;  %v9447_v63 = vld [vmem:[#allocation51_spill] sm:$0xff] }
 0x3da   :  { %5140 = vmatpush1.bf16.msra.mxu0 %v9437_v46  ;;  %5204 = vmatpush1.bf16.msra.mxu1 %v9438_v31  ;;  %v9448_v46 = vld [vmem:[#allocation110_spill] sm:$0xff]  ;;  %v9449_v31 = vld [vmem:[#allocation52_spill] sm:$0xff] }
 0x3db   :  { %5142 = vmatprep.subr.bf16.mxu0 %v9439_v51  ;;  %5206 = vmatprep.subr.bf16.mxu1 %v9440_v11  ;;  %v9450_v51 = vld [vmem:[#allocation112_spill] sm:$0xff]  ;;  %v9451_v11 = vld [vmem:[#allocation53_spill] sm:$0xff] }
 0x3de   :  { %5144 = vmatpush1.bf16.msra.mxu0 %v9441_v9  ;;  %5208 = vmatpush1.bf16.msra.mxu1 %v9442_v57  ;;  %v9452_v9 = vld [vmem:[#allocation114_spill] sm:$0xff] }
 0x3df   :  { %5146 = vmatprep.subr.bf16.mxu0 %v9443_v59  ;;  %5210 = vmatprep.subr.bf16.mxu1 %v9444_v16  ;;  %v9453_v57 = vld [vmem:[#allocation54_spill] sm:$0xff]  ;;  %v9454_v59 = vld [vmem:[#allocation116_spill] sm:$0xff]  ;;  %v9455_v16 = vld [vmem:[#allocation55_spill] sm:$0xff] }
 0x3e2   :  { %5148 = vmatpush1.bf16.msra.mxu0 %v9445_v0  ;;  %5212 = vmatpush1.bf16.msra.mxu1 %v9446_v27  ;;  %v9456_v0 = vld [vmem:[#allocation118_spill] sm:$0xff] }
 0x3e3   :  { %5150 = vmatprep.subr.bf16.mxu0 %v9447_v63  ;;  %5214 = vmatprep.subr.bf16.mxu1 %v9448_v46 }
 0x3e6   :  { %5152 = vmatpush1.bf16.msra.mxu0 %v9449_v31  ;;  %5216 = vmatpush1.bf16.msra.mxu1 %v9450_v51 }
 0x3e7   :  { %5154 = vmatprep.subr.bf16.mxu0 %v9451_v11  ;;  %5218 = vmatprep.subr.bf16.mxu1 %v9452_v9 }
 0x3ea   :  { %5156 = vmatpush1.bf16.msra.mxu0 %v9453_v57  ;;  %5220 = vmatpush1.bf16.msra.mxu1 %v9454_v59 }
 0x3eb   :  { %5222 = vmatprep.subr.bf16.mxu0 %v9455_v16  ;;  %5286 = vmatprep.subr.bf16.mxu1 %v9456_v0 }
 0x440   :  { %v1742_v27 = vpop.f32.mrb[20].mxu0  ;;  %v1813_v63 = vpop.f32.mrb[20].mxu1 }
 0x441   :  { %v1965_v46 = vadd.f32 %v1742_v27, %v9457_v53  ;;  %v1744_v2 = vpop.f32.mrb[21].mxu0  ;;  %v1815_v31 = vpop.f32.mrb[21].mxu1 }
 0x442   :  { %v1966_v51 = vadd.f32 %v1744_v2, %v9458_v3  ;;  %v6474_v57 = vadd.f32 %v1815_v31, %v7746_v38  ;;  %v9459_v3 = vld [vmem:[#allocation157_spill] sm:$0xff] }
 0x443   :  { %v4136_v42 = vmul.f32 -1.442695, %v1965_v46 }
 0x444   :  { %v4137_v11 = vmul.f32 -1.442695, %v1966_v51 }
 0x445   :  { %6649 = vpow2.f32 %v4136_v42 }
 0x446   :  { %6651 = vpow2.f32 %v4137_v11 }
 0x447   :  { %6653 = vtanh.f32 %v6474_v57 }
 0x44f   :  { %v6650_v9 = vpop.eup %6649 }
 0x450   :  { %v1978_v59 = vadd.f32 1.0, %v6650_v9  ;;  %v6652_v17 = vpop.eup %6651 }
 0x451   :  { %v1979_v0 = vadd.f32 1.0, %v6652_v17  ;;  %v6654_v16 = vpop.eup %6653 }
 0x452   :  { %6655 = vrcp.f32 %v1978_v59 }
 0x453   :  { %6657 = vrcp.f32 %v1979_v0 }
 0x45c   :  { %v6656_v58 = vpop.eup %6655 }
 0x45d   :  { %v1989_v53 = vmul.f32 %v6656_v58, %v6654_v16  ;;  %v6658_v27 = vpop.eup %6657  ;;  %v6473_v58 = vadd.f32 %v1813_v63, %v9366_v44 }
 0x45e   :  { %v1988_v54 = vmul.f32 %v6658_v27, %v7924_v7 }
 0x45f   :  { %v4138_v16 = vmul.f32 -1.442695, %v6473_v58 }
 0x460   :  { %v8080_v2 = vadd.f32 %v1989_v53, %v1988_v54 }
 0x480   :  { %v1884_v51 = vpop.f32.mrb[10].mxu0  ;;  %v1955_v42 = vpop.f32.mrb[42].mxu1 }
 0x481   :  { %v6495_v46 = vadd.f32 %v1884_v51, %v9459_v3  ;;  %v1886_v31 = vpop.f32.mrb[11].mxu0  ;;  %v1957_v11 = vpop.f32.mrb[43].mxu1  ;;  %v6511_v17 = vadd.f32 %v1955_v42, %v7769_v37 }
 0x482   :  { %v6496_v9 = vadd.f32 %v1886_v31, %v9365_v45  ;;  %v6512_v0 = vadd.f32 %v1957_v11, %v7772_v18 }
 0x483   :  { %v4139_v57 = vmul.f32 -1.442695, %v6495_v46  ;;  %v4141_v7 = vmul.f32 -1.442695, %v6511_v17 }
 0x484   :  { %v4140_v59 = vmul.f32 -1.442695, %v6496_v9 }
 0x485   :  { %6659 = vpow2.f32 %v4139_v57 }
 0x486   :  { %6661 = vpow2.f32 %v4140_v59 }
 0x487   :  { %6663 = vtanh.f32 %v6512_v0 }
 0x488   :  { %6665 = vpow2.f32 %v4141_v7 }
 0x48f   :  { %v6660_v54 = vpop.eup %6659 }
 0x490   :  { %v2013_v53 = vadd.f32 1.0, %v6660_v54  ;;  %v6662_v27 = vpop.eup %6661 }
 0x491   :  { %v2014_v51 = vadd.f32 1.0, %v6662_v27  ;;  %v6664_v46 = vpop.eup %6663 }
 0x492   :  { %6667 = vrcp.f32 %v2013_v53  ;;  %v6666_v31 = vpop.eup %6665 }
 0x493   :  { %6669 = vpow2.f32 %v4138_v16  ;;  %v2015_v63 = vadd.f32 1.0, %v6666_v31  ;;  %v9465_v31 = vld [vmem:[#allocation99_spill] sm:$0xff] }
 0x494   :  { %6671 = vrcp.f32 %v2014_v51  ;;  %v9463_v51 = vld [vmem:[#allocation97_spill] sm:$0xff] }
 0x495   :  { %6673 = vtanh.f32 %v8080_v2 }
 0x496   :  { %6675 = vrcp.f32 %v2015_v63  ;;  %v9470_v63 = vld [vmem:[#allocation134_spill] sm:$0xff] }
 0x49c   :  { %v6668_v9 = vpop.eup %6667 }
 0x49d   :  { %v6670_v57 = vpop.eup %6669  ;;  %v2024_v42 = vmul.f32 %v6668_v9, %v6664_v46  ;;  %v9464_v46 = vld [vmem:[#allocation131_spill] sm:$0xff]  ;;  %v9466_v9 = vld [vmem:[#allocation132_spill] sm:$0xff] }
 0x49e   :  { %v6672_v59 = vpop.eup %6671  ;;  %v1980_v17 = vadd.f32 1.0, %v6670_v57  ;;  %v9467_v57 = vld [vmem:[#allocation101_spill] sm:$0xff] }
 0x49f   :  { %v2023_v11 = vmul.f32 %v6672_v59, %v7933_v10  ;;  %v6674_v0 = vpop.eup %6673  ;;  %v9462_v10 = vld [vmem:[#allocation130_spill] sm:$0xff]  ;;  %v9469_v59 = vld [vmem:[#allocation103_spill] sm:$0xff] }
 0x4a0   :  { %v6676_v7 = vpop.eup %6675 }
 0x4a1   :  { %v8089_v58 = vadd.f32 %v2024_v42, %v2023_v11  ;;  %v9468_v42 = vld [vmem:[#allocation133_spill] sm:$0xff] }
 0x4a2   :  { %v9471_v11 = vld [vmem:[#allocation105_spill] sm:$0xff] }
 0x4a3   :  { %6677 = vtanh.f32 %v8089_v58 }
 0x4a4   :  { %6679 = vrcp.f32 %v1980_v17  ;;  %v9472_v17 = vld [vmem:[#allocation135_spill] sm:$0xff] }
 0x4ad   :  { %v6678_v54 = vpop.eup %6677 }
 0x4ae   :  { %v6680_v16 = vpop.eup %6679  ;;  %v8092_v53 = vmul.f32 %v6678_v54, %v6676_v7  ;;  %v9474_v7 = vld [vmem:[#allocation136_spill] sm:$0xff]  ;;  %v9475_v54 = vld [vmem:[#allocation109_spill] sm:$0xff] }
 0x4af   :  { %v8094_v27 = vmul.f32 %v6680_v16, %v6674_v0  ;;  %v9473_v0 = vld [vmem:[#allocation107_spill] sm:$0xff]  ;;  %v9476_v16 = vld [vmem:[#allocation137_spill] sm:$0xff] }
 0x4b0   :  { %9460 = vst [vmem:[#allocation61_spill] sm:$0xff] %v8092_v53  ;;  %2094 = vmatprep.mubr.f32.mxu0 %v8092_v53  ;;  %2165 = vmatprep.mubr.f32.mxu1 %v8092_v53 }
 0x4b1   :  { %9461 = vst [vmem:[#allocation63_spill] sm:$0xff] %v8094_v27  ;;  %2095 = vmatmul.mubr.f32.vlgmr.msra.gmra.mrb[22].mxu0 %v8094_v27  ;;  %2166 = vmatmul.mubr.f32.vlgmr.msra.gmra.mrb[22].mxu1 %v8094_v27 }
 0x4b2   :  { %5224 = vmatpush1.bf16.msra.mxu0 %v9278_v4  ;;  %5288 = vmatpush1.bf16.msra.mxu1 %v7543_v40 }
 0x4b3   :  { %2236 = vmatprep.mubr.f32.mxu0 %v8092_v53  ;;  %2307 = vmatprep.mubr.f32.mxu1 %v8092_v53  ;;  %v9477_v53 = vld [vmem:[#allocation111_spill] sm:$0xff] }
 0x4b4   :  { %5226 = vmatprep.subr.bf16.mxu0 %v9279_v39  ;;  %5290 = vmatprep.subr.bf16.mxu1 %v7547_v43 }
 0x4b6   :  { %5228 = vmatpush1.bf16.msra.mxu0 %v9280_v61  ;;  %5292 = vmatpush1.bf16.msra.mxu1 %v7553_v47 }
 0x4b7   :  { %5230 = vmatprep.subr.bf16.mxu0 %v9281_v12  ;;  %5294 = vmatprep.subr.bf16.mxu1 %v7556_v24 }
 0x4ba   :  { %5232 = vmatpush1.bf16.msra.mxu0 %v9282_v14  ;;  %5296 = vmatpush1.bf16.msra.mxu1 %v7562_v21 }
 0x4bb   :  { %5234 = vmatprep.subr.bf16.mxu0 %v9283_v26  ;;  %5298 = vmatprep.subr.bf16.mxu1 %v7565_v52 }
 0x4be   :  { %5236 = vmatpush1.bf16.msra.mxu0 %v9284_v20  ;;  %5300 = vmatpush1.bf16.msra.mxu1 %v7570_v25 }
 0x4bf   :  { %5238 = vmatprep.subr.bf16.mxu0 %v9285_v55  ;;  %5302 = vmatprep.subr.bf16.mxu1 %v7573_v19 }
 0x4c2   :  { %5240 = vmatpush1.bf16.msra.mxu0 %v9286_v50  ;;  %5304 = vmatpush1.bf16.msra.mxu1 %v9369_v49 }
 0x4c3   :  { %5242 = vmatprep.subr.bf16.mxu0 %v9287_v5  ;;  %5306 = vmatprep.subr.bf16.mxu1 %v9370_v62 }
 0x4c6   :  { %5244 = vmatpush1.bf16.msra.mxu0 %v9288_v6  ;;  %5308 = vmatpush1.bf16.msra.mxu1 %v9371_v28 }
 0x4c7   :  { %5246 = vmatprep.subr.bf16.mxu0 %v9289_v23  ;;  %5310 = vmatprep.subr.bf16.mxu1 %v9372_v22 }
 0x4ca   :  { %5248 = vmatpush1.bf16.msra.mxu0 %v9290_v8  ;;  %5312 = vmatpush1.bf16.msra.mxu1 %v9373_v30 }
 0x4cb   :  { %5250 = vmatprep.subr.bf16.mxu0 %v9291_v56  ;;  %5314 = vmatprep.subr.bf16.mxu1 %v9374_v13 }
 0x4ce   :  { %5252 = vmatpush1.bf16.msra.mxu0 %v9292_v34  ;;  %5316 = vmatpush1.bf16.msra.mxu1 %v9375_v15 }
 0x4cf   :  { %5254 = vmatprep.subr.bf16.mxu0 %v9293_v60  ;;  %5318 = vmatprep.subr.bf16.mxu1 %v9376_v32 }
 0x4d2   :  { %5256 = vmatpush1.bf16.msra.mxu0 %v9294_v41  ;;  %5320 = vmatpush1.bf16.msra.mxu1 %v9377_v1 }
 0x4d3   :  { %5258 = vmatprep.subr.bf16.mxu0 %v9295_v29  ;;  %5322 = vmatprep.subr.bf16.mxu1 %v9378_v36 }
 0x4d6   :  { %5260 = vmatpush1.bf16.msra.mxu0 %v9296_v48  ;;  %5324 = vmatpush1.bf16.msra.mxu1 %v9379_v33 }
 0x4d7   :  { %5262 = vmatprep.subr.bf16.mxu0 %v9297_v35  ;;  %5326 = vmatprep.subr.bf16.mxu1 %v9462_v10 }
 0x4da   :  { %5264 = vmatpush1.bf16.msra.mxu0 %v9463_v51  ;;  %5328 = vmatpush1.bf16.msra.mxu1 %v9464_v46 }
 0x4db   :  { %5266 = vmatprep.subr.bf16.mxu0 %v9465_v31  ;;  %5330 = vmatprep.subr.bf16.mxu1 %v9466_v9  ;;  %v9552_v31 = vld [vmem:[#allocation147_spill] sm:$0xff] }
 0x4de   :  { %5268 = vmatpush1.bf16.msra.mxu0 %v9467_v57  ;;  %5332 = vmatpush1.bf16.msra.mxu1 %v9468_v42  ;;  %v9478_v57 = vld [vmem:[#allocation138_spill] sm:$0xff]  ;;  %v9479_v42 = vld [vmem:[#allocation113_spill] sm:$0xff] }
 0x4df   :  { %5270 = vmatprep.subr.bf16.mxu0 %v9469_v59  ;;  %5334 = vmatprep.subr.bf16.mxu1 %v9470_v63  ;;  %v9480_v59 = vld [vmem:[#allocation139_spill] sm:$0xff] }
 0x4e0   :  { %v9481_v63 = vld [vmem:[#allocation115_spill] sm:$0xff] }
 0x4e2   :  { %5272 = vmatpush1.bf16.msra.mxu0 %v9471_v11  ;;  %5336 = vmatpush1.bf16.msra.mxu1 %v9472_v17  ;;  %v9482_v11 = vld [vmem:[#allocation140_spill] sm:$0xff]  ;;  %v9483_v17 = vld [vmem:[#allocation117_spill] sm:$0xff] }
 0x4e3   :  { %5274 = vmatprep.subr.bf16.mxu0 %v9473_v0  ;;  %5338 = vmatprep.subr.bf16.mxu1 %v9474_v7  ;;  %v9484_v0 = vld [vmem:[#allocation141_spill] sm:$0xff]  ;;  %v9485_v7 = vld [vmem:[#allocation22_spill] sm:$0xff] }
 0x4e6   :  { %5276 = vmatpush1.bf16.msra.mxu0 %v9475_v54  ;;  %5340 = vmatpush1.bf16.msra.mxu1 %v9476_v16  ;;  %v9486_v54 = vld [vmem:[#allocation40_spill] sm:$0xff]  ;;  %v9551_v16 = vld [vmem:[#allocation146_spill] sm:$0xff] }
 0x4e7   :  { %5278 = vmatprep.subr.bf16.mxu0 %v9477_v53  ;;  %5342 = vmatprep.subr.bf16.mxu1 %v9478_v57  ;;  %v9487_v57 = vld [vmem:[#allocation23_spill] sm:$0xff]  ;;  %v9496_v53 = vld [vmem:[#allocation64_spill] sm:$0xff] }
 0x4ea   :  { %5280 = vmatpush1.bf16.msra.mxu0 %v9479_v42  ;;  %5344 = vmatpush1.bf16.msra.mxu1 %v9480_v59  ;;  %v9488_v42 = vld [vmem:[#allocation56_spill] sm:$0xff] }
 0x4eb   :  { %5282 = vmatprep.subr.bf16.mxu0 %v9481_v63  ;;  %5346 = vmatprep.subr.bf16.mxu1 %v9482_v11  ;;  %v9489_v59 = vld [vmem:[#allocation24_spill] sm:$0xff]  ;;  %v9490_v63 = vld [vmem:[#allocation58_spill] sm:$0xff]  ;;  %v9491_v11 = vld [vmem:[#allocation25_spill] sm:$0xff] }
 0x4ee   :  { %5284 = vmatpush1.bf16.msra.mxu0 %v9483_v17  ;;  %5348 = vmatpush1.bf16.msra.mxu1 %v9484_v0  ;;  %v9492_v17 = vld [vmem:[#allocation60_spill] sm:$0xff]  ;;  %v9493_v0 = vld [vmem:[#allocation26_spill] sm:$0xff] }
 0x4ef   :  { %5350 = vmatprep.subr.bf16.mxu0 %v9485_v7  ;;  %5414 = vmatprep.subr.bf16.mxu1 %v9486_v54  ;;  %v9494_v7 = vld [vmem:[#allocation62_spill] sm:$0xff]  ;;  %v9495_v54 = vld [vmem:[#allocation27_spill] sm:$0xff] }
 0x4f1   :  { %2237 = vmatmul.mubr.f32.vlgmr.msra.gmra.mrb[8].mxu0 %v8094_v27  ;;  %2308 = vmatmul.mubr.f32.vlgmr.msra.gmra.mrb[40].mxu1 %v8094_v27  ;;  %v9497_v27 = vld [vmem:[#allocation28_spill] sm:$0xff] }
 0x4f2   :  { %5352 = vmatpush1.bf16.msra.mxu0 %v9487_v57  ;;  %5416 = vmatpush1.bf16.msra.mxu1 %v9488_v42  ;;  %v9498_v57 = vld [vmem:[#allocation66_spill] sm:$0xff]  ;;  %v9499_v42 = vld [vmem:[#allocation29_spill] sm:$0xff] }
 0x4f3   :  { %5354 = vmatprep.subr.bf16.mxu0 %v9489_v59  ;;  %5418 = vmatprep.subr.bf16.mxu1 %v9490_v63  ;;  %v9500_v59 = vld [vmem:[#allocation68_spill] sm:$0xff]  ;;  %v9501_v63 = vld [vmem:[#allocation30_spill] sm:$0xff] }
 0x4f6   :  { %5356 = vmatpush1.bf16.msra.mxu0 %v9491_v11  ;;  %5420 = vmatpush1.bf16.msra.mxu1 %v9492_v17  ;;  %v9502_v11 = vld [vmem:[#allocation70_spill] sm:$0xff]  ;;  %v9503_v17 = vld [vmem:[#allocation31_spill] sm:$0xff] }
 0x4f7   :  { %5358 = vmatprep.subr.bf16.mxu0 %v9493_v0  ;;  %5422 = vmatprep.subr.bf16.mxu1 %v9494_v7  ;;  %v9504_v0 = vld [vmem:[#allocation72_spill] sm:$0xff] }
 0x4f8   :  { %v9505_v7 = vld [vmem:[#allocation32_spill] sm:$0xff] }
 0x4fa   :  { %5360 = vmatpush1.bf16.msra.mxu0 %v9495_v54  ;;  %5424 = vmatpush1.bf16.msra.mxu1 %v9496_v53  ;;  %v9506_v54 = vld [vmem:[#allocation74_spill] sm:$0xff]  ;;  %v9507_v53 = vld [vmem:[#allocation33_spill] sm:$0xff] }
 0x4fb   :  { %5362 = vmatprep.subr.bf16.mxu0 %v9497_v27  ;;  %5426 = vmatprep.subr.bf16.mxu1 %v9498_v57  ;;  %v9508_v27 = vld [vmem:[#allocation76_spill] sm:$0xff]  ;;  %v9509_v57 = vld [vmem:[#allocation34_spill] sm:$0xff] }
 0x4fe   :  { %5364 = vmatpush1.bf16.msra.mxu0 %v9499_v42  ;;  %5428 = vmatpush1.bf16.msra.mxu1 %v9500_v59  ;;  %v9510_v42 = vld [vmem:[#allocation78_spill] sm:$0xff]  ;;  %v9511_v59 = vld [vmem:[#allocation35_spill] sm:$0xff] }
 0x4ff   :  { %5366 = vmatprep.subr.bf16.mxu0 %v9501_v63  ;;  %5430 = vmatprep.subr.bf16.mxu1 %v9502_v11  ;;  %v9512_v63 = vld [vmem:[#allocation80_spill] sm:$0xff] }
 0x500   :  { %v9513_v11 = vld [vmem:[#allocation36_spill] sm:$0xff] }
 0x502   :  { %5368 = vmatpush1.bf16.msra.mxu0 %v9503_v17  ;;  %5432 = vmatpush1.bf16.msra.mxu1 %v9504_v0  ;;  %v9514_v17 = vld [vmem:[#allocation82_spill] sm:$0xff]  ;;  %v9515_v0 = vld [vmem:[#allocation37_spill] sm:$0xff] }
 0x503   :  { %5370 = vmatprep.subr.bf16.mxu0 %v9505_v7  ;;  %5434 = vmatprep.subr.bf16.mxu1 %v9506_v54  ;;  %v9516_v7 = vld [vmem:[#allocation84_spill] sm:$0xff]  ;;  %v9517_v54 = vld [vmem:[#allocation38_spill] sm:$0xff] }
 0x506   :  { %5372 = vmatpush1.bf16.msra.mxu0 %v9507_v53  ;;  %5436 = vmatpush1.bf16.msra.mxu1 %v9508_v27  ;;  %v9518_v53 = vld [vmem:[#allocation86_spill] sm:$0xff]  ;;  %v9519_v27 = vld [vmem:[#allocation39_spill] sm:$0xff] }
 0x507   :  { %5374 = vmatprep.subr.bf16.mxu0 %v9509_v57  ;;  %5438 = vmatprep.subr.bf16.mxu1 %v9510_v42  ;;  %v9520_v57 = vld [vmem:[#allocation88_spill] sm:$0xff]  ;;  %v9521_v42 = vld [vmem:[#allocation41_spill] sm:$0xff] }
 0x50a   :  { %5376 = vmatpush1.bf16.msra.mxu0 %v9511_v59  ;;  %5440 = vmatpush1.bf16.msra.mxu1 %v9512_v63  ;;  %v9522_v59 = vld [vmem:[#allocation90_spill] sm:$0xff] }
 0x50b   :  { %5378 = vmatprep.subr.bf16.mxu0 %v9513_v11  ;;  %5442 = vmatprep.subr.bf16.mxu1 %v9514_v17  ;;  %v9523_v63 = vld [vmem:[#allocation42_spill] sm:$0xff]  ;;  %v9524_v11 = vld [vmem:[#allocation92_spill] sm:$0xff]  ;;  %v9525_v17 = vld [vmem:[#allocation43_spill] sm:$0xff] }
 0x50e   :  { %5380 = vmatpush1.bf16.msra.mxu0 %v9515_v0  ;;  %5444 = vmatpush1.bf16.msra.mxu1 %v9516_v7  ;;  %v9526_v0 = vld [vmem:[#allocation94_spill] sm:$0xff]  ;;  %v9527_v7 = vld [vmem:[#allocation44_spill] sm:$0xff] }
 0x50f   :  { %5382 = vmatprep.subr.bf16.mxu0 %v9517_v54  ;;  %5446 = vmatprep.subr.bf16.mxu1 %v9518_v53  ;;  %v9528_v54 = vld [vmem:[#allocation96_spill] sm:$0xff]  ;;  %v9529_v53 = vld [vmem:[#allocation45_spill] sm:$0xff] }
 0x512   :  { %5384 = vmatpush1.bf16.msra.mxu0 %v9519_v27  ;;  %5448 = vmatpush1.bf16.msra.mxu1 %v9520_v57  ;;  %v9530_v27 = vld [vmem:[#allocation98_spill] sm:$0xff] }
 0x513   :  { %5386 = vmatprep.subr.bf16.mxu0 %v9521_v42  ;;  %5450 = vmatprep.subr.bf16.mxu1 %v9522_v59  ;;  %v9531_v57 = vld [vmem:[#allocation46_spill] sm:$0xff]  ;;  %v9532_v42 = vld [vmem:[#allocation100_spill] sm:$0xff]  ;;  %v9533_v59 = vld [vmem:[#allocation47_spill] sm:$0xff] }
 0x516   :  { %5388 = vmatpush1.bf16.msra.mxu0 %v9523_v63  ;;  %5452 = vmatpush1.bf16.msra.mxu1 %v9524_v11  ;;  %v9534_v63 = vld [vmem:[#allocation102_spill] sm:$0xff]  ;;  %v9535_v11 = vld [vmem:[#allocation48_spill] sm:$0xff] }
 0x517   :  { %5390 = vmatprep.subr.bf16.mxu0 %v9525_v17  ;;  %5454 = vmatprep.subr.bf16.mxu1 %v9526_v0  ;;  %v9536_v17 = vld [vmem:[#allocation104_spill] sm:$0xff]  ;;  %v9537_v0 = vld [vmem:[#allocation49_spill] sm:$0xff] }
 0x51a   :  { %5392 = vmatpush1.bf16.msra.mxu0 %v9527_v7  ;;  %5456 = vmatpush1.bf16.msra.mxu1 %v9528_v54  ;;  %v9538_v7 = vld [vmem:[#allocation106_spill] sm:$0xff] }
 0x51b   :  { %5394 = vmatprep.subr.bf16.mxu0 %v9529_v53  ;;  %5458 = vmatprep.subr.bf16.mxu1 %v9530_v27  ;;  %v9539_v54 = vld [vmem:[#allocation50_spill] sm:$0xff]  ;;  %v9540_v53 = vld [vmem:[#allocation108_spill] sm:$0xff]  ;;  %v9541_v27 = vld [vmem:[#allocation51_spill] sm:$0xff] }
 0x51e   :  { %5396 = vmatpush1.bf16.msra.mxu0 %v9531_v57  ;;  %5460 = vmatpush1.bf16.msra.mxu1 %v9532_v42  ;;  %v9542_v57 = vld [vmem:[#allocation110_spill] sm:$0xff]  ;;  %v9543_v42 = vld [vmem:[#allocation52_spill] sm:$0xff] }
 0x51f   :  { %5398 = vmatprep.subr.bf16.mxu0 %v9533_v59  ;;  %5462 = vmatprep.subr.bf16.mxu1 %v9534_v63  ;;  %v9544_v59 = vld [vmem:[#allocation112_spill] sm:$0xff]  ;;  %v9545_v63 = vld [vmem:[#allocation53_spill] sm:$0xff] }
 0x522   :  { %5400 = vmatpush1.bf16.msra.mxu0 %v9535_v11  ;;  %5464 = vmatpush1.bf16.msra.mxu1 %v9536_v17  ;;  %v9546_v11 = vld [vmem:[#allocation114_spill] sm:$0xff] }
 0x523   :  { %5402 = vmatprep.subr.bf16.mxu0 %v9537_v0  ;;  %5466 = vmatprep.subr.bf16.mxu1 %v9538_v7  ;;  %v9547_v17 = vld [vmem:[#allocation54_spill] sm:$0xff]  ;;  %v9548_v0 = vld [vmem:[#allocation116_spill] sm:$0xff]  ;;  %v9549_v7 = vld [vmem:[#allocation55_spill] sm:$0xff] }
 0x526   :  { %5404 = vmatpush1.bf16.msra.mxu0 %v9539_v54  ;;  %5468 = vmatpush1.bf16.msra.mxu1 %v9540_v53  ;;  %v9550_v54 = vld [vmem:[#allocation118_spill] sm:$0xff] }
 0x527   :  { %5406 = vmatprep.subr.bf16.mxu0 %v9541_v27  ;;  %5470 = vmatprep.subr.bf16.mxu1 %v9542_v57 }
 0x52a   :  { %5408 = vmatpush1.bf16.msra.mxu0 %v9543_v42  ;;  %5472 = vmatpush1.bf16.msra.mxu1 %v9544_v59 }
 0x52b   :  { %5410 = vmatprep.subr.bf16.mxu0 %v9545_v63  ;;  %5474 = vmatprep.subr.bf16.mxu1 %v9546_v11 }
 0x52e   :  { %5412 = vmatpush1.bf16.msra.mxu0 %v9547_v17  ;;  %5476 = vmatpush1.bf16.msra.mxu1 %v9548_v0 }
 0x52f   :  { %5478 = vmatprep.subr.bf16.mxu0 %v9549_v7  ;;  %5542 = vmatprep.subr.bf16.mxu1 %v9550_v54 }
 0x584   :  { %v2096_v53 = vpop.f32.mrb[22].mxu0  ;;  %v2167_v27 = vpop.f32.mrb[22].mxu1 }
 0x585   :  { %v2319_v57 = vadd.f32 %v2096_v53, %v9551_v16  ;;  %v2098_v9 = vpop.f32.mrb[23].mxu0  ;;  %v2169_v42 = vpop.f32.mrb[23].mxu1 }
 0x586   :  { %v2320_v59 = vadd.f32 %v2098_v9, %v9552_v31  ;;  %v6476_v17 = vadd.f32 %v2169_v42, %v7746_v38 }
 0x587   :  { %v4142_v46 = vmul.f32 -1.442695, %v2319_v57 }
 0x588   :  { %v4143_v63 = vmul.f32 -1.442695, %v2320_v59 }
 0x589   :  { %6681 = vpow2.f32 %v4142_v46 }
 0x58a   :  { %6683 = vpow2.f32 %v4143_v63 }
 0x58b   :  { %6685 = vtanh.f32 %v6476_v17 }
 0x593   :  { %v6682_v11 = vpop.eup %6681 }
 0x594   :  { %v2332_v0 = vadd.f32 1.0, %v6682_v11  ;;  %v6684_v51 = vpop.eup %6683 }
 0x595   :  { %v2333_v54 = vadd.f32 1.0, %v6684_v51  ;;  %v6686_v7 = vpop.eup %6685 }
 0x596   :  { %6687 = vrcp.f32 %v2332_v0 }
 0x597   :  { %6689 = vrcp.f32 %v2333_v54 }
 0x5a0   :  { %v6688_v10 = vpop.eup %6687 }
 0x5a1   :  { %v2343_v53 = vmul.f32 %v6688_v10, %v6686_v7  ;;  %v6690_v16 = vpop.eup %6689  ;;  %v6475_v10 = vadd.f32 %v2167_v27, %v9366_v44 }
 0x5a2   :  { %v2342_v35 = vmul.f32 %v6690_v16, %v8080_v2 }
 0x5a3   :  { %v4144_v7 = vmul.f32 -1.442695, %v6475_v10 }
 0x5a4   :  { %v8236_v31 = vadd.f32 %v2343_v53, %v2342_v35 }
 0x5c4   :  { %v2238_v9 = vpop.f32.mrb[8].mxu0  ;;  %v2309_v46 = vpop.f32.mrb[40].mxu1 }
 0x5c5   :  { %v6493_v57 = vadd.f32 %v2238_v9, %v9459_v3  ;;  %v2240_v42 = vpop.f32.mrb[9].mxu0  ;;  %v2311_v59 = vpop.f32.mrb[41].mxu1  ;;  %v6509_v51 = vadd.f32 %v2309_v46, %v7769_v37 }
 0x5c6   :  { %v6494_v63 = vadd.f32 %v2240_v42, %v9365_v45  ;;  %v6510_v2 = vadd.f32 %v2311_v59, %v7772_v18 }
 0x5c7   :  { %v4145_v11 = vmul.f32 -1.442695, %v6493_v57  ;;  %v4147_v35 = vmul.f32 -1.442695, %v6509_v51 }
 0x5c8   :  { %v4146_v17 = vmul.f32 -1.442695, %v6494_v63 }
 0x5c9   :  { %6691 = vpow2.f32 %v4145_v11 }
 0x5ca   :  { %6693 = vpow2.f32 %v4146_v17 }
 0x5cb   :  { %6695 = vtanh.f32 %v6510_v2 }
 0x5cc   :  { %6697 = vpow2.f32 %v4147_v35 }
 0x5d3   :  { %v6692_v0 = vpop.eup %6691 }
 0x5d4   :  { %v2367_v54 = vadd.f32 1.0, %v6692_v0  ;;  %v6694_v53 = vpop.eup %6693 }
 0x5d5   :  { %v2368_v16 = vadd.f32 1.0, %v6694_v53  ;;  %v6696_v9 = vpop.eup %6695  ;;  %v9556_v53 = vld [vmem:[#allocation130_spill] sm:$0xff] }
 0x5d6   :  { %6699 = vrcp.f32 %v2367_v54  ;;  %v6698_v57 = vpop.eup %6697 }
 0x5d7   :  { %6701 = vpow2.f32 %v4144_v7  ;;  %v2369_v27 = vadd.f32 1.0, %v6698_v57  ;;  %v9559_v57 = vld [vmem:[#allocation99_spill] sm:$0xff] }
 0x5d8   :  { %6703 = vrcp.f32 %v2368_v16  ;;  %v9557_v16 = vld [vmem:[#allocation97_spill] sm:$0xff] }
 0x5d9   :  { %6705 = vtanh.f32 %v8236_v31 }
 0x5da   :  { %6707 = vrcp.f32 %v2369_v27  ;;  %v9564_v27 = vld [vmem:[#allocation134_spill] sm:$0xff] }
 0x5e0   :  { %v6700_v42 = vpop.eup %6699 }
 0x5e1   :  { %v6702_v63 = vpop.eup %6701  ;;  %v2378_v46 = vmul.f32 %v6700_v42, %v6696_v9  ;;  %v9558_v9 = vld [vmem:[#allocation131_spill] sm:$0xff]  ;;  %v9560_v42 = vld [vmem:[#allocation132_spill] sm:$0xff] }
 0x5e2   :  { %v6704_v11 = vpop.eup %6703  ;;  %v2334_v17 = vadd.f32 1.0, %v6702_v63  ;;  %v9561_v63 = vld [vmem:[#allocation101_spill] sm:$0xff] }
 0x5e3   :  { %v2377_v59 = vmul.f32 %v6704_v11, %v8089_v58  ;;  %v6706_v10 = vpop.eup %6705  ;;  %v9555_v58 = vld [vmem:[#allocation95_spill] sm:$0xff] }
 0x5e4   :  { %v6708_v2 = vpop.eup %6707  ;;  %v9563_v11 = vld [vmem:[#allocation103_spill] sm:$0xff] }
 0x5e5   :  { %v8245_v51 = vadd.f32 %v2378_v46, %v2377_v59  ;;  %v9562_v46 = vld [vmem:[#allocation133_spill] sm:$0xff] }
 0x5e6   :  { %v9565_v59 = vld [vmem:[#allocation105_spill] sm:$0xff] }
 0x5e7   :  { %6709 = vtanh.f32 %v8245_v51 }
 0x5e8   :  { %6711 = vrcp.f32 %v2334_v17  ;;  %v9566_v17 = vld [vmem:[#allocation135_spill] sm:$0xff] }
 0x5f1   :  { %v6710_v35 = vpop.eup %6709 }
 0x5f2   :  { %v6712_v0 = vpop.eup %6711  ;;  %v8248_v7 = vmul.f32 %v6710_v35, %v6708_v2  ;;  %v9568_v2 = vld [vmem:[#allocation136_spill] sm:$0xff]  ;;  %v9569_v35 = vld [vmem:[#allocation109_spill] sm:$0xff] }
 0x5f3   :  { %v8250_v54 = vmul.f32 %v6712_v0, %v6706_v10  ;;  %v9567_v10 = vld [vmem:[#allocation107_spill] sm:$0xff]  ;;  %v9570_v0 = vld [vmem:[#allocation137_spill] sm:$0xff] }
 0x5f4   :  { %9553 = vst [vmem:[#allocation65_spill] sm:$0xff] %v8248_v7  ;;  %2448 = vmatprep.mubr.f32.mxu0 %v8248_v7  ;;  %2519 = vmatprep.mubr.f32.mxu1 %v8248_v7 }
 0x5f5   :  { %9554 = vst [vmem:[#allocation67_spill] sm:$0xff] %v8250_v54  ;;  %2449 = vmatmul.mubr.f32.vlgmr.msra.gmra.mrb[24].mxu0 %v8250_v54  ;;  %2520 = vmatmul.mubr.f32.vlgmr.msra.gmra.mrb[24].mxu1 %v8250_v54 }
 0x5f6   :  { %5480 = vmatpush1.bf16.msra.mxu0 %v9278_v4  ;;  %5544 = vmatpush1.bf16.msra.mxu1 %v7543_v40 }
 0x5f7   :  { %2590 = vmatprep.mubr.f32.mxu0 %v8248_v7  ;;  %2661 = vmatprep.mubr.f32.mxu1 %v8248_v7  ;;  %v9571_v7 = vld [vmem:[#allocation111_spill] sm:$0xff] }
 0x5f8   :  { %5482 = vmatprep.subr.bf16.mxu0 %v9279_v39  ;;  %5546 = vmatprep.subr.bf16.mxu1 %v7547_v43 }
 0x5fa   :  { %5484 = vmatpush1.bf16.msra.mxu0 %v9280_v61  ;;  %5548 = vmatpush1.bf16.msra.mxu1 %v7553_v47 }
 0x5fb   :  { %5486 = vmatprep.subr.bf16.mxu0 %v9281_v12  ;;  %5550 = vmatprep.subr.bf16.mxu1 %v7556_v24 }
 0x5fe   :  { %5488 = vmatpush1.bf16.msra.mxu0 %v9282_v14  ;;  %5552 = vmatpush1.bf16.msra.mxu1 %v7562_v21 }
 0x5ff   :  { %5490 = vmatprep.subr.bf16.mxu0 %v9283_v26  ;;  %5554 = vmatprep.subr.bf16.mxu1 %v7565_v52 }
 0x602   :  { %5492 = vmatpush1.bf16.msra.mxu0 %v9284_v20  ;;  %5556 = vmatpush1.bf16.msra.mxu1 %v7570_v25 }
 0x603   :  { %5494 = vmatprep.subr.bf16.mxu0 %v9285_v55  ;;  %5558 = vmatprep.subr.bf16.mxu1 %v7573_v19 }
 0x606   :  { %5496 = vmatpush1.bf16.msra.mxu0 %v9286_v50  ;;  %5560 = vmatpush1.bf16.msra.mxu1 %v9369_v49 }
 0x607   :  { %5498 = vmatprep.subr.bf16.mxu0 %v9287_v5  ;;  %5562 = vmatprep.subr.bf16.mxu1 %v9370_v62 }
 0x60a   :  { %5500 = vmatpush1.bf16.msra.mxu0 %v9288_v6  ;;  %5564 = vmatpush1.bf16.msra.mxu1 %v9371_v28 }
 0x60b   :  { %5502 = vmatprep.subr.bf16.mxu0 %v9289_v23  ;;  %5566 = vmatprep.subr.bf16.mxu1 %v9372_v22 }
 0x60e   :  { %5504 = vmatpush1.bf16.msra.mxu0 %v9290_v8  ;;  %5568 = vmatpush1.bf16.msra.mxu1 %v9373_v30 }
 0x60f   :  { %5506 = vmatprep.subr.bf16.mxu0 %v9291_v56  ;;  %5570 = vmatprep.subr.bf16.mxu1 %v9374_v13 }
 0x612   :  { %5508 = vmatpush1.bf16.msra.mxu0 %v9292_v34  ;;  %5572 = vmatpush1.bf16.msra.mxu1 %v9375_v15 }
 0x613   :  { %5510 = vmatprep.subr.bf16.mxu0 %v9293_v60  ;;  %5574 = vmatprep.subr.bf16.mxu1 %v9376_v32 }
 0x616   :  { %5512 = vmatpush1.bf16.msra.mxu0 %v9294_v41  ;;  %5576 = vmatpush1.bf16.msra.mxu1 %v9377_v1 }
 0x617   :  { %5514 = vmatprep.subr.bf16.mxu0 %v9295_v29  ;;  %5578 = vmatprep.subr.bf16.mxu1 %v9378_v36 }
 0x61a   :  { %5516 = vmatpush1.bf16.msra.mxu0 %v9296_v48  ;;  %5580 = vmatpush1.bf16.msra.mxu1 %v9379_v33 }
 0x61b   :  { %5518 = vmatprep.subr.bf16.mxu0 %v9555_v58  ;;  %5582 = vmatprep.subr.bf16.mxu1 %v9556_v53 }
 0x61e   :  { %5520 = vmatpush1.bf16.msra.mxu0 %v9557_v16  ;;  %5584 = vmatpush1.bf16.msra.mxu1 %v9558_v9 }
 0x61f   :  { %5522 = vmatprep.subr.bf16.mxu0 %v9559_v57  ;;  %5586 = vmatprep.subr.bf16.mxu1 %v9560_v42  ;;  %v9646_v57 = vld [vmem:[#allocation149_spill] sm:$0xff] }
 0x622   :  { %5524 = vmatpush1.bf16.msra.mxu0 %v9561_v63  ;;  %5588 = vmatpush1.bf16.msra.mxu1 %v9562_v46  ;;  %v9572_v63 = vld [vmem:[#allocation138_spill] sm:$0xff]  ;;  %v9573_v46 = vld [vmem:[#allocation113_spill] sm:$0xff] }
 0x623   :  { %5526 = vmatprep.subr.bf16.mxu0 %v9563_v11  ;;  %5590 = vmatprep.subr.bf16.mxu1 %v9564_v27  ;;  %v9574_v11 = vld [vmem:[#allocation139_spill] sm:$0xff] }
 0x624   :  { %v9575_v27 = vld [vmem:[#allocation115_spill] sm:$0xff] }
 0x626   :  { %5528 = vmatpush1.bf16.msra.mxu0 %v9565_v59  ;;  %5592 = vmatpush1.bf16.msra.mxu1 %v9566_v17  ;;  %v9576_v59 = vld [vmem:[#allocation140_spill] sm:$0xff]  ;;  %v9577_v17 = vld [vmem:[#allocation117_spill] sm:$0xff] }
 0x627   :  { %5530 = vmatprep.subr.bf16.mxu0 %v9567_v10  ;;  %5594 = vmatprep.subr.bf16.mxu1 %v9568_v2  ;;  %v9578_v10 = vld [vmem:[#allocation141_spill] sm:$0xff]  ;;  %v9579_v2 = vld [vmem:[#allocation22_spill] sm:$0xff] }
 0x62a   :  { %5532 = vmatpush1.bf16.msra.mxu0 %v9569_v35  ;;  %5596 = vmatpush1.bf16.msra.mxu1 %v9570_v0  ;;  %v9580_v35 = vld [vmem:[#allocation40_spill] sm:$0xff] }
 0x62b   :  { %5534 = vmatprep.subr.bf16.mxu0 %v9571_v7  ;;  %5598 = vmatprep.subr.bf16.mxu1 %v9572_v63  ;;  %v9581_v63 = vld [vmem:[#allocation23_spill] sm:$0xff]  ;;  %v9590_v7 = vld [vmem:[#allocation64_spill] sm:$0xff] }
 0x62c   :  { %v9645_v0 = vld [vmem:[#allocation148_spill] sm:$0xff] }
 0x62e   :  { %5536 = vmatpush1.bf16.msra.mxu0 %v9573_v46  ;;  %5600 = vmatpush1.bf16.msra.mxu1 %v9574_v11  ;;  %v9582_v46 = vld [vmem:[#allocation56_spill] sm:$0xff] }
 0x62f   :  { %5538 = vmatprep.subr.bf16.mxu0 %v9575_v27  ;;  %5602 = vmatprep.subr.bf16.mxu1 %v9576_v59  ;;  %v9583_v11 = vld [vmem:[#allocation24_spill] sm:$0xff]  ;;  %v9584_v27 = vld [vmem:[#allocation58_spill] sm:$0xff]  ;;  %v9585_v59 = vld [vmem:[#allocation25_spill] sm:$0xff] }
 0x632   :  { %5540 = vmatpush1.bf16.msra.mxu0 %v9577_v17  ;;  %5604 = vmatpush1.bf16.msra.mxu1 %v9578_v10  ;;  %v9586_v17 = vld [vmem:[#allocation60_spill] sm:$0xff]  ;;  %v9587_v10 = vld [vmem:[#allocation26_spill] sm:$0xff] }
 0x633   :  { %5606 = vmatprep.subr.bf16.mxu0 %v9579_v2  ;;  %5670 = vmatprep.subr.bf16.mxu1 %v9580_v35  ;;  %v9588_v2 = vld [vmem:[#allocation62_spill] sm:$0xff]  ;;  %v9589_v35 = vld [vmem:[#allocation27_spill] sm:$0xff] }
 0x635   :  { %2591 = vmatmul.mubr.f32.vlgmr.msra.gmra.mrb[6].mxu0 %v8250_v54  ;;  %2662 = vmatmul.mubr.f32.vlgmr.msra.gmra.mrb[38].mxu1 %v8250_v54  ;;  %v9591_v54 = vld [vmem:[#allocation28_spill] sm:$0xff] }
 0x636   :  { %5608 = vmatpush1.bf16.msra.mxu0 %v9581_v63  ;;  %5672 = vmatpush1.bf16.msra.mxu1 %v9582_v46  ;;  %v9592_v63 = vld [vmem:[#allocation66_spill] sm:$0xff]  ;;  %v9593_v46 = vld [vmem:[#allocation29_spill] sm:$0xff] }
 0x637   :  { %5610 = vmatprep.subr.bf16.mxu0 %v9583_v11  ;;  %5674 = vmatprep.subr.bf16.mxu1 %v9584_v27  ;;  %v9594_v11 = vld [vmem:[#allocation68_spill] sm:$0xff]  ;;  %v9595_v27 = vld [vmem:[#allocation30_spill] sm:$0xff] }
 0x63a   :  { %5612 = vmatpush1.bf16.msra.mxu0 %v9585_v59  ;;  %5676 = vmatpush1.bf16.msra.mxu1 %v9586_v17  ;;  %v9596_v59 = vld [vmem:[#allocation70_spill] sm:$0xff]  ;;  %v9597_v17 = vld [vmem:[#allocation31_spill] sm:$0xff] }
 0x63b   :  { %5614 = vmatprep.subr.bf16.mxu0 %v9587_v10  ;;  %5678 = vmatprep.subr.bf16.mxu1 %v9588_v2  ;;  %v9598_v10 = vld [vmem:[#allocation72_spill] sm:$0xff] }
 0x63c   :  { %v9599_v2 = vld [vmem:[#allocation32_spill] sm:$0xff] }
 0x63e   :  { %5616 = vmatpush1.bf16.msra.mxu0 %v9589_v35  ;;  %5680 = vmatpush1.bf16.msra.mxu1 %v9590_v7  ;;  %v9600_v35 = vld [vmem:[#allocation74_spill] sm:$0xff]  ;;  %v9601_v7 = vld [vmem:[#allocation33_spill] sm:$0xff] }
 0x63f   :  { %5618 = vmatprep.subr.bf16.mxu0 %v9591_v54  ;;  %5682 = vmatprep.subr.bf16.mxu1 %v9592_v63  ;;  %v9602_v54 = vld [vmem:[#allocation76_spill] sm:$0xff]  ;;  %v9603_v63 = vld [vmem:[#allocation34_spill] sm:$0xff] }
 0x642   :  { %5620 = vmatpush1.bf16.msra.mxu0 %v9593_v46  ;;  %5684 = vmatpush1.bf16.msra.mxu1 %v9594_v11  ;;  %v9604_v46 = vld [vmem:[#allocation78_spill] sm:$0xff]  ;;  %v9605_v11 = vld [vmem:[#allocation35_spill] sm:$0xff] }
 0x643   :  { %5622 = vmatprep.subr.bf16.mxu0 %v9595_v27  ;;  %5686 = vmatprep.subr.bf16.mxu1 %v9596_v59  ;;  %v9606_v27 = vld [vmem:[#allocation80_spill] sm:$0xff] }
 0x644   :  { %v9607_v59 = vld [vmem:[#allocation36_spill] sm:$0xff] }
 0x646   :  { %5624 = vmatpush1.bf16.msra.mxu0 %v9597_v17  ;;  %5688 = vmatpush1.bf16.msra.mxu1 %v9598_v10  ;;  %v9608_v17 = vld [vmem:[#allocation82_spill] sm:$0xff]  ;;  %v9609_v10 = vld [vmem:[#allocation37_spill] sm:$0xff] }
 0x647   :  { %5626 = vmatprep.subr.bf16.mxu0 %v9599_v2  ;;  %5690 = vmatprep.subr.bf16.mxu1 %v9600_v35  ;;  %v9610_v2 = vld [vmem:[#allocation84_spill] sm:$0xff]  ;;  %v9611_v35 = vld [vmem:[#allocation38_spill] sm:$0xff] }
 0x64a   :  { %5628 = vmatpush1.bf16.msra.mxu0 %v9601_v7  ;;  %5692 = vmatpush1.bf16.msra.mxu1 %v9602_v54  ;;  %v9612_v7 = vld [vmem:[#allocation86_spill] sm:$0xff]  ;;  %v9613_v54 = vld [vmem:[#allocation39_spill] sm:$0xff] }
 0x64b   :  { %5630 = vmatprep.subr.bf16.mxu0 %v9603_v63  ;;  %5694 = vmatprep.subr.bf16.mxu1 %v9604_v46  ;;  %v9614_v63 = vld [vmem:[#allocation88_spill] sm:$0xff]  ;;  %v9615_v46 = vld [vmem:[#allocation41_spill] sm:$0xff] }
 0x64e   :  { %5632 = vmatpush1.bf16.msra.mxu0 %v9605_v11  ;;  %5696 = vmatpush1.bf16.msra.mxu1 %v9606_v27  ;;  %v9616_v11 = vld [vmem:[#allocation90_spill] sm:$0xff] }
 0x64f   :  { %5634 = vmatprep.subr.bf16.mxu0 %v9607_v59  ;;  %5698 = vmatprep.subr.bf16.mxu1 %v9608_v17  ;;  %v9617_v27 = vld [vmem:[#allocation42_spill] sm:$0xff]  ;;  %v9618_v59 = vld [vmem:[#allocation92_spill] sm:$0xff]  ;;  %v9619_v17 = vld [vmem:[#allocation43_spill] sm:$0xff] }
 0x652   :  { %5636 = vmatpush1.bf16.msra.mxu0 %v9609_v10  ;;  %5700 = vmatpush1.bf16.msra.mxu1 %v9610_v2  ;;  %v9620_v10 = vld [vmem:[#allocation94_spill] sm:$0xff]  ;;  %v9621_v2 = vld [vmem:[#allocation44_spill] sm:$0xff] }
 0x653   :  { %5638 = vmatprep.subr.bf16.mxu0 %v9611_v35  ;;  %5702 = vmatprep.subr.bf16.mxu1 %v9612_v7  ;;  %v9622_v35 = vld [vmem:[#allocation96_spill] sm:$0xff]  ;;  %v9623_v7 = vld [vmem:[#allocation45_spill] sm:$0xff] }
 0x656   :  { %5640 = vmatpush1.bf16.msra.mxu0 %v9613_v54  ;;  %5704 = vmatpush1.bf16.msra.mxu1 %v9614_v63  ;;  %v9624_v54 = vld [vmem:[#allocation98_spill] sm:$0xff] }
 0x657   :  { %5642 = vmatprep.subr.bf16.mxu0 %v9615_v46  ;;  %5706 = vmatprep.subr.bf16.mxu1 %v9616_v11  ;;  %v9625_v63 = vld [vmem:[#allocation46_spill] sm:$0xff]  ;;  %v9626_v46 = vld [vmem:[#allocation100_spill] sm:$0xff]  ;;  %v9627_v11 = vld [vmem:[#allocation47_spill] sm:$0xff] }
 0x65a   :  { %5644 = vmatpush1.bf16.msra.mxu0 %v9617_v27  ;;  %5708 = vmatpush1.bf16.msra.mxu1 %v9618_v59  ;;  %v9628_v27 = vld [vmem:[#allocation102_spill] sm:$0xff]  ;;  %v9629_v59 = vld [vmem:[#allocation48_spill] sm:$0xff] }
 0x65b   :  { %5646 = vmatprep.subr.bf16.mxu0 %v9619_v17  ;;  %5710 = vmatprep.subr.bf16.mxu1 %v9620_v10  ;;  %v9630_v17 = vld [vmem:[#allocation104_spill] sm:$0xff]  ;;  %v9631_v10 = vld [vmem:[#allocation49_spill] sm:$0xff] }
 0x65e   :  { %5648 = vmatpush1.bf16.msra.mxu0 %v9621_v2  ;;  %5712 = vmatpush1.bf16.msra.mxu1 %v9622_v35  ;;  %v9632_v2 = vld [vmem:[#allocation106_spill] sm:$0xff] }
 0x65f   :  { %5650 = vmatprep.subr.bf16.mxu0 %v9623_v7  ;;  %5714 = vmatprep.subr.bf16.mxu1 %v9624_v54  ;;  %v9633_v35 = vld [vmem:[#allocation50_spill] sm:$0xff]  ;;  %v9634_v7 = vld [vmem:[#allocation108_spill] sm:$0xff]  ;;  %v9635_v54 = vld [vmem:[#allocation51_spill] sm:$0xff] }
 0x662   :  { %5652 = vmatpush1.bf16.msra.mxu0 %v9625_v63  ;;  %5716 = vmatpush1.bf16.msra.mxu1 %v9626_v46  ;;  %v9636_v63 = vld [vmem:[#allocation110_spill] sm:$0xff]  ;;  %v9637_v46 = vld [vmem:[#allocation52_spill] sm:$0xff] }
 0x663   :  { %5654 = vmatprep.subr.bf16.mxu0 %v9627_v11  ;;  %5718 = vmatprep.subr.bf16.mxu1 %v9628_v27  ;;  %v9638_v11 = vld [vmem:[#allocation112_spill] sm:$0xff]  ;;  %v9639_v27 = vld [vmem:[#allocation53_spill] sm:$0xff] }
 0x666   :  { %5656 = vmatpush1.bf16.msra.mxu0 %v9629_v59  ;;  %5720 = vmatpush1.bf16.msra.mxu1 %v9630_v17  ;;  %v9640_v59 = vld [vmem:[#allocation114_spill] sm:$0xff] }
 0x667   :  { %5658 = vmatprep.subr.bf16.mxu0 %v9631_v10  ;;  %5722 = vmatprep.subr.bf16.mxu1 %v9632_v2  ;;  %v9641_v17 = vld [vmem:[#allocation54_spill] sm:$0xff]  ;;  %v9642_v10 = vld [vmem:[#allocation116_spill] sm:$0xff]  ;;  %v9643_v2 = vld [vmem:[#allocation55_spill] sm:$0xff] }
 0x66a   :  { %5660 = vmatpush1.bf16.msra.mxu0 %v9633_v35  ;;  %5724 = vmatpush1.bf16.msra.mxu1 %v9634_v7  ;;  %v9644_v35 = vld [vmem:[#allocation118_spill] sm:$0xff] }
 0x66b   :  { %5662 = vmatprep.subr.bf16.mxu0 %v9635_v54  ;;  %5726 = vmatprep.subr.bf16.mxu1 %v9636_v63 }
 0x66e   :  { %5664 = vmatpush1.bf16.msra.mxu0 %v9637_v46  ;;  %5728 = vmatpush1.bf16.msra.mxu1 %v9638_v11 }
 0x66f   :  { %5666 = vmatprep.subr.bf16.mxu0 %v9639_v27  ;;  %5730 = vmatprep.subr.bf16.mxu1 %v9640_v59 }
 0x672   :  { %5668 = vmatpush1.bf16.msra.mxu0 %v9641_v17  ;;  %5732 = vmatpush1.bf16.msra.mxu1 %v9642_v10 }
 0x673   :  { %5734 = vmatprep.subr.bf16.mxu0 %v9643_v2  ;;  %5798 = vmatprep.subr.bf16.mxu1 %v9644_v35 }
 0x6c8   :  { %v2450_v7 = vpop.f32.mrb[24].mxu0  ;;  %v2521_v54 = vpop.f32.mrb[24].mxu1 }
 0x6c9   :  { %v2672_v63 = vadd.f32 %v2450_v7, %v9645_v0  ;;  %v2452_v42 = vpop.f32.mrb[25].mxu0  ;;  %v2523_v46 = vpop.f32.mrb[25].mxu1 }
 0x6ca   :  { %v2673_v11 = vadd.f32 %v2452_v42, %v9646_v57  ;;  %v6478_v17 = vadd.f32 %v2523_v46, %v7746_v38 }
 0x6cb   :  { %v4148_v9 = vmul.f32 -1.442695, %v2672_v63 }
 0x6cc   :  { %v4149_v27 = vmul.f32 -1.442695, %v2673_v11 }
 0x6cd   :  { %6713 = vpow2.f32 %v4148_v9 }
 0x6ce   :  { %6715 = vpow2.f32 %v4149_v27 }
 0x6cf   :  { %6717 = vtanh.f32 %v6478_v17 }
 0x6d7   :  { %v6714_v59 = vpop.eup %6713 }
 0x6d8   :  { %v2685_v10 = vadd.f32 1.0, %v6714_v59  ;;  %v6716_v16 = vpop.eup %6715 }
 0x6d9   :  { %v2686_v35 = vadd.f32 1.0, %v6716_v16  ;;  %v6718_v2 = vpop.eup %6717 }
 0x6da   :  { %6719 = vrcp.f32 %v2685_v10 }
 0x6db   :  { %6721 = vrcp.f32 %v2686_v35 }
 0x6e4   :  { %v6720_v53 = vpop.eup %6719 }
 0x6e5   :  { %v2696_v7 = vmul.f32 %v6720_v53, %v6718_v2  ;;  %v6722_v0 = vpop.eup %6721  ;;  %v6477_v53 = vadd.f32 %v2521_v54, %v9366_v44 }
 0x6e6   :  { %v2695_v58 = vmul.f32 %v6722_v0, %v8236_v31 }
 0x6e7   :  { %v4150_v2 = vmul.f32 -1.442695, %v6477_v53 }
 0x6e8   :  { %v8392_v57 = vadd.f32 %v2696_v7, %v2695_v58 }
 0x708   :  { %v2592_v42 = vpop.f32.mrb[6].mxu0  ;;  %v2663_v9 = vpop.f32.mrb[38].mxu1 }
 0x709   :  { %v6491_v63 = vadd.f32 %v2592_v42, %v9459_v3  ;;  %v2594_v46 = vpop.f32.mrb[7].mxu0  ;;  %v2665_v11 = vpop.f32.mrb[39].mxu1  ;;  %v6507_v16 = vadd.f32 %v2663_v9, %v7769_v37 }
 0x70a   :  { %v6492_v27 = vadd.f32 %v2594_v46, %v9365_v45  ;;  %v6508_v31 = vadd.f32 %v2665_v11, %v7772_v18 }
 0x70b   :  { %v4151_v59 = vmul.f32 -1.442695, %v6491_v63  ;;  %v4153_v58 = vmul.f32 -1.442695, %v6507_v16 }
 0x70c   :  { %v4152_v17 = vmul.f32 -1.442695, %v6492_v27 }
 0x70d   :  { %6723 = vpow2.f32 %v4151_v59 }
 0x70e   :  { %6725 = vpow2.f32 %v4152_v17 }
 0x70f   :  { %6727 = vtanh.f32 %v6508_v31 }
 0x710   :  { %6729 = vpow2.f32 %v4153_v58 }
 0x717   :  { %v6724_v10 = vpop.eup %6723 }
 0x718   :  { %v2719_v35 = vadd.f32 1.0, %v6724_v10  ;;  %v6726_v7 = vpop.eup %6725 }
 0x719   :  { %v2720_v0 = vadd.f32 1.0, %v6726_v7  ;;  %v6728_v42 = vpop.eup %6727  ;;  %v9650_v7 = vld [vmem:[#allocation130_spill] sm:$0xff] }
 0x71a   :  { %6731 = vrcp.f32 %v2719_v35  ;;  %v6730_v63 = vpop.eup %6729 }
 0x71b   :  { %6733 = vpow2.f32 %v4150_v2  ;;  %v2721_v54 = vadd.f32 1.0, %v6730_v63  ;;  %v9653_v63 = vld [vmem:[#allocation99_spill] sm:$0xff] }
 0x71c   :  { %6735 = vrcp.f32 %v2720_v0  ;;  %v9651_v0 = vld [vmem:[#allocation97_spill] sm:$0xff] }
 0x71d   :  { %6737 = vtanh.f32 %v8392_v57 }
 0x71e   :  { %6739 = vrcp.f32 %v2721_v54  ;;  %v9658_v54 = vld [vmem:[#allocation134_spill] sm:$0xff] }
 0x724   :  { %v6732_v46 = vpop.eup %6731 }
 0x725   :  { %v6734_v27 = vpop.eup %6733  ;;  %v2730_v9 = vmul.f32 %v6732_v46, %v6728_v42  ;;  %v9652_v42 = vld [vmem:[#allocation131_spill] sm:$0xff]  ;;  %v9654_v46 = vld [vmem:[#allocation132_spill] sm:$0xff] }
 0x726   :  { %v6736_v59 = vpop.eup %6735  ;;  %v2687_v17 = vadd.f32 1.0, %v6734_v27  ;;  %v9655_v27 = vld [vmem:[#allocation101_spill] sm:$0xff] }
 0x727   :  { %v2729_v11 = vmul.f32 %v6736_v59, %v8245_v51  ;;  %v6738_v53 = vpop.eup %6737  ;;  %v9649_v51 = vld [vmem:[#allocation95_spill] sm:$0xff] }
 0x728   :  { %v6740_v31 = vpop.eup %6739  ;;  %v9657_v59 = vld [vmem:[#allocation103_spill] sm:$0xff] }
 0x729   :  { %v8401_v16 = vadd.f32 %v2730_v9, %v2729_v11  ;;  %v9656_v9 = vld [vmem:[#allocation133_spill] sm:$0xff] }
 0x72a   :  { %v9659_v11 = vld [vmem:[#allocation105_spill] sm:$0xff] }
 0x72b   :  { %6741 = vtanh.f32 %v8401_v16 }
 0x72c   :  { %6743 = vrcp.f32 %v2687_v17  ;;  %v9660_v17 = vld [vmem:[#allocation135_spill] sm:$0xff] }
 0x735   :  { %v6742_v58 = vpop.eup %6741 }
 0x736   :  { %v6744_v10 = vpop.eup %6743  ;;  %v8404_v2 = vmul.f32 %v6742_v58, %v6740_v31  ;;  %v9662_v31 = vld [vmem:[#allocation136_spill] sm:$0xff]  ;;  %v9663_v58 = vld [vmem:[#allocation109_spill] sm:$0xff] }
 0x737   :  { %v8406_v35 = vmul.f32 %v6744_v10, %v6738_v53  ;;  %v9661_v53 = vld [vmem:[#allocation107_spill] sm:$0xff]  ;;  %v9664_v10 = vld [vmem:[#allocation137_spill] sm:$0xff] }
 0x738   :  { %9647 = vst [vmem:[#allocation69_spill] sm:$0xff] %v8404_v2  ;;  %2800 = vmatprep.mubr.f32.mxu0 %v8404_v2  ;;  %2871 = vmatprep.mubr.f32.mxu1 %v8404_v2 }
 0x739   :  { %9648 = vst [vmem:[#allocation71_spill] sm:$0xff] %v8406_v35  ;;  %2801 = vmatmul.mubr.f32.vlgmr.msra.gmra.mrb[26].mxu0 %v8406_v35  ;;  %2872 = vmatmul.mubr.f32.vlgmr.msra.gmra.mrb[26].mxu1 %v8406_v35 }
 0x73a   :  { %5736 = vmatpush1.bf16.msra.mxu0 %v9278_v4  ;;  %5800 = vmatpush1.bf16.msra.mxu1 %v7543_v40 }
 0x73b   :  { %2942 = vmatprep.mubr.f32.mxu0 %v8404_v2  ;;  %3013 = vmatprep.mubr.f32.mxu1 %v8404_v2  ;;  %v9665_v2 = vld [vmem:[#allocation111_spill] sm:$0xff] }
 0x73c   :  { %5738 = vmatprep.subr.bf16.mxu0 %v9279_v39  ;;  %5802 = vmatprep.subr.bf16.mxu1 %v7547_v43 }
 0x73e   :  { %5740 = vmatpush1.bf16.msra.mxu0 %v9280_v61  ;;  %5804 = vmatpush1.bf16.msra.mxu1 %v7553_v47 }
 0x73f   :  { %5742 = vmatprep.subr.bf16.mxu0 %v9281_v12  ;;  %5806 = vmatprep.subr.bf16.mxu1 %v7556_v24 }
 0x742   :  { %5744 = vmatpush1.bf16.msra.mxu0 %v9282_v14  ;;  %5808 = vmatpush1.bf16.msra.mxu1 %v7562_v21 }
 0x743   :  { %5746 = vmatprep.subr.bf16.mxu0 %v9283_v26  ;;  %5810 = vmatprep.subr.bf16.mxu1 %v7565_v52 }
 0x746   :  { %5748 = vmatpush1.bf16.msra.mxu0 %v9284_v20  ;;  %5812 = vmatpush1.bf16.msra.mxu1 %v7570_v25 }
 0x747   :  { %5750 = vmatprep.subr.bf16.mxu0 %v9285_v55  ;;  %5814 = vmatprep.subr.bf16.mxu1 %v7573_v19 }
 0x74a   :  { %5752 = vmatpush1.bf16.msra.mxu0 %v9286_v50  ;;  %5816 = vmatpush1.bf16.msra.mxu1 %v9369_v49 }
 0x74b   :  { %5754 = vmatprep.subr.bf16.mxu0 %v9287_v5  ;;  %5818 = vmatprep.subr.bf16.mxu1 %v9370_v62 }
 0x74e   :  { %5756 = vmatpush1.bf16.msra.mxu0 %v9288_v6  ;;  %5820 = vmatpush1.bf16.msra.mxu1 %v9371_v28 }
 0x74f   :  { %5758 = vmatprep.subr.bf16.mxu0 %v9289_v23  ;;  %5822 = vmatprep.subr.bf16.mxu1 %v9372_v22 }
 0x752   :  { %5760 = vmatpush1.bf16.msra.mxu0 %v9290_v8  ;;  %5824 = vmatpush1.bf16.msra.mxu1 %v9373_v30 }
 0x753   :  { %5762 = vmatprep.subr.bf16.mxu0 %v9291_v56  ;;  %5826 = vmatprep.subr.bf16.mxu1 %v9374_v13 }
 0x756   :  { %5764 = vmatpush1.bf16.msra.mxu0 %v9292_v34  ;;  %5828 = vmatpush1.bf16.msra.mxu1 %v9375_v15 }
 0x757   :  { %5766 = vmatprep.subr.bf16.mxu0 %v9293_v60  ;;  %5830 = vmatprep.subr.bf16.mxu1 %v9376_v32 }
 0x75a   :  { %5768 = vmatpush1.bf16.msra.mxu0 %v9294_v41  ;;  %5832 = vmatpush1.bf16.msra.mxu1 %v9377_v1 }
 0x75b   :  { %5770 = vmatprep.subr.bf16.mxu0 %v9295_v29  ;;  %5834 = vmatprep.subr.bf16.mxu1 %v9378_v36 }
 0x75e   :  { %5772 = vmatpush1.bf16.msra.mxu0 %v9296_v48  ;;  %5836 = vmatpush1.bf16.msra.mxu1 %v9379_v33 }
 0x75f   :  { %5774 = vmatprep.subr.bf16.mxu0 %v9649_v51  ;;  %5838 = vmatprep.subr.bf16.mxu1 %v9650_v7 }
 0x762   :  { %5776 = vmatpush1.bf16.msra.mxu0 %v9651_v0  ;;  %5840 = vmatpush1.bf16.msra.mxu1 %v9652_v42 }
 0x763   :  { %5778 = vmatprep.subr.bf16.mxu0 %v9653_v63  ;;  %5842 = vmatprep.subr.bf16.mxu1 %v9654_v46  ;;  %v9740_v63 = vld [vmem:[#allocation151_spill] sm:$0xff] }
 0x766   :  { %5780 = vmatpush1.bf16.msra.mxu0 %v9655_v27  ;;  %5844 = vmatpush1.bf16.msra.mxu1 %v9656_v9  ;;  %v9666_v27 = vld [vmem:[#allocation138_spill] sm:$0xff]  ;;  %v9667_v9 = vld [vmem:[#allocation113_spill] sm:$0xff] }
 0x767   :  { %5782 = vmatprep.subr.bf16.mxu0 %v9657_v59  ;;  %5846 = vmatprep.subr.bf16.mxu1 %v9658_v54  ;;  %v9668_v59 = vld [vmem:[#allocation139_spill] sm:$0xff] }
 0x768   :  { %v9669_v54 = vld [vmem:[#allocation115_spill] sm:$0xff] }
 0x76a   :  { %5784 = vmatpush1.bf16.msra.mxu0 %v9659_v11  ;;  %5848 = vmatpush1.bf16.msra.mxu1 %v9660_v17  ;;  %v9670_v11 = vld [vmem:[#allocation140_spill] sm:$0xff]  ;;  %v9671_v17 = vld [vmem:[#allocation117_spill] sm:$0xff] }
 0x76b   :  { %5786 = vmatprep.subr.bf16.mxu0 %v9661_v53  ;;  %5850 = vmatprep.subr.bf16.mxu1 %v9662_v31  ;;  %v9672_v53 = vld [vmem:[#allocation141_spill] sm:$0xff]  ;;  %v9673_v31 = vld [vmem:[#allocation22_spill] sm:$0xff] }
 0x76e   :  { %5788 = vmatpush1.bf16.msra.mxu0 %v9663_v58  ;;  %5852 = vmatpush1.bf16.msra.mxu1 %v9664_v10  ;;  %v9674_v58 = vld [vmem:[#allocation40_spill] sm:$0xff]  ;;  %v9739_v10 = vld [vmem:[#allocation150_spill] sm:$0xff] }
 0x76f   :  { %5790 = vmatprep.subr.bf16.mxu0 %v9665_v2  ;;  %5854 = vmatprep.subr.bf16.mxu1 %v9666_v27  ;;  %v9675_v27 = vld [vmem:[#allocation23_spill] sm:$0xff]  ;;  %v9684_v2 = vld [vmem:[#allocation64_spill] sm:$0xff] }
 0x772   :  { %5792 = vmatpush1.bf16.msra.mxu0 %v9667_v9  ;;  %5856 = vmatpush1.bf16.msra.mxu1 %v9668_v59  ;;  %v9676_v9 = vld [vmem:[#allocation56_spill] sm:$0xff] }
 0x773   :  { %5794 = vmatprep.subr.bf16.mxu0 %v9669_v54  ;;  %5858 = vmatprep.subr.bf16.mxu1 %v9670_v11  ;;  %v9677_v59 = vld [vmem:[#allocation24_spill] sm:$0xff]  ;;  %v9678_v54 = vld [vmem:[#allocation58_spill] sm:$0xff]  ;;  %v9679_v11 = vld [vmem:[#allocation25_spill] sm:$0xff] }
 0x776   :  { %5796 = vmatpush1.bf16.msra.mxu0 %v9671_v17  ;;  %5860 = vmatpush1.bf16.msra.mxu1 %v9672_v53  ;;  %v9680_v17 = vld [vmem:[#allocation60_spill] sm:$0xff]  ;;  %v9681_v53 = vld [vmem:[#allocation26_spill] sm:$0xff] }
 0x777   :  { %5862 = vmatprep.subr.bf16.mxu0 %v9673_v31  ;;  %5926 = vmatprep.subr.bf16.mxu1 %v9674_v58  ;;  %v9682_v31 = vld [vmem:[#allocation62_spill] sm:$0xff]  ;;  %v9683_v58 = vld [vmem:[#allocation27_spill] sm:$0xff] }
 0x779   :  { %2943 = vmatmul.mubr.f32.vlgmr.msra.gmra.mrb[4].mxu0 %v8406_v35  ;;  %3014 = vmatmul.mubr.f32.vlgmr.msra.gmra.mrb[36].mxu1 %v8406_v35  ;;  %v9685_v35 = vld [vmem:[#allocation28_spill] sm:$0xff] }
 0x77a   :  { %5864 = vmatpush1.bf16.msra.mxu0 %v9675_v27  ;;  %5928 = vmatpush1.bf16.msra.mxu1 %v9676_v9  ;;  %v9686_v27 = vld [vmem:[#allocation66_spill] sm:$0xff]  ;;  %v9687_v9 = vld [vmem:[#allocation29_spill] sm:$0xff] }
 0x77b   :  { %5866 = vmatprep.subr.bf16.mxu0 %v9677_v59  ;;  %5930 = vmatprep.subr.bf16.mxu1 %v9678_v54  ;;  %v9688_v59 = vld [vmem:[#allocation68_spill] sm:$0xff]  ;;  %v9689_v54 = vld [vmem:[#allocation30_spill] sm:$0xff] }
 0x77e   :  { %5868 = vmatpush1.bf16.msra.mxu0 %v9679_v11  ;;  %5932 = vmatpush1.bf16.msra.mxu1 %v9680_v17  ;;  %v9690_v11 = vld [vmem:[#allocation70_spill] sm:$0xff]  ;;  %v9691_v17 = vld [vmem:[#allocation31_spill] sm:$0xff] }
 0x77f   :  { %5870 = vmatprep.subr.bf16.mxu0 %v9681_v53  ;;  %5934 = vmatprep.subr.bf16.mxu1 %v9682_v31  ;;  %v9692_v53 = vld [vmem:[#allocation72_spill] sm:$0xff] }
 0x780   :  { %v9693_v31 = vld [vmem:[#allocation32_spill] sm:$0xff] }
 0x782   :  { %5872 = vmatpush1.bf16.msra.mxu0 %v9683_v58  ;;  %5936 = vmatpush1.bf16.msra.mxu1 %v9684_v2  ;;  %v9694_v58 = vld [vmem:[#allocation74_spill] sm:$0xff]  ;;  %v9695_v2 = vld [vmem:[#allocation33_spill] sm:$0xff] }
 0x783   :  { %5874 = vmatprep.subr.bf16.mxu0 %v9685_v35  ;;  %5938 = vmatprep.subr.bf16.mxu1 %v9686_v27  ;;  %v9696_v35 = vld [vmem:[#allocation76_spill] sm:$0xff]  ;;  %v9697_v27 = vld [vmem:[#allocation34_spill] sm:$0xff] }
 0x786   :  { %5876 = vmatpush1.bf16.msra.mxu0 %v9687_v9  ;;  %5940 = vmatpush1.bf16.msra.mxu1 %v9688_v59  ;;  %v9698_v9 = vld [vmem:[#allocation78_spill] sm:$0xff]  ;;  %v9699_v59 = vld [vmem:[#allocation35_spill] sm:$0xff] }
 0x787   :  { %5878 = vmatprep.subr.bf16.mxu0 %v9689_v54  ;;  %5942 = vmatprep.subr.bf16.mxu1 %v9690_v11  ;;  %v9700_v54 = vld [vmem:[#allocation80_spill] sm:$0xff] }
 0x788   :  { %v9701_v11 = vld [vmem:[#allocation36_spill] sm:$0xff] }
 0x78a   :  { %5880 = vmatpush1.bf16.msra.mxu0 %v9691_v17  ;;  %5944 = vmatpush1.bf16.msra.mxu1 %v9692_v53  ;;  %v9702_v17 = vld [vmem:[#allocation82_spill] sm:$0xff]  ;;  %v9703_v53 = vld [vmem:[#allocation37_spill] sm:$0xff] }
 0x78b   :  { %5882 = vmatprep.subr.bf16.mxu0 %v9693_v31  ;;  %5946 = vmatprep.subr.bf16.mxu1 %v9694_v58  ;;  %v9704_v31 = vld [vmem:[#allocation84_spill] sm:$0xff]  ;;  %v9705_v58 = vld [vmem:[#allocation38_spill] sm:$0xff] }
 0x78e   :  { %5884 = vmatpush1.bf16.msra.mxu0 %v9695_v2  ;;  %5948 = vmatpush1.bf16.msra.mxu1 %v9696_v35  ;;  %v9706_v2 = vld [vmem:[#allocation86_spill] sm:$0xff]  ;;  %v9707_v35 = vld [vmem:[#allocation39_spill] sm:$0xff] }
 0x78f   :  { %5886 = vmatprep.subr.bf16.mxu0 %v9697_v27  ;;  %5950 = vmatprep.subr.bf16.mxu1 %v9698_v9  ;;  %v9708_v27 = vld [vmem:[#allocation88_spill] sm:$0xff]  ;;  %v9709_v9 = vld [vmem:[#allocation41_spill] sm:$0xff] }
 0x792   :  { %5888 = vmatpush1.bf16.msra.mxu0 %v9699_v59  ;;  %5952 = vmatpush1.bf16.msra.mxu1 %v9700_v54  ;;  %v9710_v59 = vld [vmem:[#allocation90_spill] sm:$0xff] }
 0x793   :  { %5890 = vmatprep.subr.bf16.mxu0 %v9701_v11  ;;  %5954 = vmatprep.subr.bf16.mxu1 %v9702_v17  ;;  %v9711_v54 = vld [vmem:[#allocation42_spill] sm:$0xff]  ;;  %v9712_v11 = vld [vmem:[#allocation92_spill] sm:$0xff]  ;;  %v9713_v17 = vld [vmem:[#allocation43_spill] sm:$0xff] }
 0x796   :  { %5892 = vmatpush1.bf16.msra.mxu0 %v9703_v53  ;;  %5956 = vmatpush1.bf16.msra.mxu1 %v9704_v31  ;;  %v9714_v53 = vld [vmem:[#allocation94_spill] sm:$0xff]  ;;  %v9715_v31 = vld [vmem:[#allocation44_spill] sm:$0xff] }
 0x797   :  { %5894 = vmatprep.subr.bf16.mxu0 %v9705_v58  ;;  %5958 = vmatprep.subr.bf16.mxu1 %v9706_v2  ;;  %v9716_v58 = vld [vmem:[#allocation96_spill] sm:$0xff]  ;;  %v9717_v2 = vld [vmem:[#allocation45_spill] sm:$0xff] }
 0x79a   :  { %5896 = vmatpush1.bf16.msra.mxu0 %v9707_v35  ;;  %5960 = vmatpush1.bf16.msra.mxu1 %v9708_v27  ;;  %v9718_v35 = vld [vmem:[#allocation98_spill] sm:$0xff] }
 0x79b   :  { %5898 = vmatprep.subr.bf16.mxu0 %v9709_v9  ;;  %5962 = vmatprep.subr.bf16.mxu1 %v9710_v59  ;;  %v9719_v27 = vld [vmem:[#allocation46_spill] sm:$0xff]  ;;  %v9720_v9 = vld [vmem:[#allocation100_spill] sm:$0xff]  ;;  %v9721_v59 = vld [vmem:[#allocation47_spill] sm:$0xff] }
 0x79e   :  { %5900 = vmatpush1.bf16.msra.mxu0 %v9711_v54  ;;  %5964 = vmatpush1.bf16.msra.mxu1 %v9712_v11  ;;  %v9722_v54 = vld [vmem:[#allocation102_spill] sm:$0xff]  ;;  %v9723_v11 = vld [vmem:[#allocation48_spill] sm:$0xff] }
 0x79f   :  { %5902 = vmatprep.subr.bf16.mxu0 %v9713_v17  ;;  %5966 = vmatprep.subr.bf16.mxu1 %v9714_v53  ;;  %v9724_v17 = vld [vmem:[#allocation104_spill] sm:$0xff]  ;;  %v9725_v53 = vld [vmem:[#allocation49_spill] sm:$0xff] }
 0x7a2   :  { %5904 = vmatpush1.bf16.msra.mxu0 %v9715_v31  ;;  %5968 = vmatpush1.bf16.msra.mxu1 %v9716_v58  ;;  %v9726_v31 = vld [vmem:[#allocation106_spill] sm:$0xff] }
 0x7a3   :  { %5906 = vmatprep.subr.bf16.mxu0 %v9717_v2  ;;  %5970 = vmatprep.subr.bf16.mxu1 %v9718_v35  ;;  %v9727_v58 = vld [vmem:[#allocation50_spill] sm:$0xff]  ;;  %v9728_v2 = vld [vmem:[#allocation108_spill] sm:$0xff]  ;;  %v9729_v35 = vld [vmem:[#allocation51_spill] sm:$0xff] }
 0x7a6   :  { %5908 = vmatpush1.bf16.msra.mxu0 %v9719_v27  ;;  %5972 = vmatpush1.bf16.msra.mxu1 %v9720_v9  ;;  %v9730_v27 = vld [vmem:[#allocation110_spill] sm:$0xff]  ;;  %v9731_v9 = vld [vmem:[#allocation52_spill] sm:$0xff] }
 0x7a7   :  { %5910 = vmatprep.subr.bf16.mxu0 %v9721_v59  ;;  %5974 = vmatprep.subr.bf16.mxu1 %v9722_v54  ;;  %v9732_v59 = vld [vmem:[#allocation112_spill] sm:$0xff]  ;;  %v9733_v54 = vld [vmem:[#allocation53_spill] sm:$0xff] }
 0x7aa   :  { %5912 = vmatpush1.bf16.msra.mxu0 %v9723_v11  ;;  %5976 = vmatpush1.bf16.msra.mxu1 %v9724_v17  ;;  %v9734_v11 = vld [vmem:[#allocation114_spill] sm:$0xff] }
 0x7ab   :  { %5914 = vmatprep.subr.bf16.mxu0 %v9725_v53  ;;  %5978 = vmatprep.subr.bf16.mxu1 %v9726_v31  ;;  %v9735_v17 = vld [vmem:[#allocation54_spill] sm:$0xff]  ;;  %v9736_v53 = vld [vmem:[#allocation116_spill] sm:$0xff]  ;;  %v9737_v31 = vld [vmem:[#allocation55_spill] sm:$0xff] }
 0x7ae   :  { %5916 = vmatpush1.bf16.msra.mxu0 %v9727_v58  ;;  %5980 = vmatpush1.bf16.msra.mxu1 %v9728_v2  ;;  %v9738_v58 = vld [vmem:[#allocation118_spill] sm:$0xff] }
 0x7af   :  { %5918 = vmatprep.subr.bf16.mxu0 %v9729_v35  ;;  %5982 = vmatprep.subr.bf16.mxu1 %v9730_v27 }
 0x7b2   :  { %5920 = vmatpush1.bf16.msra.mxu0 %v9731_v9  ;;  %5984 = vmatpush1.bf16.msra.mxu1 %v9732_v59 }
 0x7b3   :  { %5922 = vmatprep.subr.bf16.mxu0 %v9733_v54  ;;  %5986 = vmatprep.subr.bf16.mxu1 %v9734_v11 }
 0x7b6   :  { %5924 = vmatpush1.bf16.msra.mxu0 %v9735_v17  ;;  %5988 = vmatpush1.bf16.msra.mxu1 %v9736_v53 }
 0x7b7   :  { %5990 = vmatprep.subr.bf16.mxu0 %v9737_v31  ;;  %6054 = vmatprep.subr.bf16.mxu1 %v9738_v58 }
 0x80c   :  { %v2802_v2 = vpop.f32.mrb[26].mxu0  ;;  %v2873_v35 = vpop.f32.mrb[26].mxu1 }
 0x80d   :  { %v3024_v27 = vadd.f32 %v2802_v2, %v9739_v10  ;;  %v2804_v46 = vpop.f32.mrb[27].mxu0  ;;  %v2875_v9 = vpop.f32.mrb[27].mxu1 }
 0x80e   :  { %v3025_v59 = vadd.f32 %v2804_v46, %v9740_v63  ;;  %v6480_v17 = vadd.f32 %v2875_v9, %v7746_v38 }
 0x80f   :  { %v4154_v42 = vmul.f32 -1.442695, %v3024_v27 }
 0x810   :  { %v4155_v54 = vmul.f32 -1.442695, %v3025_v59 }
 0x811   :  { %6745 = vpow2.f32 %v4154_v42 }
 0x812   :  { %6747 = vpow2.f32 %v4155_v54 }
 0x813   :  { %6749 = vtanh.f32 %v6480_v17 }
 0x81b   :  { %v6746_v11 = vpop.eup %6745 }
 0x81c   :  { %v3037_v53 = vadd.f32 1.0, %v6746_v11  ;;  %v6748_v0 = vpop.eup %6747 }
 0x81d   :  { %v3038_v58 = vadd.f32 1.0, %v6748_v0  ;;  %v6750_v31 = vpop.eup %6749 }
 0x81e   :  { %6751 = vrcp.f32 %v3037_v53 }
 0x81f   :  { %6753 = vrcp.f32 %v3038_v58 }
 0x828   :  { %v6752_v7 = vpop.eup %6751 }
 0x829   :  { %v3048_v2 = vmul.f32 %v6752_v7, %v6750_v31  ;;  %v6754_v10 = vpop.eup %6753  ;;  %v6479_v7 = vadd.f32 %v2873_v35, %v9366_v44 }
 0x82a   :  { %v3047_v51 = vmul.f32 %v6754_v10, %v8392_v57 }
 0x82b   :  { %v4156_v31 = vmul.f32 -1.442695, %v6479_v7 }
 0x82c   :  { %v8548_v63 = vadd.f32 %v3048_v2, %v3047_v51 }
 0x84c   :  { %v2944_v46 = vpop.f32.mrb[4].mxu0  ;;  %v3015_v42 = vpop.f32.mrb[36].mxu1 }
 0x84d   :  { %v6489_v27 = vadd.f32 %v2944_v46, %v9459_v3  ;;  %v2946_v9 = vpop.f32.mrb[5].mxu0  ;;  %v3017_v59 = vpop.f32.mrb[37].mxu1  ;;  %v6505_v0 = vadd.f32 %v3015_v42, %v7769_v37 }
 0x84e   :  { %v6490_v54 = vadd.f32 %v2946_v9, %v9365_v45  ;;  %v6506_v57 = vadd.f32 %v3017_v59, %v7772_v18 }
 0x84f   :  { %v4157_v11 = vmul.f32 -1.442695, %v6489_v27  ;;  %v4159_v51 = vmul.f32 -1.442695, %v6505_v0 }
 0x850   :  { %v4158_v17 = vmul.f32 -1.442695, %v6490_v54 }
 0x851   :  { %6755 = vpow2.f32 %v4157_v11 }
 0x852   :  { %6757 = vpow2.f32 %v4158_v17 }
 0x853   :  { %6759 = vtanh.f32 %v6506_v57 }
 0x854   :  { %6761 = vpow2.f32 %v4159_v51 }
 0x85b   :  { %v6756_v53 = vpop.eup %6755 }
 0x85c   :  { %v3071_v58 = vadd.f32 1.0, %v6756_v53  ;;  %v6758_v2 = vpop.eup %6757 }
 0x85d   :  { %v3072_v10 = vadd.f32 1.0, %v6758_v2  ;;  %v6760_v46 = vpop.eup %6759  ;;  %v9744_v2 = vld [vmem:[#allocation130_spill] sm:$0xff] }
 0x85e   :  { %6763 = vrcp.f32 %v3071_v58  ;;  %v6762_v27 = vpop.eup %6761 }
 0x85f   :  { %6765 = vpow2.f32 %v4156_v31  ;;  %v3073_v35 = vadd.f32 1.0, %v6762_v27  ;;  %v9747_v27 = vld [vmem:[#allocation99_spill] sm:$0xff] }
 0x860   :  { %6767 = vrcp.f32 %v3072_v10  ;;  %v9745_v10 = vld [vmem:[#allocation97_spill] sm:$0xff] }
 0x861   :  { %6769 = vtanh.f32 %v8548_v63 }
 0x862   :  { %6771 = vrcp.f32 %v3073_v35  ;;  %v9752_v35 = vld [vmem:[#allocation134_spill] sm:$0xff] }
 0x868   :  { %v6764_v9 = vpop.eup %6763 }
 0x869   :  { %v6766_v54 = vpop.eup %6765  ;;  %v3082_v42 = vmul.f32 %v6764_v9, %v6760_v46  ;;  %v9746_v46 = vld [vmem:[#allocation131_spill] sm:$0xff]  ;;  %v9748_v9 = vld [vmem:[#allocation132_spill] sm:$0xff] }
 0x86a   :  { %v6768_v11 = vpop.eup %6767  ;;  %v3039_v17 = vadd.f32 1.0, %v6766_v54  ;;  %v9749_v54 = vld [vmem:[#allocation101_spill] sm:$0xff] }
 0x86b   :  { %v3081_v59 = vmul.f32 %v6768_v11, %v8401_v16  ;;  %v6770_v7 = vpop.eup %6769  ;;  %v9743_v16 = vld [vmem:[#allocation95_spill] sm:$0xff] }
 0x86c   :  { %v6772_v57 = vpop.eup %6771  ;;  %v9751_v11 = vld [vmem:[#allocation103_spill] sm:$0xff] }
 0x86d   :  { %v8557_v0 = vadd.f32 %v3082_v42, %v3081_v59  ;;  %v9750_v42 = vld [vmem:[#allocation133_spill] sm:$0xff] }
 0x86e   :  { %v9753_v59 = vld [vmem:[#allocation105_spill] sm:$0xff] }
 0x86f   :  { %6773 = vtanh.f32 %v8557_v0 }
 0x870   :  { %6775 = vrcp.f32 %v3039_v17  ;;  %v9754_v17 = vld [vmem:[#allocation135_spill] sm:$0xff] }
 0x879   :  { %v6774_v51 = vpop.eup %6773 }
 0x87a   :  { %v6776_v53 = vpop.eup %6775  ;;  %v8560_v31 = vmul.f32 %v6774_v51, %v6772_v57  ;;  %v9756_v57 = vld [vmem:[#allocation136_spill] sm:$0xff]  ;;  %v9757_v51 = vld [vmem:[#allocation109_spill] sm:$0xff] }
 0x87b   :  { %v8562_v58 = vmul.f32 %v6776_v53, %v6770_v7  ;;  %v9755_v7 = vld [vmem:[#allocation107_spill] sm:$0xff]  ;;  %v9758_v53 = vld [vmem:[#allocation137_spill] sm:$0xff] }
 0x87c   :  { %9741 = vst [vmem:[#allocation73_spill] sm:$0xff] %v8560_v31  ;;  %3152 = vmatprep.mubr.f32.mxu0 %v8560_v31  ;;  %3223 = vmatprep.mubr.f32.mxu1 %v8560_v31 }
 0x87d   :  { %9742 = vst [vmem:[#allocation75_spill] sm:$0xff] %v8562_v58  ;;  %3153 = vmatmul.mubr.f32.vlgmr.msra.gmra.mrb[28].mxu0 %v8562_v58  ;;  %3224 = vmatmul.mubr.f32.vlgmr.msra.gmra.mrb[28].mxu1 %v8562_v58 }
 0x87e   :  { %5992 = vmatpush1.bf16.msra.mxu0 %v9278_v4  ;;  %6056 = vmatpush1.bf16.msra.mxu1 %v7543_v40 }
 0x87f   :  { %3294 = vmatprep.mubr.f32.mxu0 %v8560_v31  ;;  %3365 = vmatprep.mubr.f32.mxu1 %v8560_v31  ;;  %v9759_v31 = vld [vmem:[#allocation111_spill] sm:$0xff] }
 0x880   :  { %5994 = vmatprep.subr.bf16.mxu0 %v9279_v39  ;;  %6058 = vmatprep.subr.bf16.mxu1 %v7547_v43 }
 0x882   :  { %5996 = vmatpush1.bf16.msra.mxu0 %v9280_v61  ;;  %6060 = vmatpush1.bf16.msra.mxu1 %v7553_v47 }
 0x883   :  { %5998 = vmatprep.subr.bf16.mxu0 %v9281_v12  ;;  %6062 = vmatprep.subr.bf16.mxu1 %v7556_v24 }
 0x886   :  { %6000 = vmatpush1.bf16.msra.mxu0 %v9282_v14  ;;  %6064 = vmatpush1.bf16.msra.mxu1 %v7562_v21 }
 0x887   :  { %6002 = vmatprep.subr.bf16.mxu0 %v9283_v26  ;;  %6066 = vmatprep.subr.bf16.mxu1 %v7565_v52 }
 0x88a   :  { %6004 = vmatpush1.bf16.msra.mxu0 %v9284_v20  ;;  %6068 = vmatpush1.bf16.msra.mxu1 %v7570_v25 }
 0x88b   :  { %6006 = vmatprep.subr.bf16.mxu0 %v9285_v55  ;;  %6070 = vmatprep.subr.bf16.mxu1 %v7573_v19 }
 0x88e   :  { %6008 = vmatpush1.bf16.msra.mxu0 %v9286_v50  ;;  %6072 = vmatpush1.bf16.msra.mxu1 %v9369_v49 }
 0x88f   :  { %6010 = vmatprep.subr.bf16.mxu0 %v9287_v5  ;;  %6074 = vmatprep.subr.bf16.mxu1 %v9370_v62 }
 0x892   :  { %6012 = vmatpush1.bf16.msra.mxu0 %v9288_v6  ;;  %6076 = vmatpush1.bf16.msra.mxu1 %v9371_v28 }
 0x893   :  { %6014 = vmatprep.subr.bf16.mxu0 %v9289_v23  ;;  %6078 = vmatprep.subr.bf16.mxu1 %v9372_v22 }
 0x896   :  { %6016 = vmatpush1.bf16.msra.mxu0 %v9290_v8  ;;  %6080 = vmatpush1.bf16.msra.mxu1 %v9373_v30 }
 0x897   :  { %6018 = vmatprep.subr.bf16.mxu0 %v9291_v56  ;;  %6082 = vmatprep.subr.bf16.mxu1 %v9374_v13 }
 0x89a   :  { %6020 = vmatpush1.bf16.msra.mxu0 %v9292_v34  ;;  %6084 = vmatpush1.bf16.msra.mxu1 %v9375_v15 }
 0x89b   :  { %6022 = vmatprep.subr.bf16.mxu0 %v9293_v60  ;;  %6086 = vmatprep.subr.bf16.mxu1 %v9376_v32 }
 0x89e   :  { %6024 = vmatpush1.bf16.msra.mxu0 %v9294_v41  ;;  %6088 = vmatpush1.bf16.msra.mxu1 %v9377_v1 }
 0x89f   :  { %6026 = vmatprep.subr.bf16.mxu0 %v9295_v29  ;;  %6090 = vmatprep.subr.bf16.mxu1 %v9378_v36 }
 0x8a2   :  { %6028 = vmatpush1.bf16.msra.mxu0 %v9296_v48  ;;  %6092 = vmatpush1.bf16.msra.mxu1 %v9379_v33 }
 0x8a3   :  { %6030 = vmatprep.subr.bf16.mxu0 %v9743_v16  ;;  %6094 = vmatprep.subr.bf16.mxu1 %v9744_v2 }
 0x8a6   :  { %6032 = vmatpush1.bf16.msra.mxu0 %v9745_v10  ;;  %6096 = vmatpush1.bf16.msra.mxu1 %v9746_v46 }
 0x8a7   :  { %6034 = vmatprep.subr.bf16.mxu0 %v9747_v27  ;;  %6098 = vmatprep.subr.bf16.mxu1 %v9748_v9  ;;  %v9834_v27 = vld [vmem:[#allocation153_spill] sm:$0xff] }
 0x8aa   :  { %6036 = vmatpush1.bf16.msra.mxu0 %v9749_v54  ;;  %6100 = vmatpush1.bf16.msra.mxu1 %v9750_v42  ;;  %v9760_v54 = vld [vmem:[#allocation138_spill] sm:$0xff]  ;;  %v9761_v42 = vld [vmem:[#allocation113_spill] sm:$0xff] }
 0x8ab   :  { %6038 = vmatprep.subr.bf16.mxu0 %v9751_v11  ;;  %6102 = vmatprep.subr.bf16.mxu1 %v9752_v35  ;;  %v9762_v11 = vld [vmem:[#allocation139_spill] sm:$0xff] }
 0x8ac   :  { %v9763_v35 = vld [vmem:[#allocation115_spill] sm:$0xff] }
 0x8ae   :  { %6040 = vmatpush1.bf16.msra.mxu0 %v9753_v59  ;;  %6104 = vmatpush1.bf16.msra.mxu1 %v9754_v17  ;;  %v9764_v59 = vld [vmem:[#allocation140_spill] sm:$0xff]  ;;  %v9765_v17 = vld [vmem:[#allocation117_spill] sm:$0xff] }
 0x8af   :  { %6042 = vmatprep.subr.bf16.mxu0 %v9755_v7  ;;  %6106 = vmatprep.subr.bf16.mxu1 %v9756_v57  ;;  %v9766_v7 = vld [vmem:[#allocation141_spill] sm:$0xff]  ;;  %v9767_v57 = vld [vmem:[#allocation22_spill] sm:$0xff] }
 0x8b2   :  { %6044 = vmatpush1.bf16.msra.mxu0 %v9757_v51  ;;  %6108 = vmatpush1.bf16.msra.mxu1 %v9758_v53  ;;  %v9768_v51 = vld [vmem:[#allocation40_spill] sm:$0xff] }
 0x8b3   :  { %6046 = vmatprep.subr.bf16.mxu0 %v9759_v31  ;;  %6110 = vmatprep.subr.bf16.mxu1 %v9760_v54  ;;  %v9769_v54 = vld [vmem:[#allocation23_spill] sm:$0xff]  ;;  %v9778_v31 = vld [vmem:[#allocation64_spill] sm:$0xff] }
 0x8b4   :  { %v9833_v53 = vld [vmem:[#allocation152_spill] sm:$0xff] }
 0x8b6   :  { %6048 = vmatpush1.bf16.msra.mxu0 %v9761_v42  ;;  %6112 = vmatpush1.bf16.msra.mxu1 %v9762_v11  ;;  %v9770_v42 = vld [vmem:[#allocation56_spill] sm:$0xff] }
 0x8b7   :  { %6050 = vmatprep.subr.bf16.mxu0 %v9763_v35  ;;  %6114 = vmatprep.subr.bf16.mxu1 %v9764_v59  ;;  %v9771_v11 = vld [vmem:[#allocation24_spill] sm:$0xff]  ;;  %v9772_v35 = vld [vmem:[#allocation58_spill] sm:$0xff]  ;;  %v9773_v59 = vld [vmem:[#allocation25_spill] sm:$0xff] }
 0x8ba   :  { %6052 = vmatpush1.bf16.msra.mxu0 %v9765_v17  ;;  %6116 = vmatpush1.bf16.msra.mxu1 %v9766_v7  ;;  %v9774_v17 = vld [vmem:[#allocation60_spill] sm:$0xff]  ;;  %v9775_v7 = vld [vmem:[#allocation26_spill] sm:$0xff] }
 0x8bb   :  { %6118 = vmatprep.subr.bf16.mxu0 %v9767_v57  ;;  %6182 = vmatprep.subr.bf16.mxu1 %v9768_v51  ;;  %v9776_v57 = vld [vmem:[#allocation62_spill] sm:$0xff]  ;;  %v9777_v51 = vld [vmem:[#allocation27_spill] sm:$0xff] }
 0x8bd   :  { %3295 = vmatmul.mubr.f32.vlgmr.msra.gmra.mrb[2].mxu0 %v8562_v58  ;;  %3366 = vmatmul.mubr.f32.vlgmr.msra.gmra.mrb[34].mxu1 %v8562_v58  ;;  %v9779_v58 = vld [vmem:[#allocation28_spill] sm:$0xff] }
 0x8be   :  { %6120 = vmatpush1.bf16.msra.mxu0 %v9769_v54  ;;  %6184 = vmatpush1.bf16.msra.mxu1 %v9770_v42  ;;  %v9780_v54 = vld [vmem:[#allocation66_spill] sm:$0xff]  ;;  %v9781_v42 = vld [vmem:[#allocation29_spill] sm:$0xff] }
 0x8bf   :  { %6122 = vmatprep.subr.bf16.mxu0 %v9771_v11  ;;  %6186 = vmatprep.subr.bf16.mxu1 %v9772_v35  ;;  %v9782_v11 = vld [vmem:[#allocation68_spill] sm:$0xff]  ;;  %v9783_v35 = vld [vmem:[#allocation30_spill] sm:$0xff] }
 0x8c2   :  { %6124 = vmatpush1.bf16.msra.mxu0 %v9773_v59  ;;  %6188 = vmatpush1.bf16.msra.mxu1 %v9774_v17  ;;  %v9784_v59 = vld [vmem:[#allocation70_spill] sm:$0xff]  ;;  %v9785_v17 = vld [vmem:[#allocation31_spill] sm:$0xff] }
 0x8c3   :  { %6126 = vmatprep.subr.bf16.mxu0 %v9775_v7  ;;  %6190 = vmatprep.subr.bf16.mxu1 %v9776_v57  ;;  %v9786_v7 = vld [vmem:[#allocation72_spill] sm:$0xff] }
 0x8c4   :  { %v9787_v57 = vld [vmem:[#allocation32_spill] sm:$0xff] }
 0x8c6   :  { %6128 = vmatpush1.bf16.msra.mxu0 %v9777_v51  ;;  %6192 = vmatpush1.bf16.msra.mxu1 %v9778_v31  ;;  %v9788_v51 = vld [vmem:[#allocation74_spill] sm:$0xff]  ;;  %v9789_v31 = vld [vmem:[#allocation33_spill] sm:$0xff] }
 0x8c7   :  { %6130 = vmatprep.subr.bf16.mxu0 %v9779_v58  ;;  %6194 = vmatprep.subr.bf16.mxu1 %v9780_v54  ;;  %v9790_v58 = vld [vmem:[#allocation76_spill] sm:$0xff]  ;;  %v9791_v54 = vld [vmem:[#allocation34_spill] sm:$0xff] }
 0x8ca   :  { %6132 = vmatpush1.bf16.msra.mxu0 %v9781_v42  ;;  %6196 = vmatpush1.bf16.msra.mxu1 %v9782_v11  ;;  %v9792_v42 = vld [vmem:[#allocation78_spill] sm:$0xff]  ;;  %v9793_v11 = vld [vmem:[#allocation35_spill] sm:$0xff] }
 0x8cb   :  { %6134 = vmatprep.subr.bf16.mxu0 %v9783_v35  ;;  %6198 = vmatprep.subr.bf16.mxu1 %v9784_v59  ;;  %v9794_v35 = vld [vmem:[#allocation80_spill] sm:$0xff] }
 0x8cc   :  { %v9795_v59 = vld [vmem:[#allocation36_spill] sm:$0xff] }
 0x8ce   :  { %6136 = vmatpush1.bf16.msra.mxu0 %v9785_v17  ;;  %6200 = vmatpush1.bf16.msra.mxu1 %v9786_v7  ;;  %v9796_v17 = vld [vmem:[#allocation82_spill] sm:$0xff]  ;;  %v9797_v7 = vld [vmem:[#allocation37_spill] sm:$0xff] }
 0x8cf   :  { %6138 = vmatprep.subr.bf16.mxu0 %v9787_v57  ;;  %6202 = vmatprep.subr.bf16.mxu1 %v9788_v51  ;;  %v9798_v57 = vld [vmem:[#allocation84_spill] sm:$0xff]  ;;  %v9799_v51 = vld [vmem:[#allocation38_spill] sm:$0xff] }
 0x8d2   :  { %6140 = vmatpush1.bf16.msra.mxu0 %v9789_v31  ;;  %6204 = vmatpush1.bf16.msra.mxu1 %v9790_v58  ;;  %v9800_v31 = vld [vmem:[#allocation86_spill] sm:$0xff]  ;;  %v9801_v58 = vld [vmem:[#allocation39_spill] sm:$0xff] }
 0x8d3   :  { %6142 = vmatprep.subr.bf16.mxu0 %v9791_v54  ;;  %6206 = vmatprep.subr.bf16.mxu1 %v9792_v42  ;;  %v9802_v54 = vld [vmem:[#allocation88_spill] sm:$0xff]  ;;  %v9803_v42 = vld [vmem:[#allocation41_spill] sm:$0xff] }
 0x8d6   :  { %6144 = vmatpush1.bf16.msra.mxu0 %v9793_v11  ;;  %6208 = vmatpush1.bf16.msra.mxu1 %v9794_v35  ;;  %v9804_v11 = vld [vmem:[#allocation90_spill] sm:$0xff] }
 0x8d7   :  { %6146 = vmatprep.subr.bf16.mxu0 %v9795_v59  ;;  %6210 = vmatprep.subr.bf16.mxu1 %v9796_v17  ;;  %v9805_v35 = vld [vmem:[#allocation42_spill] sm:$0xff]  ;;  %v9806_v59 = vld [vmem:[#allocation92_spill] sm:$0xff]  ;;  %v9807_v17 = vld [vmem:[#allocation43_spill] sm:$0xff] }
 0x8da   :  { %6148 = vmatpush1.bf16.msra.mxu0 %v9797_v7  ;;  %6212 = vmatpush1.bf16.msra.mxu1 %v9798_v57  ;;  %v9808_v7 = vld [vmem:[#allocation94_spill] sm:$0xff]  ;;  %v9809_v57 = vld [vmem:[#allocation44_spill] sm:$0xff] }
 0x8db   :  { %6150 = vmatprep.subr.bf16.mxu0 %v9799_v51  ;;  %6214 = vmatprep.subr.bf16.mxu1 %v9800_v31  ;;  %v9810_v51 = vld [vmem:[#allocation96_spill] sm:$0xff]  ;;  %v9811_v31 = vld [vmem:[#allocation45_spill] sm:$0xff] }
 0x8de   :  { %6152 = vmatpush1.bf16.msra.mxu0 %v9801_v58  ;;  %6216 = vmatpush1.bf16.msra.mxu1 %v9802_v54  ;;  %v9812_v58 = vld [vmem:[#allocation98_spill] sm:$0xff] }
 0x8df   :  { %6154 = vmatprep.subr.bf16.mxu0 %v9803_v42  ;;  %6218 = vmatprep.subr.bf16.mxu1 %v9804_v11  ;;  %v9813_v54 = vld [vmem:[#allocation46_spill] sm:$0xff]  ;;  %v9814_v42 = vld [vmem:[#allocation100_spill] sm:$0xff]  ;;  %v9815_v11 = vld [vmem:[#allocation47_spill] sm:$0xff] }
 0x8e2   :  { %6156 = vmatpush1.bf16.msra.mxu0 %v9805_v35  ;;  %6220 = vmatpush1.bf16.msra.mxu1 %v9806_v59  ;;  %v9816_v35 = vld [vmem:[#allocation102_spill] sm:$0xff]  ;;  %v9817_v59 = vld [vmem:[#allocation48_spill] sm:$0xff] }
 0x8e3   :  { %6158 = vmatprep.subr.bf16.mxu0 %v9807_v17  ;;  %6222 = vmatprep.subr.bf16.mxu1 %v9808_v7  ;;  %v9818_v17 = vld [vmem:[#allocation104_spill] sm:$0xff]  ;;  %v9819_v7 = vld [vmem:[#allocation49_spill] sm:$0xff] }
 0x8e6   :  { %6160 = vmatpush1.bf16.msra.mxu0 %v9809_v57  ;;  %6224 = vmatpush1.bf16.msra.mxu1 %v9810_v51  ;;  %v9820_v57 = vld [vmem:[#allocation106_spill] sm:$0xff] }
 0x8e7   :  { %6162 = vmatprep.subr.bf16.mxu0 %v9811_v31  ;;  %6226 = vmatprep.subr.bf16.mxu1 %v9812_v58  ;;  %v9821_v51 = vld [vmem:[#allocation50_spill] sm:$0xff]  ;;  %v9822_v31 = vld [vmem:[#allocation108_spill] sm:$0xff]  ;;  %v9823_v58 = vld [vmem:[#allocation51_spill] sm:$0xff] }
 0x8ea   :  { %6164 = vmatpush1.bf16.msra.mxu0 %v9813_v54  ;;  %6228 = vmatpush1.bf16.msra.mxu1 %v9814_v42  ;;  %v9824_v54 = vld [vmem:[#allocation110_spill] sm:$0xff]  ;;  %v9825_v42 = vld [vmem:[#allocation52_spill] sm:$0xff] }
 0x8eb   :  { %6166 = vmatprep.subr.bf16.mxu0 %v9815_v11  ;;  %6230 = vmatprep.subr.bf16.mxu1 %v9816_v35  ;;  %v9826_v11 = vld [vmem:[#allocation112_spill] sm:$0xff]  ;;  %v9827_v35 = vld [vmem:[#allocation53_spill] sm:$0xff] }
 0x8ee   :  { %6168 = vmatpush1.bf16.msra.mxu0 %v9817_v59  ;;  %6232 = vmatpush1.bf16.msra.mxu1 %v9818_v17  ;;  %v9828_v59 = vld [vmem:[#allocation114_spill] sm:$0xff] }
 0x8ef   :  { %6170 = vmatprep.subr.bf16.mxu0 %v9819_v7  ;;  %6234 = vmatprep.subr.bf16.mxu1 %v9820_v57  ;;  %v9829_v17 = vld [vmem:[#allocation54_spill] sm:$0xff]  ;;  %v9830_v7 = vld [vmem:[#allocation116_spill] sm:$0xff]  ;;  %v9831_v57 = vld [vmem:[#allocation55_spill] sm:$0xff] }
 0x8f2   :  { %6172 = vmatpush1.bf16.msra.mxu0 %v9821_v51  ;;  %6236 = vmatpush1.bf16.msra.mxu1 %v9822_v31  ;;  %v9832_v51 = vld [vmem:[#allocation118_spill] sm:$0xff] }
 0x8f3   :  { %6174 = vmatprep.subr.bf16.mxu0 %v9823_v58  ;;  %6238 = vmatprep.subr.bf16.mxu1 %v9824_v54 }
 0x8f6   :  { %6176 = vmatpush1.bf16.msra.mxu0 %v9825_v42  ;;  %6240 = vmatpush1.bf16.msra.mxu1 %v9826_v11 }
 0x8f7   :  { %6178 = vmatprep.subr.bf16.mxu0 %v9827_v35  ;;  %6242 = vmatprep.subr.bf16.mxu1 %v9828_v59 }
 0x8fa   :  { %6180 = vmatpush1.bf16.msra.mxu0 %v9829_v17  ;;  %6244 = vmatpush1.bf16.msra.mxu1 %v9830_v7 }
 0x8fb   :  { %6246 = vmatprep.subr.bf16.mxu0 %v9831_v57  ;;  %6310 = vmatprep.subr.bf16.mxu1 %v9832_v51 }
 0x950   :  { %v3154_v31 = vpop.f32.mrb[28].mxu0  ;;  %v3225_v58 = vpop.f32.mrb[28].mxu1 }
 0x951   :  { %v3376_v54 = vadd.f32 %v3154_v31, %v9833_v53  ;;  %v3156_v9 = vpop.f32.mrb[29].mxu0  ;;  %v3227_v42 = vpop.f32.mrb[29].mxu1 }
 0x952   :  { %v3377_v11 = vadd.f32 %v3156_v9, %v9834_v27  ;;  %v6482_v59 = vadd.f32 %v3227_v42, %v7746_v38 }
 0x953   :  { %v4160_v46 = vmul.f32 -1.442695, %v3376_v54 }
 0x954   :  { %v4161_v35 = vmul.f32 -1.442695, %v3377_v11 }
 0x955   :  { %6777 = vpow2.f32 %v4160_v46 }
 0x956   :  { %6779 = vpow2.f32 %v4161_v35 }
 0x957   :  { %6781 = vtanh.f32 %v6482_v59 }
 0x95f   :  { %v6778_v17 = vpop.eup %6777 }
 0x960   :  { %v3389_v7 = vadd.f32 1.0, %v6778_v17  ;;  %v6780_v10 = vpop.eup %6779 }
 0x961   :  { %v3390_v57 = vadd.f32 1.0, %v6780_v10  ;;  %v6782_v51 = vpop.eup %6781 }
 0x962   :  { %6783 = vrcp.f32 %v3389_v7 }
 0x963   :  { %6785 = vrcp.f32 %v3390_v57 }
 0x96c   :  { %v6784_v2 = vpop.eup %6783 }
 0x96d   :  { %v3400_v53 = vmul.f32 %v6784_v2, %v6782_v51  ;;  %v6786_v31 = vpop.eup %6785  ;;  %v6481_v2 = vadd.f32 %v3225_v58, %v9366_v44 }
 0x96e   :  { %v3399_v16 = vmul.f32 %v6786_v31, %v8548_v63 }
 0x96f   :  { %v4162_v57 = vmul.f32 -1.442695, %v6481_v2 }
 0x970   :  { %v8704_v27 = vadd.f32 %v3400_v53, %v3399_v16 }
 0x990   :  { %v3296_v9 = vpop.f32.mrb[2].mxu0  ;;  %v3367_v46 = vpop.f32.mrb[34].mxu1 }
 0x991   :  { %v6487_v54 = vadd.f32 %v3296_v9, %v9459_v3  ;;  %v3298_v42 = vpop.f32.mrb[3].mxu0  ;;  %v3369_v11 = vpop.f32.mrb[35].mxu1  ;;  %v6503_v10 = vadd.f32 %v3367_v46, %v7769_v37 }
 0x992   :  { %v6488_v35 = vadd.f32 %v3298_v42, %v9365_v45  ;;  %v6504_v63 = vadd.f32 %v3369_v11, %v7772_v18 }
 0x993   :  { %v4163_v59 = vmul.f32 -1.442695, %v6487_v54  ;;  %v4165_v16 = vmul.f32 -1.442695, %v6503_v10 }
 0x994   :  { %v4164_v17 = vmul.f32 -1.442695, %v6488_v35 }
 0x995   :  { %6787 = vpow2.f32 %v4163_v59 }
 0x996   :  { %6789 = vpow2.f32 %v4164_v17 }
 0x997   :  { %6791 = vtanh.f32 %v6504_v63 }
 0x998   :  { %6793 = vpow2.f32 %v4165_v16 }
 0x99f   :  { %v6788_v7 = vpop.eup %6787 }
 0x9a0   :  { %v3423_v51 = vadd.f32 1.0, %v6788_v7  ;;  %v6790_v53 = vpop.eup %6789 }
 0x9a1   :  { %v3424_v31 = vadd.f32 1.0, %v6790_v53  ;;  %v6792_v9 = vpop.eup %6791  ;;  %v3833_v53 = vld [vmem:[#allocation14 + $0x50] sm:$0xff] }
 0x9a2   :  { %6795 = vrcp.f32 %v3423_v51  ;;  %v6794_v54 = vpop.eup %6793 }
 0x9a3   :  { %6797 = vpow2.f32 %v4162_v57  ;;  %v3425_v58 = vadd.f32 1.0, %v6794_v54  ;;  %v3835_v54 = vld [vmem:[#allocation14 + $0x60] sm:$0xff] }
 0x9a4   :  { %6799 = vrcp.f32 %v3424_v31  ;;  %v3834_v31 = vld [vmem:[#allocation14 + $0x58] sm:$0xff] }
 0x9a5   :  { %6801 = vtanh.f32 %v8704_v27 }
 0x9a6   :  { %6803 = vrcp.f32 %v3425_v58 }
 0x9ac   :  { %v6796_v42 = vpop.eup %6795 }
 0x9ad   :  { %v6798_v35 = vpop.eup %6797  ;;  %v3434_v46 = vmul.f32 %v6796_v42, %v6792_v9  ;;  %v6393_v9 = vpack.c.bf16 %v3834_v31, %v3833_v53  ;;  %v3836_v42 = vld [vmem:[#allocation14 + $0x68] sm:$0xff] }
 0x9ae   :  { %v6800_v59 = vpop.eup %6799  ;;  %v3391_v17 = vadd.f32 1.0, %v6798_v35  ;;  %v3837_v35 = vld [vmem:[#allocation14 + $0x70] sm:$0xff] }
 0x9af   :  { %v3433_v11 = vmul.f32 %v6800_v59, %v8557_v0  ;;  %v6802_v2 = vpop.eup %6801  ;;  %v3838_v59 = vld [vmem:[#allocation14 + $0x78] sm:$0xff] }
 0x9b0   :  { %v6804_v63 = vpop.eup %6803  ;;  %v6401_v58 = vpack.c.bf16 %v3838_v59, %v3837_v35 }
 0x9b1   :  { %v8713_v10 = vadd.f32 %v3434_v46, %v3433_v11  ;;  %v6397_v46 = vpack.c.bf16 %v3836_v42, %v3835_v54  ;;  %v3807_v11 = vld [vmem:[#allocation13] sm:$0xff]  ;;  %v3809_v54 = vld [vmem:[#allocation13 + $0x10] sm:$0xff]  ;;  %v3810_v42 = vld [vmem:[#allocation13 + $0x18] sm:$0xff] }
 0x9b2   :  { %v6409_v59 = vpack.c.bf16 %v3810_v42, %v3809_v54 }
 0x9b3   :  { %6805 = vtanh.f32 %v8713_v10 }
 0x9b4   :  { %6807 = vrcp.f32 %v3391_v17  ;;  %v3808_v17 = vld [vmem:[#allocation13 + $0x8] sm:$0xff] }
 0x9bd   :  { %v6806_v16 = vpop.eup %6805 }
 0x9be   :  { %v6808_v7 = vpop.eup %6807  ;;  %v8716_v57 = vmul.f32 %v6806_v16, %v6804_v63 }
 0x9bf   :  { %v8718_v51 = vmul.f32 %v6808_v7, %v6802_v2  ;;  %v8790_v2 = vpack.c.bf16 %v3808_v17, %v3807_v11  ;;  %v9859_v7 = vld [vmem:[#allocation154_spill] sm:$0xff]  ;;  %v3812_v11 = vld [vmem:[#allocation13 + $0x28] sm:$0xff]  ;;  %v9861_v17 = vld [vmem:[#allocation73_spill] sm:$0xff] }
 0x9c0   :  { %3504 = vmatprep.mubr.f32.mxu0 %v8716_v57  ;;  %3575 = vmatprep.mubr.f32.mxu1 %v8716_v57 }
 0x9c1   :  { %3505 = vmatmul.mubr.f32.vlgmr.msra.gmra.mrb[30].mxu0 %v8718_v51  ;;  %3576 = vmatmul.mubr.f32.vlgmr.msra.gmra.mrb[30].mxu1 %v8718_v51 }
 0x9c2   :  { %6248 = vmatpush1.bf16.msra.mxu0 %v9278_v4  ;;  %6312 = vmatpush1.bf16.msra.mxu1 %v7543_v40  ;;  %v9838_v40 = vld [vmem:[#allocation131_spill] sm:$0xff]  ;;  %v9849_v4 = vld [vmem:[#allocation109_spill] sm:$0xff] }
 0x9c3   :  { %3646 = vmatprep.mubr.f32.mxu0 %v8716_v57  ;;  %3717 = vmatprep.mubr.f32.mxu1 %v8716_v57 }
 0x9c4   :  { %6250 = vmatprep.subr.bf16.mxu0 %v9279_v39  ;;  %6314 = vmatprep.subr.bf16.mxu1 %v7547_v43  ;;  %v9839_v43 = vld [vmem:[#allocation99_spill] sm:$0xff]  ;;  %v9850_v39 = vld [vmem:[#allocation137_spill] sm:$0xff] }
 0x9c6   :  { %6252 = vmatpush1.bf16.msra.mxu0 %v9280_v61  ;;  %6316 = vmatpush1.bf16.msra.mxu1 %v7553_v47  ;;  %v9841_v47 = vld [vmem:[#allocation101_spill] sm:$0xff]  ;;  %v9851_v61 = vld [vmem:[#allocation111_spill] sm:$0xff] }
 0x9c7   :  { %6254 = vmatprep.subr.bf16.mxu0 %v9281_v12  ;;  %6318 = vmatprep.subr.bf16.mxu1 %v7556_v24  ;;  %v9842_v24 = vld [vmem:[#allocation133_spill] sm:$0xff]  ;;  %v9852_v12 = vld [vmem:[#allocation138_spill] sm:$0xff] }
 0x9ca   :  { %6256 = vmatpush1.bf16.msra.mxu0 %v9282_v14  ;;  %6320 = vmatpush1.bf16.msra.mxu1 %v7562_v21  ;;  %v9835_v21 = vld [vmem:[#allocation95_spill] sm:$0xff]  ;;  %v9853_v14 = vld [vmem:[#allocation113_spill] sm:$0xff] }
 0x9cb   :  { %6258 = vmatprep.subr.bf16.mxu0 %v9283_v26  ;;  %6322 = vmatprep.subr.bf16.mxu1 %v7565_v52  ;;  %v9843_v52 = vld [vmem:[#allocation103_spill] sm:$0xff] }
 0x9cc   :  { %v9854_v26 = vld [vmem:[#allocation139_spill] sm:$0xff] }
 0x9ce   :  { %6260 = vmatpush1.bf16.msra.mxu0 %v9284_v20  ;;  %6324 = vmatpush1.bf16.msra.mxu1 %v7570_v25  ;;  %v9836_v25 = vld [vmem:[#allocation130_spill] sm:$0xff]  ;;  %v9855_v20 = vld [vmem:[#allocation115_spill] sm:$0xff] }
 0x9cf   :  { %6262 = vmatprep.subr.bf16.mxu0 %v9285_v55  ;;  %6326 = vmatprep.subr.bf16.mxu1 %v7573_v19  ;;  %v9845_v19 = vld [vmem:[#allocation105_spill] sm:$0xff]  ;;  %v9856_v55 = vld [vmem:[#allocation140_spill] sm:$0xff] }
 0x9d2   :  { %6264 = vmatpush1.bf16.msra.mxu0 %v9286_v50  ;;  %6328 = vmatpush1.bf16.msra.mxu1 %v9369_v49  ;;  %v9857_v50 = vld [vmem:[#allocation117_spill] sm:$0xff]  ;;  %v3825_v49 = vld [vmem:[#allocation14 + $0x10] sm:$0xff] }
 0x9d3   :  { %6266 = vmatprep.subr.bf16.mxu0 %v9287_v5  ;;  %6330 = vmatprep.subr.bf16.mxu1 %v9370_v62  ;;  %v9858_v5 = vld [vmem:[#allocation141_spill] sm:$0xff] }
 0x9d4   :  { %v3826_v62 = vld [vmem:[#allocation14 + $0x18] sm:$0xff] }
 0x9d6   :  { %6268 = vmatpush1.bf16.msra.mxu0 %v9288_v6  ;;  %6332 = vmatpush1.bf16.msra.mxu1 %v9371_v28  ;;  %v3823_v6 = vld [vmem:[#allocation14] sm:$0xff]  ;;  %v6377_v28 = vpack.c.bf16 %v3826_v62, %v3825_v49 }
 0x9d7   :  { %6270 = vmatprep.subr.bf16.mxu0 %v9289_v23  ;;  %6334 = vmatprep.subr.bf16.mxu1 %v9372_v22  ;;  %v3824_v23 = vld [vmem:[#allocation14 + $0x8] sm:$0xff]  ;;  %v3827_v22 = vld [vmem:[#allocation14 + $0x20] sm:$0xff] }
 0x9da   :  { %6272 = vmatpush1.bf16.msra.mxu0 %v9290_v8  ;;  %6336 = vmatpush1.bf16.msra.mxu1 %v9373_v30  ;;  %v6373_v8 = vpack.c.bf16 %v3824_v23, %v3823_v6  ;;  %v3828_v30 = vld [vmem:[#allocation14 + $0x28] sm:$0xff] }
 0x9db   :  { %6274 = vmatprep.subr.bf16.mxu0 %v9291_v56  ;;  %6338 = vmatprep.subr.bf16.mxu1 %v9374_v13  ;;  %v9848_v56 = vld [vmem:[#allocation136_spill] sm:$0xff]  ;;  %v6381_v13 = vpack.c.bf16 %v3828_v30, %v3827_v22 }
 0x9de   :  { %6276 = vmatpush1.bf16.msra.mxu0 %v9292_v34  ;;  %6340 = vmatpush1.bf16.msra.mxu1 %v9375_v15  ;;  %v9837_v34 = vld [vmem:[#allocation97_spill] sm:$0xff]  ;;  %v3829_v15 = vld [vmem:[#allocation14 + $0x30] sm:$0xff] }
 0x9df   :  { %6278 = vmatprep.subr.bf16.mxu0 %v9293_v60  ;;  %6342 = vmatprep.subr.bf16.mxu1 %v9376_v32  ;;  %v9846_v60 = vld [vmem:[#allocation135_spill] sm:$0xff]  ;;  %v3830_v32 = vld [vmem:[#allocation14 + $0x38] sm:$0xff] }
 0x9e2   :  { %6280 = vmatpush1.bf16.msra.mxu0 %v9294_v41  ;;  %6344 = vmatpush1.bf16.msra.mxu1 %v9377_v1  ;;  %v9840_v41 = vld [vmem:[#allocation132_spill] sm:$0xff]  ;;  %v6385_v1 = vpack.c.bf16 %v3830_v32, %v3829_v15 }
 0x9e3   :  { %6282 = vmatprep.subr.bf16.mxu0 %v9295_v29  ;;  %6346 = vmatprep.subr.bf16.mxu1 %v9378_v36  ;;  %v9847_v29 = vld [vmem:[#allocation107_spill] sm:$0xff]  ;;  %v3831_v36 = vld [vmem:[#allocation14 + $0x40] sm:$0xff] }
 0x9e6   :  { %6284 = vmatpush1.bf16.msra.mxu0 %v9296_v48  ;;  %6348 = vmatpush1.bf16.msra.mxu1 %v9379_v33  ;;  %v9844_v48 = vld [vmem:[#allocation134_spill] sm:$0xff]  ;;  %v3832_v33 = vld [vmem:[#allocation14 + $0x48] sm:$0xff] }
 0x9e7   :  { %6286 = vmatprep.subr.bf16.mxu0 %v9835_v21  ;;  %6350 = vmatprep.subr.bf16.mxu1 %v9836_v25  ;;  %v6389_v0 = vpack.c.bf16 %v3832_v33, %v3831_v36 }
 0x9ea   :  { %6288 = vmatpush1.bf16.msra.mxu0 %v9837_v34  ;;  %6352 = vmatpush1.bf16.msra.mxu1 %v9838_v40  ;;  %v9860_v40 = vld [vmem:[#allocation155_spill] sm:$0xff] }
 0x9eb   :  { %6290 = vmatprep.subr.bf16.mxu0 %v9839_v43  ;;  %6354 = vmatprep.subr.bf16.mxu1 %v9840_v41 }
 0x9ee   :  { %6292 = vmatpush1.bf16.msra.mxu0 %v9841_v47  ;;  %6356 = vmatpush1.bf16.msra.mxu1 %v9842_v24 }
 0x9ef   :  { %6294 = vmatprep.subr.bf16.mxu0 %v9843_v52  ;;  %6358 = vmatprep.subr.bf16.mxu1 %v9844_v48 }
 0x9f2   :  { %6296 = vmatpush1.bf16.msra.mxu0 %v9845_v19  ;;  %6360 = vmatpush1.bf16.msra.mxu1 %v9846_v60 }
 0x9f3   :  { %6298 = vmatprep.subr.bf16.mxu0 %v9847_v29  ;;  %6362 = vmatprep.subr.bf16.mxu1 %v9848_v56 }
 0x9f6   :  { %6300 = vmatpush1.bf16.msra.mxu0 %v9849_v4  ;;  %6364 = vmatpush1.bf16.msra.mxu1 %v9850_v39 }
 0x9f7   :  { %6302 = vmatprep.subr.bf16.mxu0 %v9851_v61  ;;  %6366 = vmatprep.subr.bf16.mxu1 %v9852_v12 }
 0x9fa   :  { %6304 = vmatpush1.bf16.msra.mxu0 %v9853_v14  ;;  %6368 = vmatpush1.bf16.msra.mxu1 %v9854_v26 }
 0x9fb   :  { %6306 = vmatprep.subr.bf16.mxu0 %v9855_v20  ;;  %6370 = vmatprep.subr.bf16.mxu1 %v9856_v55 }
 0x9fe   :  { %6308 = vmatpush1.bf16.msra.mxu0 %v9857_v50  ;;  %6372 = vmatpush1.bf16.msra.mxu1 %v9858_v5 }
 0x9ff   :  { %6374 = vmatprep.subr.bf16.mxu0 %v6373_v8 }
 0xa01   :  { %3647 = vmatmul.mubr.f32.vlgmr.msra.gmra.mrb[0].mxu0 %v8718_v51  ;;  %3718 = vmatmul.mubr.f32.vlgmr.msra.gmra.mrb[32].mxu1 %v8718_v51 }
 0xa02   :  { %6376 = vmatpush3.bf16.msra.mxu0 %v6373_v8 }
 0xa03   :  { %6378 = vmatprep.subr.bf16.mxu0 %v6377_v28 }
 0xa06   :  { %6380 = vmatpush3.bf16.msra.mxu0 %v6377_v28 }
 0xa07   :  { %6382 = vmatprep.subr.bf16.mxu0 %v6381_v13 }
 0xa0a   :  { %6384 = vmatpush3.bf16.msra.mxu0 %v6381_v13 }
 0xa0b   :  { %6386 = vmatprep.subr.bf16.mxu0 %v6385_v1 }
 0xa0e   :  { %6388 = vmatpush3.bf16.msra.mxu0 %v6385_v1 }
 0xa0f   :  { %6390 = vmatprep.subr.bf16.mxu0 %v6389_v0 }
 0xa12   :  { %6392 = vmatpush3.bf16.msra.mxu0 %v6389_v0 }
 0xa13   :  { %6394 = vmatprep.subr.bf16.mxu0 %v6393_v9 }
 0xa16   :  { %6396 = vmatpush3.bf16.msra.mxu0 %v6393_v9 }
 0xa17   :  { %6398 = vmatprep.subr.bf16.mxu0 %v6397_v46 }
 0xa1a   :  { %6400 = vmatpush3.bf16.msra.mxu0 %v6397_v46 }
 0xa1b   :  { %6402 = vmatprep.subr.bf16.mxu0 %v6401_v58 }
 0xa1e   :  { %6404 = vmatpush3.bf16.msra.mxu0 %v6401_v58  ;;  %v3811_v58 = vld [vmem:[#allocation13 + $0x20] sm:$0xff] }
 0xa1f   :  { %6406 = vmatprep.subr.bf16.mxu0 %v8790_v2 }
 0xa94   :  { %v3506_v63 = vpop.f32.mrb[30].mxu0  ;;  %v3577_v16 = vpop.f32.mrb[30].mxu1 }
 0xa95   :  { %v3728_v21 = vadd.f32 %v3506_v63, %v9859_v7  ;;  %v3508_v25 = vpop.f32.mrb[31].mxu0  ;;  %v3579_v34 = vpop.f32.mrb[31].mxu1  ;;  %v6483_v24 = vadd.f32 %v3577_v16, %v9366_v44  ;;  %v3813_v63 = vld [vmem:[#allocation13 + $0x30] sm:$0xff]  ;;  %v3814_v16 = vld [vmem:[#allocation13 + $0x38] sm:$0xff] }
 0xa96   :  { %v3729_v43 = vadd.f32 %v3508_v25, %v9860_v40  ;;  %v6484_v52 = vadd.f32 %v3579_v34, %v7746_v38  ;;  %v9862_v7 = vld [vmem:[#allocation69_spill] sm:$0xff]  ;;  %v6417_v25 = vpack.c.bf16 %v3814_v16, %v3813_v63  ;;  %v3815_v34 = vld [vmem:[#allocation13 + $0x40] sm:$0xff]  ;;  %v3816_v40 = vld [vmem:[#allocation13 + $0x48] sm:$0xff] }
 0xa97   :  { %v4166_v41 = vmul.f32 -1.442695, %v3728_v21  ;;  %v4168_v48 = vmul.f32 -1.442695, %v6483_v24  ;;  %v9863_v21 = vld [vmem:[#allocation65_spill] sm:$0xff]  ;;  %v9866_v24 = vld [vmem:[#allocation159_spill] sm:$0xff] }
 0xa98   :  { %v4167_v47 = vmul.f32 -1.442695, %v3729_v43  ;;  %v9864_v43 = vld [vmem:[#allocation61_spill] sm:$0xff] }
 0xa99   :  { %6809 = vpow2.f32 %v4166_v41  ;;  %v3817_v41 = vld [vmem:[#allocation13 + $0x50] sm:$0xff] }
 0xa9a   :  { %6811 = vpow2.f32 %v4167_v47  ;;  %v3818_v47 = vld [vmem:[#allocation13 + $0x58] sm:$0xff] }
 0xa9b   :  { %6813 = vtanh.f32 %v6484_v52  ;;  %v9867_v52 = vld [vmem:[#allocation160_spill] sm:$0xff] }
 0xa9c   :  { %6815 = vpow2.f32 %v4168_v48  ;;  %v6425_v48 = vpack.c.bf16 %v3818_v47, %v3817_v41 }
 0xaa3   :  { %v6810_v19 = vpop.eup %6809 }
 0xaa4   :  { %v3741_v60 = vadd.f32 1.0, %v6810_v19  ;;  %v6812_v29 = vpop.eup %6811  ;;  %v3819_v19 = vld [vmem:[#allocation13 + $0x60] sm:$0xff] }
 0xaa5   :  { %v3742_v56 = vadd.f32 1.0, %v6812_v29  ;;  %v6814_v4 = vpop.eup %6813 }
 0xaa6   :  { %6817 = vrcp.f32 %v3741_v60  ;;  %v6816_v39 = vpop.eup %6815  ;;  %v3820_v60 = vld [vmem:[#allocation13 + $0x68] sm:$0xff] }
 0xaa7   :  { %6819 = vrcp.f32 %v3742_v56  ;;  %v3743_v26 = vadd.f32 1.0, %v6816_v39  ;;  %v6429_v29 = vpack.c.bf16 %v3820_v60, %v3819_v19  ;;  %v3821_v56 = vld [vmem:[#allocation13 + $0x70] sm:$0xff] }
 0xaa9   :  { %6821 = vrcp.f32 %v3743_v26  ;;  %v9871_v26 = vld [vmem:[#allocation71_spill] sm:$0xff] }
 0xab0   :  { %v6818_v61 = vpop.eup %6817 }
 0xab1   :  { %v3752_v12 = vmul.f32 %v6818_v61, %v6814_v4  ;;  %v6820_v14 = vpop.eup %6819  ;;  %v3822_v4 = vld [vmem:[#allocation13 + $0x78] sm:$0xff]  ;;  %v9868_v61 = vld [vmem:[#allocation59_spill] sm:$0xff] }
 0xab2   :  { %v3751_v20 = vmul.f32 %v6820_v14, %v8704_v27  ;;  %v6433_v39 = vpack.c.bf16 %v3822_v4, %v3821_v56  ;;  %v9870_v14 = vld [vmem:[#allocation67_spill] sm:$0xff] }
 0xab3   :  { %v6822_v38 = vpop.eup %6821 }
 0xab4   :  { %v3753_v44 = vadd.f32 %v3752_v12, %v3751_v20  ;;  %v9869_v12 = vld [vmem:[#allocation63_spill] sm:$0xff] }
 0xab5   :  { %v9872_v20 = vld [vmem:[#allocation75_spill] sm:$0xff] }
 0xab6   :  { %6823 = vtanh.f32 %v3753_v44  ;;  %v4172_v44 = vld [vmem:[%s8845_s6] ss:$0 sm:$0xff]  ;;  %s6973_s6 = scalar_lea.vmem %s4078_s18, 1024 }
 0xab7   :  { %p6974_p6 = scmp.ne.s32.totalorder %s4078_s18, %s6973_s6  ;;  %p6979_p8 = scmp.lt.s32.totalorder %s6973_s6, %s6973_s6 }
 0xab9   :  { %p6980_p9 = por %p6979_p8, %p6978_p7 }
 0xabb   :  { %p6981_p10 = pnand %p6980_p9, %p6974_p6 }
 0xac0   :  { %v6824_v55 = vpop.eup %6823 }
 0xac1   :  { %v8798_v50 = vmul.f32 %v6824_v55, %v6822_v38 }
 0xad4   :  { %v3648_v5 = vpop.f32.mrb[0].mxu0  ;;  %v3719_v6 = vpop.f32.mrb[32].mxu1 }
 0xad5   :  { %v6485_v23 = vadd.f32 %v3648_v5, %v9459_v3  ;;  %v3650_v8 = vpop.f32.mrb[1].mxu0  ;;  %v3721_v49 = vpop.f32.mrb[33].mxu1  ;;  %v6501_v27 = vadd.f32 %v3719_v6, %v7769_v37 }
 0xad6   :  { %v6486_v62 = vadd.f32 %v3650_v8, %v9365_v45  ;;  %v6502_v30 = vadd.f32 %v3721_v49, %v7772_v18 }
 0xad7   :  { %v4169_v28 = vmul.f32 -1.442695, %v6485_v23  ;;  %v4171_v13 = vmul.f32 -1.442695, %v6501_v27 }
 0xad8   :  { %v4170_v22 = vmul.f32 -1.442695, %v6486_v62 }
 0xad9   :  { %6825 = vpow2.f32 %v4169_v28 }
 0xada   :  { %6827 = vpow2.f32 %v4170_v22 }
 0xadb   :  { %6829 = vtanh.f32 %v6502_v30 }
 0xadc   :  { %6831 = vpow2.f32 %v4171_v13 }
 0xae3   :  { %v6826_v15 = vpop.eup %6825 }
 0xae4   :  { %v3775_v32 = vadd.f32 1.0, %v6826_v15  ;;  %v6828_v1 = vpop.eup %6827 }
 0xae5   :  { %v3776_v3 = vadd.f32 1.0, %v6828_v1  ;;  %v6830_v36 = vpop.eup %6829 }
 0xae6   :  { %6833 = vrcp.f32 %v3775_v32  ;;  %v6832_v33 = vpop.eup %6831 }
 0xae7   :  { %6835 = vrcp.f32 %v3776_v3  ;;  %v3777_v31 = vadd.f32 1.0, %v6832_v33 }
 0xae9   :  { %6837 = vrcp.f32 %v3777_v31 }
 0xaf0   :  { %v6834_v45 = vpop.eup %6833 }
 0xaf1   :  { %v3786_v0 = vmul.f32 %v6834_v45, %v6830_v36  ;;  %v6836_v53 = vpop.eup %6835 }
 0xaf2   :  { %v3785_v9 = vmul.f32 %v6836_v53, %v8713_v10  ;;  %v6413_v10 = vpack.c.bf16 %v3812_v11, %v3811_v58 }
 0xaf3   :  { %v6838_v18 = vpop.eup %6837 }
 0xaf4   :  { %v3787_v37 = vadd.f32 %v3786_v0, %v3785_v9 }
 0xaf6   :  { %6839 = vtanh.f32 %v3787_v37 }
 0xb00   :  { %v6840_v35 = vpop.eup %6839 }
 0xb01   :  { %v3789_v46 = vmul.f32 %v6840_v35, %v6838_v18 }
 0xb03   :  { %4253 = vmatprep.mubr.f32.mxu0 %v3789_v46 }
 0xb04   :  { %4254 = vmatmul.mubr.f32.vlgmr.msra.gmra.mrb[32].mxu0 %v8716_v57  ;;  %v9865_v57 = vld [vmem:[#allocation57_spill] sm:$0xff] }
 0xb05   :  { %6408 = vmatpush3.bf16.msra.mxu0 %v8790_v2  ;;  %4256 = vmatprep.mubr.f32.mxu0 %v9861_v17  ;;  %v6421_v2 = vpack.c.bf16 %v3816_v40, %v3815_v34 }
 0xb06   :  { %6410 = vmatprep.subr.bf16.mxu0 %v6409_v59 }
 0xb08   :  { %4257 = vmatmul.mubr.f32.gmra.mrb[34].mxu0 %v9862_v7 }
 0xb09   :  { %6412 = vmatpush3.bf16.msra.mxu0 %v6409_v59  ;;  %4259 = vmatprep.mubr.f32.mxu0 %v9863_v21 }
 0xb0a   :  { %6414 = vmatprep.subr.bf16.mxu0 %v6413_v10 }
 0xb0c   :  { %4260 = vmatmul.mubr.f32.gmra.mrb[36].mxu0 %v9864_v43 }
 0xb0d   :  { %6416 = vmatpush3.bf16.msra.mxu0 %v6413_v10  ;;  %4262 = vmatprep.mubr.f32.mxu0 %v9865_v57 }
 0xb0e   :  { %6418 = vmatprep.subr.bf16.mxu0 %v6417_v25 }
 0xb10   :  { %4263 = vmatmul.mubr.f32.gmra.mrb[38].mxu0 %v9866_v24 }
 0xb11   :  { %6420 = vmatpush3.bf16.msra.mxu0 %v6417_v25  ;;  %4297 = vmatprep.mubr.f32.mxu0 %v9867_v52 }
 0xb12   :  { %6422 = vmatprep.subr.bf16.mxu0 %v6421_v2 }
 0xb15   :  { %6424 = vmatpush3.bf16.msra.mxu0 %v6421_v2 }
 0xb16   :  { %6426 = vmatprep.subr.bf16.mxu0 %v6425_v48 }
 0xb19   :  { %6428 = vmatpush3.bf16.msra.mxu0 %v6425_v48 }
 0xb1a   :  { %6430 = vmatprep.subr.bf16.mxu0 %v6429_v29 }
 0xb1d   :  { %6432 = vmatpush3.bf16.msra.mxu0 %v6429_v29 }
 0xb1e   :  { %6434 = vmatprep.subr.bf16.mxu0 %v6433_v39 }
 0xb21   :  { %6436 = vmatpush3.bf16.msra.mxu0 %v6433_v39 }
 0xb24   :  { %4298 = vmatmul.mubr.f32.vlgmr.msra.gmra.mrb[32].mxu0 %v9868_v61 }
 0xb25   :  { %4300 = vmatprep.mubr.f32.mxu0 %v9869_v12 }
 0xb28   :  { %4301 = vmatmul.mubr.f32.gmra.mrb[34].mxu0 %v9870_v14 }
 0xb29   :  { %4303 = vmatprep.mubr.f32.mxu0 %v9871_v26 }
 0xb2c   :  { %4304 = vmatmul.mubr.f32.gmra.mrb[36].mxu0 %v9872_v20 }
 0xb2d   :  { %4306 = vmatprep.mubr.f32.mxu0 %v8718_v51 }
 0xb30   :  { %4307 = vmatmul.mubr.f32.gmra.mrb[38].mxu0 %v8798_v50 }
 0xbf7   :  { %v4299_v38 = vpop.f32.mrb[32].mxu0 }
 0xbf8   :  { %v4057_v55 = vadd.f32 %v4299_v38, %v4172_v44  ;;  %v4010_v5 = vpop.f32.mrb[33].mxu0 }
 0xbf9   :  { %v4056_v6 = vadd.f32 %v4172_v44, %v4010_v5 }
 0xbfa   :  { %4065 = vst [vmem:[#allocation16 + $0x8] sm:$0xff] %v4057_v55 }
 0xbfb   :  { %4064 = vst [vmem:[#allocation16] sm:$0xff] %v4056_v6  ;;  %v4302_v23 = vpop.f32.mrb[34].mxu0 }
 0xbfc   :  { %v4059_v8 = vadd.f32 %v4302_v23, %v4172_v44  ;;  %v4020_v49 = vpop.f32.mrb[35].mxu0 }
 0xbfd   :  { %v4058_v62 = vadd.f32 %v4172_v44, %v4020_v49 }
 0xbfe   :  { %4067 = vst [vmem:[#allocation16 + $0x18] sm:$0xff] %v4059_v8 }
 0xbff   :  { %4066 = vst [vmem:[#allocation16 + $0x10] sm:$0xff] %v4058_v62  ;;  %v4305_v28 = vpop.f32.mrb[36].mxu0 }
 0xc00   :  { %v4061_v51 = vadd.f32 %v4305_v28, %v4172_v44  ;;  %v4030_v22 = vpop.f32.mrb[37].mxu0 }
 0xc01   :  { %v4060_v50 = vadd.f32 %v4172_v44, %v4030_v22 }
 0xc02   :  { %4069 = vst [vmem:[#allocation16 + $0x28] sm:$0xff] %v4061_v51 }
 0xc03   :  { %4068 = vst [vmem:[#allocation16 + $0x20] sm:$0xff] %v4060_v50  ;;  %v4308_v27 = vpop.f32.mrb[38].mxu0 }
 0xc04   :  { %v4063_v30 = vadd.f32 %v4308_v27, %v4172_v44  ;;  %v4040_v13 = vpop.f32.mrb[39].mxu0 }
 0xc05   :  { %v4062_v15 = vadd.f32 %v4172_v44, %v4040_v13 }
 0xc06   :  { %4071 = vst [vmem:[#allocation16 + $0x38] sm:$0xff] %v4063_v30 }
 0xc07   :  { %4070 = vst [vmem:[#allocation16 + $0x30] sm:$0xff] %v4062_v15 }
 0xc08   :  { %6984 = shalt.err (!%p6981_p10)
}
 0xc09   :  { %s6985_s29 = scalar_lea.hbm %s8846_s7, 1024 }
 0xc0a   :  { %p6986_p11 = scmp.ne.s32.totalorder %s8846_s7, %s6985_s29  ;;  %p6989_p12 = scmp.lt.u32.totalorder %s6985_s29, %s8846_s7 }
 0xc0c   :  { %p6991_p13 = pnand %p6989_p12, %p6986_p11 }
 0xc0e   :  { %6994 = shalt.err (!%p6991_p13)
}
 0xc0f   :  { %4083 = dma.vmem_to_hbm [thread:$0]  %s4078_s18, 1024, %s8846_s7, [#allocation7], %s7010_s3, %s7010_s3, %s7011_s11  }
 0xc10   :  { %7003 = dma.done.wait [#allocation7], 1024  }
 0xc11   :  { %7004 = vsyncadd [#allocation7], 4294966272 }
 0xc12   :  { %4087 = vsyncpa [#allocation6], 1 }
 0xc13   :  { %4088 = vsyncpa [#allocation9], 1 }
 0xc14   :  { %4089 = vsyncpa [#allocation12], 1 }
 0xc15   :  { %4090 = vsyncpa [#allocation15], 1 }
 0xc16   :  { %4091 = vsyncpa [#allocation7], 1 }

</bundles_post_ra>
